<compile_context>
chip_gen: v6e
topology: v6e:2x2x1
jax: 0.10.0
libtpu: 0.0.40
codegen_flags: <defaults>
</compile_context>

<pallas_src>
import numpy as np

import jax
import jax.numpy as jnp
from jax.experimental import pallas as pl
from jax.experimental.pallas import tpu as pltpu

# ----------------------------- static configuration -----------------------------
N = 2                               # batch
C0, H0, W0 = 4, 16, 16              # input_size
C1, C2 = 8, 16                      # channels = [4, 8, 16]
K = 3                               # c_kernel (stride 1, no padding)
H1, W1 = H0 - K + 1, W0 - K + 1     # 14, 14
H2, W2 = H1 - K + 1, W1 - K + 1     # 12, 12
LAT = 32                            # latent_dimension
FLAT = C2 * H2 * W2                 # 2304
BN_EPS = 1e-5

WC0 = W0 * C0                       # 64
WC1 = W1 * C1                       # 112
WC2 = W2 * C2                       # 192
HP1 = H2 + 2 * (K - 1)              # 16  (H-padded slab for tconv1)
HP0 = H1 + 2 * (K - 1)              # 18  (H-padded slab for tconv0)


# --------------------------------- fused kernel ---------------------------------
def _dae_kernel(x_ref,
                e1b_ref, e2b_ref,            # encoder conv band matrices (bf16, kh-folded)
                edw_ref, edb_ref,            # encoder dense (bf16 / f32)
                ddw_ref, ddb_ref,            # decoder dense (bf16 / f32)
                d1b_ref, d0b_ref,            # decoder tconv band matrices (bf16, kh-folded)
                g8_ref, g8t_ref, g16_ref, g16t_ref, g4_ref, g4t_ref,  # BN channel gathers
                o_ref):                      # output (N, H0*W0*C0) f32
    f32, bf16 = jnp.float32, jnp.bfloat16

    def window(slab, h_in, h_out):
        """(N*h_in, wc) bf16 slab -> (N*h_out, K*wc): kh folded onto lanes, batch on M."""
        return jnp.concatenate(
            [jnp.concatenate([slab[n * h_in + kh:n * h_in + kh + h_out, :]
                              for kh in range(K)], axis=1)
             for n in range(N)], axis=0)

    def conv(slab_bf16, h_in, h_out, band_ref):
        """One MXU dot per conv/tconv layer (f32 accumulation)."""
        return jnp.dot(window(slab_bf16, h_in, h_out), band_ref[...],
                       preferred_element_type=f32)

    def bn(y, g_ref, gt_ref, count, relu):
        """BatchNorm2d (train stats, biased var, identity affine) on a channel-
        interleaved (rows, W*C) slab. One-pass stats; one stacked stats dot + one
        stacked broadcast dot via the 0/1 gather matrices (kept f32 for precision)."""
        col = jnp.concatenate([jnp.sum(y, axis=0, keepdims=True),
                               jnp.sum(y * y, axis=0, keepdims=True)], axis=0)   # (2, WC)
        stats = jnp.dot(col, g_ref[...], preferred_element_type=f32) * (1.0 / count)  # (2, C)
        mean = stats[0:1, :]
        var = jnp.maximum(stats[1:2, :] - mean * mean, 0.0)
        inv = jax.lax.rsqrt(var + BN_EPS)
        bc = jnp.dot(jnp.concatenate([inv, mean * inv], axis=0), gt_ref[...],
                     preferred_element_type=f32)                                  # (2, WC)
        out = y * bc[0:1, :] - bc[1:2, :]
        return jnp.maximum(out, 0.0) if relu else out

    def flat_rows(slab, base, nrows):
        """nrows consecutive rows of one sample -> one lane-dense (1, nrows*wc) row."""
        return jnp.concatenate([slab[base + h:base + h + 1, :] for h in range(nrows)],
                               axis=1)

    # ------------------------------- encoder -------------------------------
    x = x_ref[...]                                                   # (N*H0, WC0) bf16
    # conv1 (4->8) + BN + ReLU   (conv bias skipped: cancelled exactly by train BN)
    y1 = bn(conv(x, H0, H1, e1b_ref), g8_ref, g8t_ref, N * H1 * W1, True)
    y1b = y1.astype(bf16)
    # conv2 (8->16) + BN + ReLU
    y2 = bn(conv(y1b, H1, H2, e2b_ref), g16_ref, g16t_ref, N * H2 * W2, True)
    y2b = y2.astype(bf16)

    # flatten (lane-concat, rides the XLU) + dense(2304 -> 32) + ReLU
    flat = jnp.concatenate([flat_rows(y2b, n * H2, H2) for n in range(N)], axis=0)  # (N, FLAT)
    z = jnp.maximum(jnp.dot(flat, edw_ref[...], preferred_element_type=f32)
                    + edb_ref[...], 0.0)                             # (N, LAT)

    # ------------------------------- decoder -------------------------------
    # dense(32 -> 2304) + ReLU  (single dot), then unflatten + zero H-halo via concat
    ydec = jnp.maximum(jnp.dot(z.astype(bf16), ddw_ref[...], preferred_element_type=f32)
                       + ddb_ref[...], 0.0)                          # (N, FLAT)
    ydec_b = ydec.astype(bf16)

    halo2 = jnp.zeros((K - 1, WC2), bf16)
    p1 = jnp.concatenate(
        [jnp.concatenate([halo2]
                         + [ydec_b[n:n + 1, h * WC2:(h + 1) * WC2] for h in range(H2)]
                         + [halo2], axis=0)
         for n in range(N)], axis=0)                                 # (N*HP1, WC2) bf16

    # tconv1 (16->8, 14x14) + BN + ReLU   (bias skipped: cancelled by BN)
    yd1 = bn(conv(p1, HP1, H1, d1b_ref), g8_ref, g8t_ref, N * H1 * W1, True)
    yd1b = yd1.astype(bf16)

    halo1 = jnp.zeros((K - 1, WC1), bf16)
    p0 = jnp.concatenate(
        [jnp.concatenate([halo1, yd1b[n * H1:(n + 1) * H1, :], halo1], axis=0)
         for n in range(N)], axis=0)                                 # (N*HP0, WC1) bf16

    # tconv0 (8->4, 16x16) + BN, NO activation (torch decoder i == 0 branch)
    yd0 = bn(conv(p0, HP0, H0, d0b_ref), g4_ref, g4t_ref, N * H0 * W0, False)

    # lane-dense output: (N, H0*W0*C0) = (2, 1024)
    o_ref[...] = jnp.concatenate([flat_rows(yd0, n * H0, H0) for n in range(N)], axis=0)


# ----------------------------- host-side param prep -----------------------------
def _conv_band(w, w_in):
    """Band matrices B[kh] (w_in*cin, wout*cout) for a VALID conv on (H, W*C) slabs.
    w: torch Conv2d weight (cout, cin, k, k)."""
    w = np.asarray(w, np.float32)
    cout, cin, k, _ = w.shape
    wout = w_in - k + 1
    b = np.zeros((k, w_in * cin, wout * cout), np.float32)
    for kh in range(k):
        for wo in range(wout):
            for kw in range(k):
                wi = wo + kw
                b[kh, wi * cin:(wi + 1) * cin, wo * cout:(wo + 1) * cout] = w[:, :, kh, kw].T
    return b


def _tconv_band(w, w_in):
    """Band matrices for ConvTranspose2d(stride=1, pad=0) expressed as a full conv on an
    H-padded slab (W padding / kernel flip folded into the band).
    w: torch ConvTranspose2d weight (cin, cout, k, k)."""
    w = np.asarray(w, np.float32)
    cin, cout, k, _ = w.shape
    wout = w_in + k - 1
    b = np.zeros((k, w_in * cin, wout * cout), np.float32)
    for kh in range(k):
        for wo in range(wout):
            for wi in range(w_in):
                d = wo - wi
                if 0 <= d < k:
                    b[kh, wi * cin:(wi + 1) * cin, wo * cout:(wo + 1) * cout] = w[:, :, k - 1 - kh, d]
    return b


def _gather(wout, c):
    """G[w*c + ci, cj] = (ci == cj): strided channel gather for BN stats."""
    return np.tile(np.eye(c, dtype=np.float32), (wout, 1))


def init_params(key):
    """Deterministic torch-layout parameters (same shapes as the lazy torch module)."""
    keys = jax.random.split(key, 12)

    def nrm(k, shape):
        return 0.1 * jax.random.normal(k, shape, jnp.float32)

    return {
        "enc_conv1_w": nrm(keys[0], (C1, C0, K, K)), "enc_conv1_b": nrm(keys[1], (C1,)),
        "enc_conv2_w": nrm(keys[2], (C2, C1, K, K)), "enc_conv2_b": nrm(keys[3], (C2,)),
        "enc_dense_w": nrm(keys[4], (LAT, FLAT)),    "enc_dense_b": nrm(keys[5], (LAT,)),
        "dec_dense_w": nrm(keys[6], (FLAT, LAT)),    "dec_dense_b": nrm(keys[7], (FLAT,)),
        "dec_tconv1_w": nrm(keys[8], (C2, C1, K, K)), "dec_tconv1_b": nrm(keys[9], (C1,)),
        "dec_tconv0_w": nrm(keys[10], (C1, C0, K, K)), "dec_tconv0_b": nrm(keys[11], (C0,)),
    }


def prepare_operands(params):
    """One-time repack of torch-layout params into the fused-kernel operand layout.
    Conv/tconv biases are intentionally dropped: train-mode BN cancels them exactly."""
    bf, f32 = jnp.bfloat16, jnp.float32

    # kh-folded band matrices: (K*Win*Cin, Wout*Cout)
    e1b = _conv_band(params["enc_conv1_w"], W0).reshape(K * WC0, WC1)
    e2b = _conv_band(params["enc_conv2_w"], W1).reshape(K * WC1, WC2)
    d1b = _tconv_band(params["dec_tconv1_w"], W2).reshape(K * WC2, WC1)
    d0b = _tconv_band(params["dec_tconv0_w"], W1).reshape(K * WC1, WC0)

    # encoder dense: edw[h*W2*C2 + w*C2 + c, l] = W[l, c*H2*W2 + h*W2 + w]
    edw = np.asarray(params["enc_dense_w"], np.float32)
    edw = edw.reshape(LAT, C2, H2, W2).transpose(2, 3, 1, 0).reshape(FLAT, LAT)
    # decoder dense: ddw[l, h*W2*C2 + w*C2 + c] = W[c*H2*W2 + h*W2 + w, l]
    ddw = np.asarray(params["dec_dense_w"], np.float32)
    ddw = ddw.reshape(C2, H2, W2, LAT).transpose(3, 1, 2, 0).reshape(LAT, FLAT)
    ddb = np.asarray(params["dec_dense_b"], np.float32)
    ddb = ddb.reshape(C2, H2, W2).transpose(1, 2, 0).reshape(1, FLAT)

    g8, g16, g4 = _gather(W1, C1), _gather(W2, C2), _gather(W0, C0)
    return {
        "e1b": jnp.asarray(e1b, bf), "e2b": jnp.asarray(e2b, bf),
        "edw": jnp.asarray(edw, bf),
        "edb": jnp.asarray(params["enc_dense_b"], f32).reshape(1, LAT),
        "ddw": jnp.asarray(ddw, bf), "ddb": jnp.asarray(ddb, f32),
        "d1b": jnp.asarray(d1b, bf), "d0b": jnp.asarray(d0b, bf),
        "g8": jnp.asarray(g8), "g8t": jnp.asarray(np.ascontiguousarray(g8.T)),
        "g16": jnp.asarray(g16), "g16t": jnp.asarray(np.ascontiguousarray(g16.T)),
        "g4": jnp.asarray(g4), "g4t": jnp.asarray(np.ascontiguousarray(g4.T)),
    }


# --------------------------------- forward wrapper -------------------------------
def _full_spec(shape):
    nd = len(shape)
    return pl.BlockSpec(shape, lambda i: (0,) * nd)


@jax.jit
def dae_forward(ops, x_nchw):
    """DynamicAE forward: NCHW in -> NCHW out, one fused Pallas kernel.
    Note (v7x): grid=(1,) keeps the kernel on one TensorCore; batch-wide BN prevents
    an in-kernel batch split, so shard independent microbatches at the caller level."""
    x_slab = jnp.transpose(x_nchw, (0, 2, 3, 1)).reshape(N * H0, WC0).astype(jnp.bfloat16)
    operands = (x_slab, ops["e1b"], ops["e2b"], ops["edw"], ops["edb"],
                ops["ddw"], ops["ddb"], ops["d1b"], ops["d0b"],
                ops["g8"], ops["g8t"], ops["g16"], ops["g16t"], ops["g4"], ops["g4t"])
    y = pl.pallas_call(
        _dae_kernel,
        out_shape=jax.ShapeDtypeStruct((N, H0 * WC0), jnp.float32),
        grid=(1,),
        in_specs=[_full_spec(op.shape) for op in operands],
        out_specs=_full_spec((N, H0 * WC0)),
        compiler_params=pltpu.CompilerParams(dimension_semantics=("arbitrary",)),
    )(*operands)
    return jnp.transpose(y.reshape(N, H0, W0, C0), (0, 3, 1, 2))


# ----------------------- pure-JAX reference (correctness check) ------------------
def _rb(a):  # round MXU operands to bf16, like the kernel
    return a.astype(jnp.bfloat16).astype(jnp.float32)


def _bn_ref(y):
    mean = jnp.mean(y, axis=(0, 2, 3), keepdims=True)
    var = jnp.mean((y - mean) ** 2, axis=(0, 2, 3), keepdims=True)
    return (y - mean) * jax.lax.rsqrt(var + BN_EPS)


def _conv_ref(x, w, b):
    y = jax.lax.conv_general_dilated(_rb(x), _rb(w), (1, 1), "VALID",
                                     dimension_numbers=("NCHW", "OIHW", "NCHW"))
    return y + b.reshape(1, -1, 1, 1)


def _tconv_ref(x, w, b):
    wf = jnp.transpose(w[:, :, ::-1, ::-1], (1, 0, 2, 3))
    xp = jnp.pad(x, ((0, 0), (0, 0), (K - 1, K - 1), (K - 1, K - 1)))
    y = jax.lax.conv_general_dilated(_rb(xp), _rb(wf), (1, 1), "VALID",
                                     dimension_numbers=("NCHW", "OIHW", "NCHW"))
    return y + b.reshape(1, -1, 1, 1)


@jax.jit
def reference_forward(params, x):
    h = jax.nn.relu(_bn_ref(_conv_ref(x, params["enc_conv1_w"], params["enc_conv1_b"])))
    h = jax.nn.relu(_bn_ref(_conv_ref(h, params["enc_conv2_w"], params["enc_conv2_b"])))
    flat = h.reshape(x.shape[0], -1)
    z = jax.nn.relu(_rb(flat) @ _rb(params["enc_dense_w"]).T + params["enc_dense_b"])
    y = jax.nn.relu(_rb(z) @ _rb(params["dec_dense_w"]).T + params["dec_dense_b"])
    y = y.reshape(x.shape[0], C2, H2, W2)
    y = jax.nn.relu(_bn_ref(_tconv_ref(y, params["dec_tconv1_w"], params["dec_tconv1_b"])))
    return _bn_ref(_tconv_ref(y, params["dec_tconv0_w"], params["dec_tconv0_b"]))


# -------------------------------------- main --------------------------------------
if __name__ == "__main__":
    key = jax.random.PRNGKey(0)
    k_params, k_x = jax.random.split(key)
    params = init_params(k_params)
    ops = prepare_operands(params)
    x = jax.random.normal(k_x, (N, C0, H0, W0), jnp.float32)   # NCHW, like PyTorch

    out = jax.block_until_ready(dae_forward(ops, x))

    assert out.shape == (N, C0, H0, W0), out.shape
    assert out.dtype == jnp.float32
    assert bool(jnp.all(jnp.isfinite(out)))

    # Cross-check vs a pure-JAX/XLA reference of the same module (both use bf16
    # MXU operands + f32 accumulation, so agreement should be tight).
    ref = jax.block_until_ready(reference_forward(params, x))
    max_abs = float(jnp.max(jnp.abs(out - ref)))
    assert max_abs < 5e-2, f"kernel/reference mismatch: max |diff| = {max_abs}"

    print("KERNEL_OK")
</pallas_src>

<mosaic_0001>
module attributes {stable_mosaic.version = 11 : i64} {
  func.func @_dae_kernel(%arg0: i32, %arg1: memref<32x64xbf16, #tpu.memory_space<vmem>>, %arg2: memref<192x112xbf16, #tpu.memory_space<vmem>>, %arg3: memref<336x192xbf16, #tpu.memory_space<vmem>>, %arg4: memref<2304x32xbf16, #tpu.memory_space<vmem>>, %arg5: memref<1x32xf32, #tpu.memory_space<vmem>>, %arg6: memref<32x2304xbf16, #tpu.memory_space<vmem>>, %arg7: memref<1x2304xf32, #tpu.memory_space<vmem>>, %arg8: memref<576x112xbf16, #tpu.memory_space<vmem>>, %arg9: memref<336x64xbf16, #tpu.memory_space<vmem>>, %arg10: memref<112x8xf32, #tpu.memory_space<vmem>>, %arg11: memref<8x112xf32, #tpu.memory_space<vmem>>, %arg12: memref<192x16xf32, #tpu.memory_space<vmem>>, %arg13: memref<16x192xf32, #tpu.memory_space<vmem>>, %arg14: memref<64x4xf32, #tpu.memory_space<vmem>>, %arg15: memref<4x64xf32, #tpu.memory_space<vmem>>, %arg16: memref<2x1024xf32, #tpu.memory_space<vmem>>) attributes {dimension_semantics = [#tpu.dimension_semantics<arbitrary>], iteration_bounds = array<i64: 1>, scalar_prefetch = 0 : i64, scratch_operands = 0 : i64, tpu.core_type = #tpu.core_type<tc>, window_params = [{pipeline_mode = #tpu.pipeline_mode<synchronous>, transform_indices = @transform_0, window_bounds = array<i64: 32, 64>}, {pipeline_mode = #tpu.pipeline_mode<synchronous>, transform_indices = @transform_1, window_bounds = array<i64: 192, 112>}, {pipeline_mode = #tpu.pipeline_mode<synchronous>, transform_indices = @transform_2, window_bounds = array<i64: 336, 192>}, {pipeline_mode = #tpu.pipeline_mode<synchronous>, transform_indices = @transform_3, window_bounds = array<i64: 2304, 32>}, {pipeline_mode = #tpu.pipeline_mode<synchronous>, transform_indices = @transform_4, window_bounds = array<i64: 1, 32>}, {pipeline_mode = #tpu.pipeline_mode<synchronous>, transform_indices = @transform_5, window_bounds = array<i64: 32, 2304>}, {pipeline_mode = #tpu.pipeline_mode<synchronous>, transform_indices = @transform_6, window_bounds = array<i64: 1, 2304>}, {pipeline_mode = #tpu.pipeline_mode<synchronous>, transform_indices = @transform_7, window_bounds = array<i64: 576, 112>}, {pipeline_mode = #tpu.pipeline_mode<synchronous>, transform_indices = @transform_8, window_bounds = array<i64: 336, 64>}, {pipeline_mode = #tpu.pipeline_mode<synchronous>, transform_indices = @transform_9, window_bounds = array<i64: 112, 8>}, {pipeline_mode = #tpu.pipeline_mode<synchronous>, transform_indices = @transform_10, window_bounds = array<i64: 8, 112>}, {pipeline_mode = #tpu.pipeline_mode<synchronous>, transform_indices = @transform_11, window_bounds = array<i64: 192, 16>}, {pipeline_mode = #tpu.pipeline_mode<synchronous>, transform_indices = @transform_12, window_bounds = array<i64: 16, 192>}, {pipeline_mode = #tpu.pipeline_mode<synchronous>, transform_indices = @transform_13, window_bounds = array<i64: 64, 4>}, {pipeline_mode = #tpu.pipeline_mode<synchronous>, transform_indices = @transform_14, window_bounds = array<i64: 4, 64>}, {pipeline_mode = #tpu.pipeline_mode<synchronous>, transform_indices = @transform_15, window_bounds = array<i64: 2, 1024>}]} {
    %c0 = arith.constant 0 : index
    %c0_0 = arith.constant 0 : index
    %0 = vector.load %arg1[%c0, %c0_0] : memref<32x64xbf16, #tpu.memory_space<vmem>>, vector<32x64xbf16>
    %1 = vector.extract_strided_slice %0 {offsets = [0, 0], sizes = [14, 64], strides = [1, 1]} : vector<32x64xbf16> to vector<14x64xbf16>
    %2 = vector.extract_strided_slice %0 {offsets = [1, 0], sizes = [14, 64], strides = [1, 1]} : vector<32x64xbf16> to vector<14x64xbf16>
    %3 = vector.extract_strided_slice %0 {offsets = [2, 0], sizes = [14, 64], strides = [1, 1]} : vector<32x64xbf16> to vector<14x64xbf16>
    %4 = tpu.concatenate %1, %2, %3 in 1 : vector<14x64xbf16>, vector<14x64xbf16>, vector<14x64xbf16> -> vector<14x192xbf16>
    %5 = vector.extract_strided_slice %0 {offsets = [16, 0], sizes = [14, 64], strides = [1, 1]} : vector<32x64xbf16> to vector<14x64xbf16>
    %6 = vector.extract_strided_slice %0 {offsets = [17, 0], sizes = [14, 64], strides = [1, 1]} : vector<32x64xbf16> to vector<14x64xbf16>
    %7 = vector.extract_strided_slice %0 {offsets = [18, 0], sizes = [14, 64], strides = [1, 1]} : vector<32x64xbf16> to vector<14x64xbf16>
    %8 = tpu.concatenate %5, %6, %7 in 1 : vector<14x64xbf16>, vector<14x64xbf16>, vector<14x64xbf16> -> vector<14x192xbf16>
    %9 = tpu.concatenate %4, %8 in 0 : vector<14x192xbf16>, vector<14x192xbf16> -> vector<28x192xbf16>
    %c0_1 = arith.constant 0 : index
    %c0_2 = arith.constant 0 : index
    %10 = vector.load %arg2[%c0_1, %c0_2] : memref<192x112xbf16, #tpu.memory_space<vmem>>, vector<192x112xbf16>
    %cst = arith.constant dense<0.000000e+00> : vector<28x112xf32>
    %11 = tpu.matmul %9, %10, %cst {dimension_numbers = #tpu.dot_dimension_numbers<[1], [0], [0], [1], [0, 0, 1, 1], [], []>} : vector<28x192xbf16>, vector<192x112xbf16>, vector<28x112xf32> -> vector<28x112xf32>
    %cst_3 = arith.constant dense<0.000000e+00> : vector<112xf32>
    %12 = vector.multi_reduction <add>, %11, %cst_3 [0] : vector<28x112xf32> to vector<112xf32>
    %13 = vector.shape_cast %12 : vector<112xf32> to vector<1x112xf32>
    %14 = arith.mulf %11, %11 : vector<28x112xf32>
    %cst_4 = arith.constant dense<0.000000e+00> : vector<112xf32>
    %15 = vector.multi_reduction <add>, %14, %cst_4 [0] : vector<28x112xf32> to vector<112xf32>
    %16 = vector.shape_cast %15 : vector<112xf32> to vector<1x112xf32>
    %17 = tpu.concatenate %13, %16 in 0 : vector<1x112xf32>, vector<1x112xf32> -> vector<2x112xf32>
    %c0_5 = arith.constant 0 : index
    %c0_6 = arith.constant 0 : index
    %18 = vector.load %arg10[%c0_5, %c0_6] : memref<112x8xf32, #tpu.memory_space<vmem>>, vector<112x8xf32>
    %cst_7 = arith.constant dense<0.000000e+00> : vector<2x8xf32>
    %19 = tpu.matmul %17, %18, %cst_7 {dimension_numbers = #tpu.dot_dimension_numbers<[1], [0], [0], [1], [0, 0, 1, 1], [], []>} : vector<2x112xf32>, vector<112x8xf32>, vector<2x8xf32> -> vector<2x8xf32>
    %cst_8 = arith.constant 0.00255102036 : f32
    %20 = vector.broadcast %cst_8 : f32 to vector<2x8xf32>
    %21 = arith.mulf %19, %20 : vector<2x8xf32>
    %22 = vector.extract_strided_slice %21 {offsets = [0, 0], sizes = [1, 8], strides = [1, 1]} : vector<2x8xf32> to vector<1x8xf32>
    %23 = vector.extract_strided_slice %21 {offsets = [1, 0], sizes = [1, 8], strides = [1, 1]} : vector<2x8xf32> to vector<1x8xf32>
    %24 = arith.mulf %22, %22 : vector<1x8xf32>
    %25 = arith.subf %23, %24 : vector<1x8xf32>
    %cst_9 = arith.constant 0.000000e+00 : f32
    %26 = vector.broadcast %cst_9 : f32 to vector<1x8xf32>
    %27 = arith.maximumf %25, %26 : vector<1x8xf32>
    %cst_10 = arith.constant 9.99999974E-6 : f32
    %28 = vector.broadcast %cst_10 : f32 to vector<1x8xf32>
    %29 = arith.addf %27, %28 : vector<1x8xf32>
    %30 = math.rsqrt %29 : vector<1x8xf32>
    %31 = arith.mulf %22, %30 : vector<1x8xf32>
    %32 = tpu.concatenate %30, %31 in 0 : vector<1x8xf32>, vector<1x8xf32> -> vector<2x8xf32>
    %c0_11 = arith.constant 0 : index
    %c0_12 = arith.constant 0 : index
    %33 = vector.load %arg11[%c0_11, %c0_12] : memref<8x112xf32, #tpu.memory_space<vmem>>, vector<8x112xf32>
    %cst_13 = arith.constant dense<0.000000e+00> : vector<2x112xf32>
    %34 = tpu.matmul %32, %33, %cst_13 {dimension_numbers = #tpu.dot_dimension_numbers<[1], [0], [0], [1], [0, 0, 1, 1], [], []>} : vector<2x8xf32>, vector<8x112xf32>, vector<2x112xf32> -> vector<2x112xf32>
    %35 = vector.extract_strided_slice %34 {offsets = [0, 0], sizes = [1, 112], strides = [1, 1]} : vector<2x112xf32> to vector<1x112xf32>
    %36 = vector.broadcast %35 : vector<1x112xf32> to vector<28x112xf32>
    %37 = arith.mulf %11, %36 : vector<28x112xf32>
    %38 = vector.extract_strided_slice %34 {offsets = [1, 0], sizes = [1, 112], strides = [1, 1]} : vector<2x112xf32> to vector<1x112xf32>
    %39 = vector.broadcast %38 : vector<1x112xf32> to vector<28x112xf32>
    %40 = arith.subf %37, %39 : vector<28x112xf32>
    %cst_14 = arith.constant 0.000000e+00 : f32
    %41 = vector.broadcast %cst_14 : f32 to vector<28x112xf32>
    %42 = arith.maximumf %40, %41 : vector<28x112xf32>
    %43 = arith.truncf %42 : vector<28x112xf32> to vector<28x112xbf16>
    %44 = vector.extract_strided_slice %43 {offsets = [0, 0], sizes = [12, 112], strides = [1, 1]} : vector<28x112xbf16> to vector<12x112xbf16>
    %45 = vector.extract_strided_slice %43 {offsets = [1, 0], sizes = [12, 112], strides = [1, 1]} : vector<28x112xbf16> to vector<12x112xbf16>
    %46 = vector.extract_strided_slice %43 {offsets = [2, 0], sizes = [12, 112], strides = [1, 1]} : vector<28x112xbf16> to vector<12x112xbf16>
    %47 = tpu.concatenate %44, %45, %46 in 1 : vector<12x112xbf16>, vector<12x112xbf16>, vector<12x112xbf16> -> vector<12x336xbf16>
    %48 = vector.extract_strided_slice %43 {offsets = [14, 0], sizes = [12, 112], strides = [1, 1]} : vector<28x112xbf16> to vector<12x112xbf16>
    %49 = vector.extract_strided_slice %43 {offsets = [15, 0], sizes = [12, 112], strides = [1, 1]} : vector<28x112xbf16> to vector<12x112xbf16>
    %50 = vector.extract_strided_slice %43 {offsets = [16, 0], sizes = [12, 112], strides = [1, 1]} : vector<28x112xbf16> to vector<12x112xbf16>
    %51 = tpu.concatenate %48, %49, %50 in 1 : vector<12x112xbf16>, vector<12x112xbf16>, vector<12x112xbf16> -> vector<12x336xbf16>
    %52 = tpu.concatenate %47, %51 in 0 : vector<12x336xbf16>, vector<12x336xbf16> -> vector<24x336xbf16>
    %c0_15 = arith.constant 0 : index
    %c0_16 = arith.constant 0 : index
    %53 = vector.load %arg3[%c0_15, %c0_16] : memref<336x192xbf16, #tpu.memory_space<vmem>>, vector<336x192xbf16>
    %cst_17 = arith.constant dense<0.000000e+00> : vector<24x192xf32>
    %54 = tpu.matmul %52, %53, %cst_17 {dimension_numbers = #tpu.dot_dimension_numbers<[1], [0], [0], [1], [0, 0, 1, 1], [], []>} : vector<24x336xbf16>, vector<336x192xbf16>, vector<24x192xf32> -> vector<24x192xf32>
    %cst_18 = arith.constant dense<0.000000e+00> : vector<192xf32>
    %55 = vector.multi_reduction <add>, %54, %cst_18 [0] : vector<24x192xf32> to vector<192xf32>
    %56 = vector.shape_cast %55 : vector<192xf32> to vector<1x192xf32>
    %57 = arith.mulf %54, %54 : vector<24x192xf32>
    %cst_19 = arith.constant dense<0.000000e+00> : vector<192xf32>
    %58 = vector.multi_reduction <add>, %57, %cst_19 [0] : vector<24x192xf32> to vector<192xf32>
    %59 = vector.shape_cast %58 : vector<192xf32> to vector<1x192xf32>
    %60 = tpu.concatenate %56, %59 in 0 : vector<1x192xf32>, vector<1x192xf32> -> vector<2x192xf32>
    %c0_20 = arith.constant 0 : index
    %c0_21 = arith.constant 0 : index
    %61 = vector.load %arg12[%c0_20, %c0_21] : memref<192x16xf32, #tpu.memory_space<vmem>>, vector<192x16xf32>
    %cst_22 = arith.constant dense<0.000000e+00> : vector<2x16xf32>
    %62 = tpu.matmul %60, %61, %cst_22 {dimension_numbers = #tpu.dot_dimension_numbers<[1], [0], [0], [1], [0, 0, 1, 1], [], []>} : vector<2x192xf32>, vector<192x16xf32>, vector<2x16xf32> -> vector<2x16xf32>
    %cst_23 = arith.constant 0.00347222225 : f32
    %63 = vector.broadcast %cst_23 : f32 to vector<2x16xf32>
    %64 = arith.mulf %62, %63 : vector<2x16xf32>
    %65 = vector.extract_strided_slice %64 {offsets = [0, 0], sizes = [1, 16], strides = [1, 1]} : vector<2x16xf32> to vector<1x16xf32>
    %66 = vector.extract_strided_slice %64 {offsets = [1, 0], sizes = [1, 16], strides = [1, 1]} : vector<2x16xf32> to vector<1x16xf32>
    %67 = arith.mulf %65, %65 : vector<1x16xf32>
    %68 = arith.subf %66, %67 : vector<1x16xf32>
    %cst_24 = arith.constant 0.000000e+00 : f32
    %69 = vector.broadcast %cst_24 : f32 to vector<1x16xf32>
    %70 = arith.maximumf %68, %69 : vector<1x16xf32>
    %cst_25 = arith.constant 9.99999974E-6 : f32
    %71 = vector.broadcast %cst_25 : f32 to vector<1x16xf32>
    %72 = arith.addf %70, %71 : vector<1x16xf32>
    %73 = math.rsqrt %72 : vector<1x16xf32>
    %74 = arith.mulf %65, %73 : vector<1x16xf32>
    %75 = tpu.concatenate %73, %74 in 0 : vector<1x16xf32>, vector<1x16xf32> -> vector<2x16xf32>
    %c0_26 = arith.constant 0 : index
    %c0_27 = arith.constant 0 : index
    %76 = vector.load %arg13[%c0_26, %c0_27] : memref<16x192xf32, #tpu.memory_space<vmem>>, vector<16x192xf32>
    %cst_28 = arith.constant dense<0.000000e+00> : vector<2x192xf32>
    %77 = tpu.matmul %75, %76, %cst_28 {dimension_numbers = #tpu.dot_dimension_numbers<[1], [0], [0], [1], [0, 0, 1, 1], [], []>} : vector<2x16xf32>, vector<16x192xf32>, vector<2x192xf32> -> vector<2x192xf32>
    %78 = vector.extract_strided_slice %77 {offsets = [0, 0], sizes = [1, 192], strides = [1, 1]} : vector<2x192xf32> to vector<1x192xf32>
    %79 = vector.broadcast %78 : vector<1x192xf32> to vector<24x192xf32>
    %80 = arith.mulf %54, %79 : vector<24x192xf32>
    %81 = vector.extract_strided_slice %77 {offsets = [1, 0], sizes = [1, 192], strides = [1, 1]} : vector<2x192xf32> to vector<1x192xf32>
    %82 = vector.broadcast %81 : vector<1x192xf32> to vector<24x192xf32>
    %83 = arith.subf %80, %82 : vector<24x192xf32>
    %cst_29 = arith.constant 0.000000e+00 : f32
    %84 = vector.broadcast %cst_29 : f32 to vector<24x192xf32>
    %85 = arith.maximumf %83, %84 : vector<24x192xf32>
    %86 = arith.truncf %85 : vector<24x192xf32> to vector<24x192xbf16>
    %87 = vector.extract_strided_slice %86 {offsets = [0, 0], sizes = [1, 192], strides = [1, 1]} : vector<24x192xbf16> to vector<1x192xbf16>
    %88 = vector.extract_strided_slice %86 {offsets = [1, 0], sizes = [1, 192], strides = [1, 1]} : vector<24x192xbf16> to vector<1x192xbf16>
    %89 = vector.extract_strided_slice %86 {offsets = [2, 0], sizes = [1, 192], strides = [1, 1]} : vector<24x192xbf16> to vector<1x192xbf16>
    %90 = vector.extract_strided_slice %86 {offsets = [3, 0], sizes = [1, 192], strides = [1, 1]} : vector<24x192xbf16> to vector<1x192xbf16>
    %91 = vector.extract_strided_slice %86 {offsets = [4, 0], sizes = [1, 192], strides = [1, 1]} : vector<24x192xbf16> to vector<1x192xbf16>
    %92 = vector.extract_strided_slice %86 {offsets = [5, 0], sizes = [1, 192], strides = [1, 1]} : vector<24x192xbf16> to vector<1x192xbf16>
    %93 = vector.extract_strided_slice %86 {offsets = [6, 0], sizes = [1, 192], strides = [1, 1]} : vector<24x192xbf16> to vector<1x192xbf16>
    %94 = vector.extract_strided_slice %86 {offsets = [7, 0], sizes = [1, 192], strides = [1, 1]} : vector<24x192xbf16> to vector<1x192xbf16>
    %95 = vector.extract_strided_slice %86 {offsets = [8, 0], sizes = [1, 192], strides = [1, 1]} : vector<24x192xbf16> to vector<1x192xbf16>
    %96 = vector.extract_strided_slice %86 {offsets = [9, 0], sizes = [1, 192], strides = [1, 1]} : vector<24x192xbf16> to vector<1x192xbf16>
    %97 = vector.extract_strided_slice %86 {offsets = [10, 0], sizes = [1, 192], strides = [1, 1]} : vector<24x192xbf16> to vector<1x192xbf16>
    %98 = vector.extract_strided_slice %86 {offsets = [11, 0], sizes = [1, 192], strides = [1, 1]} : vector<24x192xbf16> to vector<1x192xbf16>
    %99 = tpu.concatenate %87, %88, %89, %90, %91, %92, %93, %94, %95, %96, %97, %98 in 1 : vector<1x192xbf16>, vector<1x192xbf16>, vector<1x192xbf16>, vector<1x192xbf16>, vector<1x192xbf16>, vector<1x192xbf16>, vector<1x192xbf16>, vector<1x192xbf16>, vector<1x192xbf16>, vector<1x192xbf16>, vector<1x192xbf16>, vector<1x192xbf16> -> vector<1x2304xbf16>
    %100 = vector.extract_strided_slice %86 {offsets = [12, 0], sizes = [1, 192], strides = [1, 1]} : vector<24x192xbf16> to vector<1x192xbf16>
    %101 = vector.extract_strided_slice %86 {offsets = [13, 0], sizes = [1, 192], strides = [1, 1]} : vector<24x192xbf16> to vector<1x192xbf16>
    %102 = vector.extract_strided_slice %86 {offsets = [14, 0], sizes = [1, 192], strides = [1, 1]} : vector<24x192xbf16> to vector<1x192xbf16>
    %103 = vector.extract_strided_slice %86 {offsets = [15, 0], sizes = [1, 192], strides = [1, 1]} : vector<24x192xbf16> to vector<1x192xbf16>
    %104 = vector.extract_strided_slice %86 {offsets = [16, 0], sizes = [1, 192], strides = [1, 1]} : vector<24x192xbf16> to vector<1x192xbf16>
    %105 = vector.extract_strided_slice %86 {offsets = [17, 0], sizes = [1, 192], strides = [1, 1]} : vector<24x192xbf16> to vector<1x192xbf16>
    %106 = vector.extract_strided_slice %86 {offsets = [18, 0], sizes = [1, 192], strides = [1, 1]} : vector<24x192xbf16> to vector<1x192xbf16>
    %107 = vector.extract_strided_slice %86 {offsets = [19, 0], sizes = [1, 192], strides = [1, 1]} : vector<24x192xbf16> to vector<1x192xbf16>
    %108 = vector.extract_strided_slice %86 {offsets = [20, 0], sizes = [1, 192], strides = [1, 1]} : vector<24x192xbf16> to vector<1x192xbf16>
    %109 = vector.extract_strided_slice %86 {offsets = [21, 0], sizes = [1, 192], strides = [1, 1]} : vector<24x192xbf16> to vector<1x192xbf16>
    %110 = vector.extract_strided_slice %86 {offsets = [22, 0], sizes = [1, 192], strides = [1, 1]} : vector<24x192xbf16> to vector<1x192xbf16>
    %111 = vector.extract_strided_slice %86 {offsets = [23, 0], sizes = [1, 192], strides = [1, 1]} : vector<24x192xbf16> to vector<1x192xbf16>
    %112 = tpu.concatenate %100, %101, %102, %103, %104, %105, %106, %107, %108, %109, %110, %111 in 1 : vector<1x192xbf16>, vector<1x192xbf16>, vector<1x192xbf16>, vector<1x192xbf16>, vector<1x192xbf16>, vector<1x192xbf16>, vector<1x192xbf16>, vector<1x192xbf16>, vector<1x192xbf16>, vector<1x192xbf16>, vector<1x192xbf16>, vector<1x192xbf16> -> vector<1x2304xbf16>
    %113 = tpu.concatenate %99, %112 in 0 : vector<1x2304xbf16>, vector<1x2304xbf16> -> vector<2x2304xbf16>
    %c0_30 = arith.constant 0 : index
    %c0_31 = arith.constant 0 : index
    %114 = vector.load %arg4[%c0_30, %c0_31] : memref<2304x32xbf16, #tpu.memory_space<vmem>>, vector<2304x32xbf16>
    %cst_32 = arith.constant dense<0.000000e+00> : vector<2x32xf32>
    %115 = tpu.matmul %113, %114, %cst_32 {dimension_numbers = #tpu.dot_dimension_numbers<[1], [0], [0], [1], [0, 0, 1, 1], [], []>} : vector<2x2304xbf16>, vector<2304x32xbf16>, vector<2x32xf32> -> vector<2x32xf32>
    %c0_33 = arith.constant 0 : index
    %c0_34 = arith.constant 0 : index
    %116 = vector.load %arg5[%c0_33, %c0_34] : memref<1x32xf32, #tpu.memory_space<vmem>>, vector<1x32xf32>
    %117 = vector.broadcast %116 : vector<1x32xf32> to vector<2x32xf32>
    %118 = arith.addf %115, %117 : vector<2x32xf32>
    %cst_35 = arith.constant 0.000000e+00 : f32
    %119 = vector.broadcast %cst_35 : f32 to vector<2x32xf32>
    %120 = arith.maximumf %118, %119 : vector<2x32xf32>
    %121 = arith.truncf %120 : vector<2x32xf32> to vector<2x32xbf16>
    %c0_36 = arith.constant 0 : index
    %c0_37 = arith.constant 0 : index
    %122 = vector.load %arg6[%c0_36, %c0_37] : memref<32x2304xbf16, #tpu.memory_space<vmem>>, vector<32x2304xbf16>
    %cst_38 = arith.constant dense<0.000000e+00> : vector<2x2304xf32>
    %123 = tpu.matmul %121, %122, %cst_38 {dimension_numbers = #tpu.dot_dimension_numbers<[1], [0], [0], [1], [0, 0, 1, 1], [], []>} : vector<2x32xbf16>, vector<32x2304xbf16>, vector<2x2304xf32> -> vector<2x2304xf32>
    %c0_39 = arith.constant 0 : index
    %c0_40 = arith.constant 0 : index
    %124 = vector.load %arg7[%c0_39, %c0_40] : memref<1x2304xf32, #tpu.memory_space<vmem>>, vector<1x2304xf32>
    %125 = vector.broadcast %124 : vector<1x2304xf32> to vector<2x2304xf32>
    %126 = arith.addf %123, %125 : vector<2x2304xf32>
    %cst_41 = arith.constant 0.000000e+00 : f32
    %127 = vector.broadcast %cst_41 : f32 to vector<2x2304xf32>
    %128 = arith.maximumf %126, %127 : vector<2x2304xf32>
    %129 = arith.truncf %128 : vector<2x2304xf32> to vector<2x2304xbf16>
    %cst_42 = arith.constant 0.000000e+00 : bf16
    %130 = vector.broadcast %cst_42 : bf16 to vector<2x192xbf16>
    %131 = vector.extract_strided_slice %129 {offsets = [0, 0], sizes = [1, 192], strides = [1, 1]} : vector<2x2304xbf16> to vector<1x192xbf16>
    %132 = vector.extract_strided_slice %129 {offsets = [0, 192], sizes = [1, 192], strides = [1, 1]} : vector<2x2304xbf16> to vector<1x192xbf16>
    %133 = vector.extract_strided_slice %129 {offsets = [0, 384], sizes = [1, 192], strides = [1, 1]} : vector<2x2304xbf16> to vector<1x192xbf16>
    %134 = vector.extract_strided_slice %129 {offsets = [0, 576], sizes = [1, 192], strides = [1, 1]} : vector<2x2304xbf16> to vector<1x192xbf16>
    %135 = vector.extract_strided_slice %129 {offsets = [0, 768], sizes = [1, 192], strides = [1, 1]} : vector<2x2304xbf16> to vector<1x192xbf16>
    %136 = vector.extract_strided_slice %129 {offsets = [0, 960], sizes = [1, 192], strides = [1, 1]} : vector<2x2304xbf16> to vector<1x192xbf16>
    %137 = vector.extract_strided_slice %129 {offsets = [0, 1152], sizes = [1, 192], strides = [1, 1]} : vector<2x2304xbf16> to vector<1x192xbf16>
    %138 = vector.extract_strided_slice %129 {offsets = [0, 1344], sizes = [1, 192], strides = [1, 1]} : vector<2x2304xbf16> to vector<1x192xbf16>
    %139 = vector.extract_strided_slice %129 {offsets = [0, 1536], sizes = [1, 192], strides = [1, 1]} : vector<2x2304xbf16> to vector<1x192xbf16>
    %140 = vector.extract_strided_slice %129 {offsets = [0, 1728], sizes = [1, 192], strides = [1, 1]} : vector<2x2304xbf16> to vector<1x192xbf16>
    %141 = vector.extract_strided_slice %129 {offsets = [0, 1920], sizes = [1, 192], strides = [1, 1]} : vector<2x2304xbf16> to vector<1x192xbf16>
    %142 = vector.extract_strided_slice %129 {offsets = [0, 2112], sizes = [1, 192], strides = [1, 1]} : vector<2x2304xbf16> to vector<1x192xbf16>
    %143 = tpu.concatenate %130, %131, %132, %133, %134, %135, %136, %137, %138, %139, %140, %141, %142, %130 in 0 : vector<2x192xbf16>, vector<1x192xbf16>, vector<1x192xbf16>, vector<1x192xbf16>, vector<1x192xbf16>, vector<1x192xbf16>, vector<1x192xbf16>, vector<1x192xbf16>, vector<1x192xbf16>, vector<1x192xbf16>, vector<1x192xbf16>, vector<1x192xbf16>, vector<1x192xbf16>, vector<2x192xbf16> -> vector<16x192xbf16>
    %144 = vector.extract_strided_slice %129 {offsets = [1, 0], sizes = [1, 192], strides = [1, 1]} : vector<2x2304xbf16> to vector<1x192xbf16>
    %145 = vector.extract_strided_slice %129 {offsets = [1, 192], sizes = [1, 192], strides = [1, 1]} : vector<2x2304xbf16> to vector<1x192xbf16>
    %146 = vector.extract_strided_slice %129 {offsets = [1, 384], sizes = [1, 192], strides = [1, 1]} : vector<2x2304xbf16> to vector<1x192xbf16>
    %147 = vector.extract_strided_slice %129 {offsets = [1, 576], sizes = [1, 192], strides = [1, 1]} : vector<2x2304xbf16> to vector<1x192xbf16>
    %148 = vector.extract_strided_slice %129 {offsets = [1, 768], sizes = [1, 192], strides = [1, 1]} : vector<2x2304xbf16> to vector<1x192xbf16>
    %149 = vector.extract_strided_slice %129 {offsets = [1, 960], sizes = [1, 192], strides = [1, 1]} : vector<2x2304xbf16> to vector<1x192xbf16>
    %150 = vector.extract_strided_slice %129 {offsets = [1, 1152], sizes = [1, 192], strides = [1, 1]} : vector<2x2304xbf16> to vector<1x192xbf16>
    %151 = vector.extract_strided_slice %129 {offsets = [1, 1344], sizes = [1, 192], strides = [1, 1]} : vector<2x2304xbf16> to vector<1x192xbf16>
    %152 = vector.extract_strided_slice %129 {offsets = [1, 1536], sizes = [1, 192], strides = [1, 1]} : vector<2x2304xbf16> to vector<1x192xbf16>
    %153 = vector.extract_strided_slice %129 {offsets = [1, 1728], sizes = [1, 192], strides = [1, 1]} : vector<2x2304xbf16> to vector<1x192xbf16>
    %154 = vector.extract_strided_slice %129 {offsets = [1, 1920], sizes = [1, 192], strides = [1, 1]} : vector<2x2304xbf16> to vector<1x192xbf16>
    %155 = vector.extract_strided_slice %129 {offsets = [1, 2112], sizes = [1, 192], strides = [1, 1]} : vector<2x2304xbf16> to vector<1x192xbf16>
    %156 = tpu.concatenate %130, %144, %145, %146, %147, %148, %149, %150, %151, %152, %153, %154, %155, %130 in 0 : vector<2x192xbf16>, vector<1x192xbf16>, vector<1x192xbf16>, vector<1x192xbf16>, vector<1x192xbf16>, vector<1x192xbf16>, vector<1x192xbf16>, vector<1x192xbf16>, vector<1x192xbf16>, vector<1x192xbf16>, vector<1x192xbf16>, vector<1x192xbf16>, vector<1x192xbf16>, vector<2x192xbf16> -> vector<16x192xbf16>
    %157 = tpu.concatenate %143, %156 in 0 : vector<16x192xbf16>, vector<16x192xbf16> -> vector<32x192xbf16>
    %158 = vector.extract_strided_slice %157 {offsets = [0, 0], sizes = [14, 192], strides = [1, 1]} : vector<32x192xbf16> to vector<14x192xbf16>
    %159 = vector.extract_strided_slice %157 {offsets = [1, 0], sizes = [14, 192], strides = [1, 1]} : vector<32x192xbf16> to vector<14x192xbf16>
    %160 = vector.extract_strided_slice %157 {offsets = [2, 0], sizes = [14, 192], strides = [1, 1]} : vector<32x192xbf16> to vector<14x192xbf16>
    %161 = tpu.concatenate %158, %159, %160 in 1 : vector<14x192xbf16>, vector<14x192xbf16>, vector<14x192xbf16> -> vector<14x576xbf16>
    %162 = vector.extract_strided_slice %157 {offsets = [16, 0], sizes = [14, 192], strides = [1, 1]} : vector<32x192xbf16> to vector<14x192xbf16>
    %163 = vector.extract_strided_slice %157 {offsets = [17, 0], sizes = [14, 192], strides = [1, 1]} : vector<32x192xbf16> to vector<14x192xbf16>
    %164 = vector.extract_strided_slice %157 {offsets = [18, 0], sizes = [14, 192], strides = [1, 1]} : vector<32x192xbf16> to vector<14x192xbf16>
    %165 = tpu.concatenate %162, %163, %164 in 1 : vector<14x192xbf16>, vector<14x192xbf16>, vector<14x192xbf16> -> vector<14x576xbf16>
    %166 = tpu.concatenate %161, %165 in 0 : vector<14x576xbf16>, vector<14x576xbf16> -> vector<28x576xbf16>
    %c0_43 = arith.constant 0 : index
    %c0_44 = arith.constant 0 : index
    %167 = vector.load %arg8[%c0_43, %c0_44] : memref<576x112xbf16, #tpu.memory_space<vmem>>, vector<576x112xbf16>
    %cst_45 = arith.constant dense<0.000000e+00> : vector<28x112xf32>
    %168 = tpu.matmul %166, %167, %cst_45 {dimension_numbers = #tpu.dot_dimension_numbers<[1], [0], [0], [1], [0, 0, 1, 1], [], []>} : vector<28x576xbf16>, vector<576x112xbf16>, vector<28x112xf32> -> vector<28x112xf32>
    %cst_46 = arith.constant dense<0.000000e+00> : vector<112xf32>
    %169 = vector.multi_reduction <add>, %168, %cst_46 [0] : vector<28x112xf32> to vector<112xf32>
    %170 = vector.shape_cast %169 : vector<112xf32> to vector<1x112xf32>
    %171 = arith.mulf %168, %168 : vector<28x112xf32>
    %cst_47 = arith.constant dense<0.000000e+00> : vector<112xf32>
    %172 = vector.multi_reduction <add>, %171, %cst_47 [0] : vector<28x112xf32> to vector<112xf32>
    %173 = vector.shape_cast %172 : vector<112xf32> to vector<1x112xf32>
    %174 = tpu.concatenate %170, %173 in 0 : vector<1x112xf32>, vector<1x112xf32> -> vector<2x112xf32>
    %c0_48 = arith.constant 0 : index
    %c0_49 = arith.constant 0 : index
    %175 = vector.load %arg10[%c0_48, %c0_49] : memref<112x8xf32, #tpu.memory_space<vmem>>, vector<112x8xf32>
    %cst_50 = arith.constant dense<0.000000e+00> : vector<2x8xf32>
    %176 = tpu.matmul %174, %175, %cst_50 {dimension_numbers = #tpu.dot_dimension_numbers<[1], [0], [0], [1], [0, 0, 1, 1], [], []>} : vector<2x112xf32>, vector<112x8xf32>, vector<2x8xf32> -> vector<2x8xf32>
    %cst_51 = arith.constant 0.00255102036 : f32
    %177 = vector.broadcast %cst_51 : f32 to vector<2x8xf32>
    %178 = arith.mulf %176, %177 : vector<2x8xf32>
    %179 = vector.extract_strided_slice %178 {offsets = [0, 0], sizes = [1, 8], strides = [1, 1]} : vector<2x8xf32> to vector<1x8xf32>
    %180 = vector.extract_strided_slice %178 {offsets = [1, 0], sizes = [1, 8], strides = [1, 1]} : vector<2x8xf32> to vector<1x8xf32>
    %181 = arith.mulf %179, %179 : vector<1x8xf32>
    %182 = arith.subf %180, %181 : vector<1x8xf32>
    %cst_52 = arith.constant 0.000000e+00 : f32
    %183 = vector.broadcast %cst_52 : f32 to vector<1x8xf32>
    %184 = arith.maximumf %182, %183 : vector<1x8xf32>
    %cst_53 = arith.constant 9.99999974E-6 : f32
    %185 = vector.broadcast %cst_53 : f32 to vector<1x8xf32>
    %186 = arith.addf %184, %185 : vector<1x8xf32>
    %187 = math.rsqrt %186 : vector<1x8xf32>
    %188 = arith.mulf %179, %187 : vector<1x8xf32>
    %189 = tpu.concatenate %187, %188 in 0 : vector<1x8xf32>, vector<1x8xf32> -> vector<2x8xf32>
    %c0_54 = arith.constant 0 : index
    %c0_55 = arith.constant 0 : index
    %190 = vector.load %arg11[%c0_54, %c0_55] : memref<8x112xf32, #tpu.memory_space<vmem>>, vector<8x112xf32>
    %cst_56 = arith.constant dense<0.000000e+00> : vector<2x112xf32>
    %191 = tpu.matmul %189, %190, %cst_56 {dimension_numbers = #tpu.dot_dimension_numbers<[1], [0], [0], [1], [0, 0, 1, 1], [], []>} : vector<2x8xf32>, vector<8x112xf32>, vector<2x112xf32> -> vector<2x112xf32>
    %192 = vector.extract_strided_slice %191 {offsets = [0, 0], sizes = [1, 112], strides = [1, 1]} : vector<2x112xf32> to vector<1x112xf32>
    %193 = vector.broadcast %192 : vector<1x112xf32> to vector<28x112xf32>
    %194 = arith.mulf %168, %193 : vector<28x112xf32>
    %195 = vector.extract_strided_slice %191 {offsets = [1, 0], sizes = [1, 112], strides = [1, 1]} : vector<2x112xf32> to vector<1x112xf32>
    %196 = vector.broadcast %195 : vector<1x112xf32> to vector<28x112xf32>
    %197 = arith.subf %194, %196 : vector<28x112xf32>
    %cst_57 = arith.constant 0.000000e+00 : f32
    %198 = vector.broadcast %cst_57 : f32 to vector<28x112xf32>
    %199 = arith.maximumf %197, %198 : vector<28x112xf32>
    %200 = arith.truncf %199 : vector<28x112xf32> to vector<28x112xbf16>
    %cst_58 = arith.constant 0.000000e+00 : bf16
    %201 = vector.broadcast %cst_58 : bf16 to vector<2x112xbf16>
    %202 = vector.extract_strided_slice %200 {offsets = [0, 0], sizes = [14, 112], strides = [1, 1]} : vector<28x112xbf16> to vector<14x112xbf16>
    %203 = tpu.concatenate %201, %202, %201 in 0 : vector<2x112xbf16>, vector<14x112xbf16>, vector<2x112xbf16> -> vector<18x112xbf16>
    %204 = vector.extract_strided_slice %200 {offsets = [14, 0], sizes = [14, 112], strides = [1, 1]} : vector<28x112xbf16> to vector<14x112xbf16>
    %205 = tpu.concatenate %201, %204, %201 in 0 : vector<2x112xbf16>, vector<14x112xbf16>, vector<2x112xbf16> -> vector<18x112xbf16>
    %206 = tpu.concatenate %203, %205 in 0 : vector<18x112xbf16>, vector<18x112xbf16> -> vector<36x112xbf16>
    %207 = vector.extract_strided_slice %206 {offsets = [0, 0], sizes = [16, 112], strides = [1, 1]} : vector<36x112xbf16> to vector<16x112xbf16>
    %208 = vector.extract_strided_slice %206 {offsets = [1, 0], sizes = [16, 112], strides = [1, 1]} : vector<36x112xbf16> to vector<16x112xbf16>
    %209 = vector.extract_strided_slice %206 {offsets = [2, 0], sizes = [16, 112], strides = [1, 1]} : vector<36x112xbf16> to vector<16x112xbf16>
    %210 = tpu.concatenate %207, %208, %209 in 1 : vector<16x112xbf16>, vector<16x112xbf16>, vector<16x112xbf16> -> vector<16x336xbf16>
    %211 = vector.extract_strided_slice %206 {offsets = [18, 0], sizes = [16, 112], strides = [1, 1]} : vector<36x112xbf16> to vector<16x112xbf16>
    %212 = vector.extract_strided_slice %206 {offsets = [19, 0], sizes = [16, 112], strides = [1, 1]} : vector<36x112xbf16> to vector<16x112xbf16>
    %213 = vector.extract_strided_slice %206 {offsets = [20, 0], sizes = [16, 112], strides = [1, 1]} : vector<36x112xbf16> to vector<16x112xbf16>
    %214 = tpu.concatenate %211, %212, %213 in 1 : vector<16x112xbf16>, vector<16x112xbf16>, vector<16x112xbf16> -> vector<16x336xbf16>
    %215 = tpu.concatenate %210, %214 in 0 : vector<16x336xbf16>, vector<16x336xbf16> -> vector<32x336xbf16>
    %c0_59 = arith.constant 0 : index
    %c0_60 = arith.constant 0 : index
    %216 = vector.load %arg9[%c0_59, %c0_60] : memref<336x64xbf16, #tpu.memory_space<vmem>>, vector<336x64xbf16>
    %cst_61 = arith.constant dense<0.000000e+00> : vector<32x64xf32>
    %217 = tpu.matmul %215, %216, %cst_61 {dimension_numbers = #tpu.dot_dimension_numbers<[1], [0], [0], [1], [0, 0, 1, 1], [], []>} : vector<32x336xbf16>, vector<336x64xbf16>, vector<32x64xf32> -> vector<32x64xf32>
    %cst_62 = arith.constant dense<0.000000e+00> : vector<64xf32>
    %218 = vector.multi_reduction <add>, %217, %cst_62 [0] : vector<32x64xf32> to vector<64xf32>
    %219 = vector.shape_cast %218 : vector<64xf32> to vector<1x64xf32>
    %220 = arith.mulf %217, %217 : vector<32x64xf32>
    %cst_63 = arith.constant dense<0.000000e+00> : vector<64xf32>
    %221 = vector.multi_reduction <add>, %220, %cst_63 [0] : vector<32x64xf32> to vector<64xf32>
    %222 = vector.shape_cast %221 : vector<64xf32> to vector<1x64xf32>
    %223 = tpu.concatenate %219, %222 in 0 : vector<1x64xf32>, vector<1x64xf32> -> vector<2x64xf32>
    %c0_64 = arith.constant 0 : index
    %c0_65 = arith.constant 0 : index
    %224 = vector.load %arg14[%c0_64, %c0_65] : memref<64x4xf32, #tpu.memory_space<vmem>>, vector<64x4xf32>
    %cst_66 = arith.constant dense<0.000000e+00> : vector<2x4xf32>
    %225 = tpu.matmul %223, %224, %cst_66 {dimension_numbers = #tpu.dot_dimension_numbers<[1], [0], [0], [1], [0, 0, 1, 1], [], []>} : vector<2x64xf32>, vector<64x4xf32>, vector<2x4xf32> -> vector<2x4xf32>
    %cst_67 = arith.constant 0.001953125 : f32
    %226 = vector.broadcast %cst_67 : f32 to vector<2x4xf32>
    %227 = arith.mulf %225, %226 : vector<2x4xf32>
    %228 = vector.extract_strided_slice %227 {offsets = [0, 0], sizes = [1, 4], strides = [1, 1]} : vector<2x4xf32> to vector<1x4xf32>
    %229 = vector.extract_strided_slice %227 {offsets = [1, 0], sizes = [1, 4], strides = [1, 1]} : vector<2x4xf32> to vector<1x4xf32>
    %230 = arith.mulf %228, %228 : vector<1x4xf32>
    %231 = arith.subf %229, %230 : vector<1x4xf32>
    %cst_68 = arith.constant 0.000000e+00 : f32
    %232 = vector.broadcast %cst_68 : f32 to vector<1x4xf32>
    %233 = arith.maximumf %231, %232 : vector<1x4xf32>
    %cst_69 = arith.constant 9.99999974E-6 : f32
    %234 = vector.broadcast %cst_69 : f32 to vector<1x4xf32>
    %235 = arith.addf %233, %234 : vector<1x4xf32>
    %236 = math.rsqrt %235 : vector<1x4xf32>
    %237 = arith.mulf %228, %236 : vector<1x4xf32>
    %238 = tpu.concatenate %236, %237 in 0 : vector<1x4xf32>, vector<1x4xf32> -> vector<2x4xf32>
    %c0_70 = arith.constant 0 : index
    %c0_71 = arith.constant 0 : index
    %239 = vector.load %arg15[%c0_70, %c0_71] : memref<4x64xf32, #tpu.memory_space<vmem>>, vector<4x64xf32>
    %cst_72 = arith.constant dense<0.000000e+00> : vector<2x64xf32>
    %240 = tpu.matmul %238, %239, %cst_72 {dimension_numbers = #tpu.dot_dimension_numbers<[1], [0], [0], [1], [0, 0, 1, 1], [], []>} : vector<2x4xf32>, vector<4x64xf32>, vector<2x64xf32> -> vector<2x64xf32>
    %241 = vector.extract_strided_slice %240 {offsets = [0, 0], sizes = [1, 64], strides = [1, 1]} : vector<2x64xf32> to vector<1x64xf32>
    %242 = vector.broadcast %241 : vector<1x64xf32> to vector<32x64xf32>
    %243 = arith.mulf %217, %242 : vector<32x64xf32>
    %244 = vector.extract_strided_slice %240 {offsets = [1, 0], sizes = [1, 64], strides = [1, 1]} : vector<2x64xf32> to vector<1x64xf32>
    %245 = vector.broadcast %244 : vector<1x64xf32> to vector<32x64xf32>
    %246 = arith.subf %243, %245 : vector<32x64xf32>
    %247 = vector.extract_strided_slice %246 {offsets = [0, 0], sizes = [1, 64], strides = [1, 1]} : vector<32x64xf32> to vector<1x64xf32>
    %248 = vector.extract_strided_slice %246 {offsets = [1, 0], sizes = [1, 64], strides = [1, 1]} : vector<32x64xf32> to vector<1x64xf32>
    %249 = vector.extract_strided_slice %246 {offsets = [2, 0], sizes = [1, 64], strides = [1, 1]} : vector<32x64xf32> to vector<1x64xf32>
    %250 = vector.extract_strided_slice %246 {offsets = [3, 0], sizes = [1, 64], strides = [1, 1]} : vector<32x64xf32> to vector<1x64xf32>
    %251 = vector.extract_strided_slice %246 {offsets = [4, 0], sizes = [1, 64], strides = [1, 1]} : vector<32x64xf32> to vector<1x64xf32>
    %252 = vector.extract_strided_slice %246 {offsets = [5, 0], sizes = [1, 64], strides = [1, 1]} : vector<32x64xf32> to vector<1x64xf32>
    %253 = vector.extract_strided_slice %246 {offsets = [6, 0], sizes = [1, 64], strides = [1, 1]} : vector<32x64xf32> to vector<1x64xf32>
    %254 = vector.extract_strided_slice %246 {offsets = [7, 0], sizes = [1, 64], strides = [1, 1]} : vector<32x64xf32> to vector<1x64xf32>
    %255 = vector.extract_strided_slice %246 {offsets = [8, 0], sizes = [1, 64], strides = [1, 1]} : vector<32x64xf32> to vector<1x64xf32>
    %256 = vector.extract_strided_slice %246 {offsets = [9, 0], sizes = [1, 64], strides = [1, 1]} : vector<32x64xf32> to vector<1x64xf32>
    %257 = vector.extract_strided_slice %246 {offsets = [10, 0], sizes = [1, 64], strides = [1, 1]} : vector<32x64xf32> to vector<1x64xf32>
    %258 = vector.extract_strided_slice %246 {offsets = [11, 0], sizes = [1, 64], strides = [1, 1]} : vector<32x64xf32> to vector<1x64xf32>
    %259 = vector.extract_strided_slice %246 {offsets = [12, 0], sizes = [1, 64], strides = [1, 1]} : vector<32x64xf32> to vector<1x64xf32>
    %260 = vector.extract_strided_slice %246 {offsets = [13, 0], sizes = [1, 64], strides = [1, 1]} : vector<32x64xf32> to vector<1x64xf32>
    %261 = vector.extract_strided_slice %246 {offsets = [14, 0], sizes = [1, 64], strides = [1, 1]} : vector<32x64xf32> to vector<1x64xf32>
    %262 = vector.extract_strided_slice %246 {offsets = [15, 0], sizes = [1, 64], strides = [1, 1]} : vector<32x64xf32> to vector<1x64xf32>
    %263 = tpu.concatenate %247, %248, %249, %250, %251, %252, %253, %254, %255, %256, %257, %258, %259, %260, %261, %262 in 1 : vector<1x64xf32>, vector<1x64xf32>, vector<1x64xf32>, vector<1x64xf32>, vector<1x64xf32>, vector<1x64xf32>, vector<1x64xf32>, vector<1x64xf32>, vector<1x64xf32>, vector<1x64xf32>, vector<1x64xf32>, vector<1x64xf32>, vector<1x64xf32>, vector<1x64xf32>, vector<1x64xf32>, vector<1x64xf32> -> vector<1x1024xf32>
    %264 = vector.extract_strided_slice %246 {offsets = [16, 0], sizes = [1, 64], strides = [1, 1]} : vector<32x64xf32> to vector<1x64xf32>
    %265 = vector.extract_strided_slice %246 {offsets = [17, 0], sizes = [1, 64], strides = [1, 1]} : vector<32x64xf32> to vector<1x64xf32>
    %266 = vector.extract_strided_slice %246 {offsets = [18, 0], sizes = [1, 64], strides = [1, 1]} : vector<32x64xf32> to vector<1x64xf32>
    %267 = vector.extract_strided_slice %246 {offsets = [19, 0], sizes = [1, 64], strides = [1, 1]} : vector<32x64xf32> to vector<1x64xf32>
    %268 = vector.extract_strided_slice %246 {offsets = [20, 0], sizes = [1, 64], strides = [1, 1]} : vector<32x64xf32> to vector<1x64xf32>
    %269 = vector.extract_strided_slice %246 {offsets = [21, 0], sizes = [1, 64], strides = [1, 1]} : vector<32x64xf32> to vector<1x64xf32>
    %270 = vector.extract_strided_slice %246 {offsets = [22, 0], sizes = [1, 64], strides = [1, 1]} : vector<32x64xf32> to vector<1x64xf32>
    %271 = vector.extract_strided_slice %246 {offsets = [23, 0], sizes = [1, 64], strides = [1, 1]} : vector<32x64xf32> to vector<1x64xf32>
    %272 = vector.extract_strided_slice %246 {offsets = [24, 0], sizes = [1, 64], strides = [1, 1]} : vector<32x64xf32> to vector<1x64xf32>
    %273 = vector.extract_strided_slice %246 {offsets = [25, 0], sizes = [1, 64], strides = [1, 1]} : vector<32x64xf32> to vector<1x64xf32>
    %274 = vector.extract_strided_slice %246 {offsets = [26, 0], sizes = [1, 64], strides = [1, 1]} : vector<32x64xf32> to vector<1x64xf32>
    %275 = vector.extract_strided_slice %246 {offsets = [27, 0], sizes = [1, 64], strides = [1, 1]} : vector<32x64xf32> to vector<1x64xf32>
    %276 = vector.extract_strided_slice %246 {offsets = [28, 0], sizes = [1, 64], strides = [1, 1]} : vector<32x64xf32> to vector<1x64xf32>
    %277 = vector.extract_strided_slice %246 {offsets = [29, 0], sizes = [1, 64], strides = [1, 1]} : vector<32x64xf32> to vector<1x64xf32>
    %278 = vector.extract_strided_slice %246 {offsets = [30, 0], sizes = [1, 64], strides = [1, 1]} : vector<32x64xf32> to vector<1x64xf32>
    %279 = vector.extract_strided_slice %246 {offsets = [31, 0], sizes = [1, 64], strides = [1, 1]} : vector<32x64xf32> to vector<1x64xf32>
    %280 = tpu.concatenate %264, %265, %266, %267, %268, %269, %270, %271, %272, %273, %274, %275, %276, %277, %278, %279 in 1 : vector<1x64xf32>, vector<1x64xf32>, vector<1x64xf32>, vector<1x64xf32>, vector<1x64xf32>, vector<1x64xf32>, vector<1x64xf32>, vector<1x64xf32>, vector<1x64xf32>, vector<1x64xf32>, vector<1x64xf32>, vector<1x64xf32>, vector<1x64xf32>, vector<1x64xf32>, vector<1x64xf32>, vector<1x64xf32> -> vector<1x1024xf32>
    %281 = tpu.concatenate %263, %280 in 0 : vector<1x1024xf32>, vector<1x1024xf32> -> vector<2x1024xf32>
    %c0_73 = arith.constant 0 : index
    %c0_74 = arith.constant 0 : index
    %282 = vector.load %arg16[%c0_73, %c0_74] : memref<2x1024xf32, #tpu.memory_space<vmem>>, vector<2x1024xf32>
    tpu.vector_store %arg16[%c0_73, %c0_74], %281 {strides = array<i32>} : memref<2x1024xf32, #tpu.memory_space<vmem>>, vector<2x1024xf32>,
    return
  }
  func.func @transform_0(%arg0: i32) -> (i32, i32) {
    %c0_i32 = arith.constant 0 : i32
    %c0_i32_0 = arith.constant 0 : i32
    %c0_i32_1 = arith.constant 0 : i32
    return %c0_i32, %c0_i32_0 : i32, i32
  }
  func.func @transform_1(%arg0: i32) -> (i32, i32) {
    %c0_i32 = arith.constant 0 : i32
    %c0_i32_0 = arith.constant 0 : i32
    %c0_i32_1 = arith.constant 0 : i32
    return %c0_i32, %c0_i32_0 : i32, i32
  }
  func.func @transform_2(%arg0: i32) -> (i32, i32) {
    %c0_i32 = arith.constant 0 : i32
    %c0_i32_0 = arith.constant 0 : i32
    %c0_i32_1 = arith.constant 0 : i32
    return %c0_i32, %c0_i32_0 : i32, i32
  }
  func.func @transform_3(%arg0: i32) -> (i32, i32) {
    %c0_i32 = arith.constant 0 : i32
    %c0_i32_0 = arith.constant 0 : i32
    %c0_i32_1 = arith.constant 0 : i32
    return %c0_i32, %c0_i32_0 : i32, i32
  }
  func.func @transform_4(%arg0: i32) -> (i32, i32) {
    %c0_i32 = arith.constant 0 : i32
    %c0_i32_0 = arith.constant 0 : i32
    %c0_i32_1 = arith.constant 0 : i32
    return %c0_i32, %c0_i32_0 : i32, i32
  }
  func.func @transform_5(%arg0: i32) -> (i32, i32) {
    %c0_i32 = arith.constant 0 : i32
    %c0_i32_0 = arith.constant 0 : i32
    %c0_i32_1 = arith.constant 0 : i32
    return %c0_i32, %c0_i32_0 : i32, i32
  }
  func.func @transform_6(%arg0: i32) -> (i32, i32) {
    %c0_i32 = arith.constant 0 : i32
    %c0_i32_0 = arith.constant 0 : i32
    %c0_i32_1 = arith.constant 0 : i32
    return %c0_i32, %c0_i32_0 : i32, i32
  }
  func.func @transform_7(%arg0: i32) -> (i32, i32) {
    %c0_i32 = arith.constant 0 : i32
    %c0_i32_0 = arith.constant 0 : i32
    %c0_i32_1 = arith.constant 0 : i32
    return %c0_i32, %c0_i32_0 : i32, i32
  }
  func.func @transform_8(%arg0: i32) -> (i32, i32) {
    %c0_i32 = arith.constant 0 : i32
    %c0_i32_0 = arith.constant 0 : i32
    %c0_i32_1 = arith.constant 0 : i32
    return %c0_i32, %c0_i32_0 : i32, i32
  }
  func.func @transform_9(%arg0: i32) -> (i32, i32) {
    %c0_i32 = arith.constant 0 : i32
    %c0_i32_0 = arith.constant 0 : i32
    %c0_i32_1 = arith.constant 0 : i32
    return %c0_i32, %c0_i32_0 : i32, i32
  }
  func.func @transform_10(%arg0: i32) -> (i32, i32) {
    %c0_i32 = arith.constant 0 : i32
    %c0_i32_0 = arith.constant 0 : i32
    %c0_i32_1 = arith.constant 0 : i32
    return %c0_i32, %c0_i32_0 : i32, i32
  }
  func.func @transform_11(%arg0: i32) -> (i32, i32) {
    %c0_i32 = arith.constant 0 : i32
    %c0_i32_0 = arith.constant 0 : i32
    %c0_i32_1 = arith.constant 0 : i32
    return %c0_i32, %c0_i32_0 : i32, i32
  }
  func.func @transform_12(%arg0: i32) -> (i32, i32) {
    %c0_i32 = arith.constant 0 : i32
    %c0_i32_0 = arith.constant 0 : i32
    %c0_i32_1 = arith.constant 0 : i32
    return %c0_i32, %c0_i32_0 : i32, i32
  }
  func.func @transform_13(%arg0: i32) -> (i32, i32) {
    %c0_i32 = arith.constant 0 : i32
    %c0_i32_0 = arith.constant 0 : i32
    %c0_i32_1 = arith.constant 0 : i32
    return %c0_i32, %c0_i32_0 : i32, i32
  }
  func.func @transform_14(%arg0: i32) -> (i32, i32) {
    %c0_i32 = arith.constant 0 : i32
    %c0_i32_0 = arith.constant 0 : i32
    %c0_i32_1 = arith.constant 0 : i32
    return %c0_i32, %c0_i32_0 : i32, i32
  }
  func.func @transform_15(%arg0: i32) -> (i32, i32) {
    %c0_i32 = arith.constant 0 : i32
    %c0_i32_0 = arith.constant 0 : i32
    %c0_i32_1 = arith.constant 0 : i32
    return %c0_i32, %c0_i32_0 : i32, i32
  }
}

</mosaic_0001>

<bundles_post_ra>
// kernel: dae_forward.1
= control target key start
LH: loop header
LB: loop body
LE: loop exit
PB: predicated region body
PF: predicated region fallthrough
CT: control target
= control target key end

     0   :  { %v6710_v1 = vmov 0   ;;  %s6711_s26 = smov 64   ;;  %vm94_vm0 = vcmask 1046528   ;;  %vm70_vm1 = vcmask 523264   ;;  %v6712_v33 = vmov 0.0   ;;  %s6714_s17 = smov 96   ;;  %s8781_s0 = inlined_call_operand.vmem [shape: bf16[32,64], index: 0, kind: input, shape index: {}]   ;;  %s8782_s1 = inlined_call_operand.vmem [shape: bf16[192,112], index: 1, kind: input, shape index: {}]   ;;  %s8783_s9 = inlined_call_operand.vmem [shape: f32[112,8], index: 9, kind: input, shape index: {}]   ;;  %s8784_s10 = inlined_call_operand.vmem [shape: f32[8,112], index: 10, kind: input, shape index: {}]   ;;  %s8785_s2 = inlined_call_operand.vmem [shape: bf16[336,192], index: 2, kind: input, shape index: {}]   ;;  %s8786_s11 = inlined_call_operand.vmem [shape: f32[192,16], index: 11, kind: input, shape index: {}]   ;;  %s8787_s12 = inlined_call_operand.vmem [shape: f32[16,192], index: 12, kind: input, shape index: {}]   ;;  %s8788_s3 = inlined_call_operand.vmem [shape: bf16[2304,32], index: 3, kind: input, shape index: {}]   ;;  %s8789_s4 = inlined_call_operand.vmem [shape: f32[1,32], index: 4, kind: input, shape index: {}]   ;;  %s8790_s5 = inlined_call_operand.vmem [shape: bf16[32,2304], index: 5, kind: input, shape index: {}]   ;;  %s8791_s6 = inlined_call_operand.vmem [shape: f32[1,2304], index: 6, kind: input, shape index: {}]   ;;  %s8792_s7 = inlined_call_operand.vmem [shape: bf16[576,112], index: 7, kind: input, shape index: {}]   ;;  %s8793_s8 = inlined_call_operand.vmem [shape: bf16[336,64], index: 8, kind: input, shape index: {}]   ;;  %s8794_s13 = inlined_call_operand.vmem [shape: f32[64,4], index: 13, kind: input, shape index: {}]   ;;  %s8795_s14 = inlined_call_operand.vmem [shape: f32[4,64], index: 14, kind: input, shape index: {}]   ;;  %s8796_s15 = inlined_call_operand.vmem [shape: f32[2,1024], index: 15, kind: output, shape index: {}]  }
   0x1   :  { %v6355_v0 = vld [vmem:[%s8781_s0 + $0x8] sm:$0xff]   ;;  %201 = vmatprep.subr.bf16.mxu0 %v6710_v1  ;;  %v6356_v2 = vld [vmem:[%s8781_s0] sm:$0xff]   ;;  %v6357_v6 = vld [vmem:[%s8782_s1 + $0x38] sm:$0xff]   ;;  %6196 = vmatprep.subr.mxu1 %v6712_v33  ;;  %vm6713_vm2 = vmmov 0   ;;  %vm250_vm3 = vcmask 916480   ;;  %vm256_vm4 = vcmask 912384  }
   0x2   :  { %v79_v3 = vshrl.u32 %v6355_v0, 16  ;;  %v81_v4 = vshll.u32 %v6355_v0, 16  ;;  %v63_v5 = vshll.u32 %v6356_v2, 16  ;;  %v61_v8 = vshrl.u32 %v6356_v2, 16  ;;  %202 = vmatpush1.bf16.msra.mxu0 %v6357_v6  ;;  %v6358_v10 = vld [vmem:[%s8782_s1 + $0x30] sm:$0xff]   ;;  %v6359_v15 = vld [vmem:[%s8782_s1 + $0x28] sm:$0xff]   ;;  %6224 = vmatprep.mubr.msk.f32.mxu1 %vm6713_vm2, %v6712_v33 }
   0x3   :  { %203 = vmatprep.subr.bf16.mxu0 %v6710_v1  ;;  %v69_v13 = vrot.slane %v6356_v2, 1  ;;  %v87_v14 = vrot.slane %v6355_v0, 1  ;;  %v6360_v18 = vld [vmem:[%s8782_s1 + $0x20] sm:$0xff]   ;;  %v6361_v19 = vld [vmem:[%s8782_s1 + $0x18] sm:$0xff]   ;;  %v6362_v20 = vld [vmem:[%s8782_s1 + $0x10] sm:$0xff]   ;;  %vm282_vm5 = vcmask 1040384  }
   0x4   :  { %v83_v7 = vrot.slane %v81_v4, 1  ;;  %v65_v9 = vrot.slane %v63_v5, 1  ;;  %v6363_v21 = vld [vmem:[%s8782_s1 + $0x8] sm:$0xff]   ;;  %v6364_v22 = vld [vmem:[%s8782_s1] sm:$0xff]   ;;  %v6365_v23 = vld [vmem:[%s8782_s1 + $0x58] sm:$0xff]   ;;  %vm8800_vm6 = vcmask 64512  }
   0x5   :  { %v92_v16 = vrot.slane %v87_v14, 1  ;;  %v6366_v24 = vld [vmem:[%s8782_s1 + $0x50] sm:$0xff]   ;;  %v6367_v25 = vld [vmem:[%s8782_s1 + $0x48] sm:$0xff]   ;;  %v6368_v26 = vld [vmem:[%s8782_s1 + $0x40] sm:$0xff]   ;;  %vm8799_vm7 = vsmask.f32 7424 }
   0x6   :  { %v84_v11 = vor.u32 %v83_v7, %v79_v3  ;;  %v66_v12 = vor.u32 %v65_v9, %v61_v8  ;;  %204 = vmatpush1.bf16.msra.mxu0 %v6358_v10  ;;  %v297_v34 = vld [vmem:[%s8783_s9 + $0x68] sm:$0xff]  ;;  %v296_v35 = vld [vmem:[%s8783_s9 + $0x60] sm:$0xff]  ;;  %v295_v36 = vld [vmem:[%s8783_s9 + $0x58] sm:$0xff]  ;;  %s6715_s18 = smov 112   ;;  %vm542_vm8 = vcmask 1045504   ;;  %vm8797_vm9 = vcmask 785408  }
   0x7   :  { %205 = vmatprep.subr.bf16.mxu0 %v6710_v1  ;;  %v100_v17 = vsel %vm94_vm0, %v69_v13, %v92_v16  ;;  %6197 = vmatpush3.msra.mxu1 %v297_v34  ;;  %v294_v37 = vld [vmem:[%s8783_s9 + $0x50] sm:$0xff]  ;;  %v293_v38 = vld [vmem:[%s8783_s9 + $0x48] sm:$0xff]  ;;  %v292_v39 = vld [vmem:[%s8783_s9 + $0x40] sm:$0xff]  ;;  %vm8798_vm10 = vcmask 654336   ;;  %vm1075_vm11 = vcmask 130048   ;;  %vm3274_vm14 = vcmask 261120  }
   0x8   :  { %85 = vrot.lane.b32.xlu0 %v84_v11, %s6711_s26  ;;  %5550 = vmatprep.mubr.msk.bf16.mxu0 %vm70_vm1, %v100_v17  ;;  %v291_v40 = vld [vmem:[%s8783_s9 + $0x38] sm:$0xff]  ;;  %v290_v41 = vld [vmem:[%s8783_s9 + $0x30] sm:$0xff]  ;;  %v289_v42 = vld [vmem:[%s8783_s9 + $0x28] sm:$0xff]  ;;  %vm1421_vm12 = vsmask.f32 256  ;;  %vm3804_vm15 = vcmask 1041408  }
   0x9   :  { %6198 = vmatprep.subr.mxu1 %v6712_v33  ;;  %v288_v43 = vld [vmem:[%s8783_s9 + $0x20] sm:$0xff]  ;;  %v287_v44 = vld [vmem:[%s8783_s9 + $0x18] sm:$0xff]  ;;  %v286_v45 = vld [vmem:[%s8783_s9 + $0x10] sm:$0xff] }
   0xa   :  { %206 = vmatpush1.bf16.msra.mxu0 %v6359_v15  ;;  %6199 = vmatpush3.msra.mxu1 %v296_v35  ;;  %v285_v46 = vld [vmem:[%s8783_s9 + $0x8] sm:$0xff]  ;;  %v284_v47 = vld [vmem:[%s8783_s9] sm:$0xff]  ;;  %vm7396_vm13 = vmand %vm282_vm5, %vm1421_vm12 }
   0xb   :  { %207 = vmatprep.subr.bf16.mxu0 %v6710_v1  ;;  %6200 = vmatprep.subr.mxu1 %v6712_v33 }
   0xc   :  { %67 = vrot.lane.b32.xlu0 %v66_v12, %s6711_s26  ;;  %6201 = vmatpush3.msra.mxu1 %v295_v36 }
   0xd   :  { %6202 = vmatprep.subr.mxu1 %v6712_v33 }
   0xe   :  { %208 = vmatpush1.bf16.msra.mxu0 %v6360_v18  ;;  %6203 = vmatpush3.msra.mxu1 %v294_v37 }
   0xf   :  { %209 = vmatprep.subr.bf16.mxu0 %v6710_v1  ;;  %6204 = vmatprep.subr.mxu1 %v6712_v33 }
  0x10   :  { %6205 = vmatpush3.msra.mxu1 %v293_v38 }
  0x11   :  { %6206 = vmatprep.subr.mxu1 %v6712_v33 }
  0x12   :  { %210 = vmatpush1.bf16.msra.mxu0 %v6361_v19  ;;  %6207 = vmatpush3.msra.mxu1 %v292_v39  ;;  %v6369_v39 = vld [vmem:[%s8785_s2 + $0x70] ss:$8 sps:$4 sm:$0xff]  }
  0x13   :  { %211 = vmatprep.subr.bf16.mxu0 %v6710_v1  ;;  %6208 = vmatprep.subr.mxu1 %v6712_v33 }
  0x14   :  { %6209 = vmatpush3.msra.mxu1 %v291_v40  ;;  %v6371_v40 = vld [vmem:[%s8785_s2 + $0x74] ss:$8 sps:$4 sm:$0xff]  }
  0x15   :  { %6210 = vmatprep.subr.mxu1 %v6712_v33 }
  0x16   :  { %212 = vmatpush1.bf16.msra.mxu0 %v6362_v20  ;;  %6211 = vmatpush3.msra.mxu1 %v290_v41  ;;  %v6374_v41 = vld [vmem:[%s8785_s2 + $0x64] ss:$8 sps:$4 sm:$0xff]  }
  0x17   :  { %213 = vmatprep.subr.bf16.mxu0 %v6710_v1  ;;  %6212 = vmatprep.subr.mxu1 %v6712_v33 }
  0x18   :  { %6213 = vmatpush3.msra.mxu1 %v289_v42  ;;  %v6372_v42 = vld [vmem:[%s8785_s2 + $0x60] ss:$8 sps:$4 sm:$0xff]  }
  0x19   :  { %6214 = vmatprep.subr.mxu1 %v6712_v33 }
  0x1a   :  { %214 = vmatpush1.bf16.msra.mxu0 %v6363_v21  ;;  %6215 = vmatpush3.msra.mxu1 %v288_v43  ;;  %v6377_v43 = vld [vmem:[%s8785_s2 + $0x54] ss:$8 sps:$4 sm:$0xff]  }
  0x1b   :  { %215 = vmatprep.subr.bf16.mxu0 %v6710_v1  ;;  %6216 = vmatprep.subr.mxu1 %v6712_v33 }
  0x1c   :  { %6217 = vmatpush3.msra.mxu1 %v287_v44  ;;  %v6375_v44 = vld [vmem:[%s8785_s2 + $0x50] ss:$8 sps:$4 sm:$0xff]  }
  0x1d   :  { %6218 = vmatprep.subr.mxu1 %v6712_v33 }
  0x1e   :  { %216 = vmatpush1.bf16.msra.mxu0 %v6364_v22  ;;  %6219 = vmatpush3.msra.mxu1 %v286_v45  ;;  %v6380_v45 = vld [vmem:[%s8785_s2 + $0x44] ss:$8 sps:$4 sm:$0xff]  }
  0x1f   :  { %225 = vmatprep.subr.bf16.mxu0 %v6710_v1  ;;  %6220 = vmatprep.subr.mxu1 %v6712_v33 }
  0x20   :  { %6221 = vmatpush3.msra.mxu1 %v285_v46  ;;  %v6378_v46 = vld [vmem:[%s8785_s2 + $0x40] ss:$8 sps:$4 sm:$0xff]  }
  0x21   :  { %6222 = vmatprep.subr.mxu1 %v6712_v33 }
  0x22   :  { %226 = vmatpush2.bf16.msra.mxu0 %v6365_v23  ;;  %6223 = vmatpush3.msra.mxu1 %v284_v47  ;;  %v6383_v47 = vld [vmem:[%s8785_s2 + $0x34] ss:$8 sps:$4 sm:$0xff]  }
  0x23   :  { %227 = vmatprep.subr.bf16.mxu0 %v6710_v1  ;;  %6227 = vmatprep.subr.mxu1 %v6712_v33 }
  0x26   :  { %228 = vmatpush2.bf16.msra.mxu0 %v6366_v24  ;;  %v388_v24 = vld [vmem:[%s8784_s10] sm:$0xff] }
  0x27   :  { %229 = vmatprep.subr.bf16.mxu0 %v6710_v1 }
  0x2a   :  { %230 = vmatpush2.bf16.msra.mxu0 %v6367_v25 }
  0x2b   :  { %231 = vmatprep.subr.bf16.mxu0 %v6710_v1 }
  0x2e   :  { %232 = vmatpush2.bf16.msra.mxu0 %v6368_v26 }
  0x7a   :  { %v86_v27 = vpop.permute.xlu0 %85 }
  0x7b   :  { %v89_v28 = vsel %vm70_vm1, %v6355_v0, %v86_v27 }
  0x7c   :  { %v91_v29 = vrot.slane %v89_v28, 1 }
  0x7e   :  { %v68_v30 = vpop.permute.xlu0 %67 }
  0x7f   :  { %v72_v31 = vsel %vm70_vm1, %v6356_v2, %v68_v30 }
  0x80   :  { %v96_v32 = vsel %vm94_vm0, %v72_v31, %v91_v29 }
  0x81   :  { %234 = vmatmul.mubr.bf16.vlgmr.msra.gmra.mxu0 %v96_v32 }
  0x82   :  { %5551 = vmatprep.mubr.msk.bf16.mxu0 %vm70_vm1, %v92_v16 }
  0x89   :  { %242 = vmatmul.mubr.bf16.gmra.mxu0 %v91_v29 }
  0x8a   :  { %892 = vmatprep.mubr.bf16.mxu0 %v6710_v1 }
 0x141   :  { %v6919_v48 = vpop.f32.mrf.mxu0 }
 0x142   :  { %v265_v53 = vmul.f32 %v6919_v48, %v6919_v48  ;;  %v251_v56 = vsel %vm250_vm3, %v6919_v48, 0.0 }
 0x143   :  { %v237_v49 = vpop.f32.mrf.mxu0 }
 0x144   :  { %v269_v62 = vsel %vm250_vm3, %v265_v53, 0.0  ;;  %v6396_v49 = vld [vmem:[%s8785_s2 + $0x140] ss:$8 sps:$4 sm:$0xff]   ;;  %v6404_v53 = vld [vmem:[%s8785_s2 + $0x134] ss:$8 sps:$4 sm:$0xff]  }
 0x145   :  { %v6921_v50 = vpop.f32.mrf.mxu0 }
 0x146   :  { %v266_v51 = vmul.f32 %v6921_v50, %v6921_v50  ;;  %v252_v54 = vsel %vm250_vm3, %v6921_v50, 0.0 }
 0x147   :  { %v240_v52 = vpop.f32.mrf.mxu0  ;;  %v253_v60 = vadd.f32 %v252_v54, %v251_v56  ;;  %v6402_v54 = vld [vmem:[%s8785_s2 + $0x130] ss:$8 sps:$4 sm:$0xff]   ;;  %v6386_v56 = vld [vmem:[%s8785_s2 + $0x24] ss:$8 sps:$4 sm:$0xff]  }
 0x148   :  { %v270_v57 = vsel %vm250_vm3, %v266_v51, 0.0  ;;  %v6398_v51 = vld [vmem:[%s8785_s2 + $0x144] ss:$8 sps:$4 sm:$0xff]   ;;  %v6381_v52 = vld [vmem:[%s8785_s2 + $0x30] ss:$8 sps:$4 sm:$0xff]  }
 0x149   :  { %v6929_v55 = vpop.f32.mrf.mxu0  ;;  %v271_v0 = vadd.f32 %v270_v57, %v269_v62  ;;  %866 = vmatprep.subr.bf16.mxu0 %v6398_v51  ;;  %v6410_v57 = vld [vmem:[%s8785_s2 + $0x124] ss:$8 sps:$4 sm:$0xff]   ;;  %v6387_v62 = vld [vmem:[%s8785_s2 + $0x10] ss:$8 sps:$4 sm:$0xff]  }
 0x14a   :  { %v254_v58 = vsel %vm250_vm3, %v6929_v55, 0.0  ;;  %v267_v59 = vmul.f32 %v6929_v55, %v6929_v55  ;;  %867 = vmatpush1.bf16.msra.mxu0 %v6396_v49 }
 0x14b   :  { %v245_v61 = vpop.f32.mrf.mxu0  ;;  %v255_v2 = vadd.f32 %v254_v58, %v253_v60  ;;  %868 = vmatprep.subr.bf16.mxu0 %v6404_v53  ;;  %v6384_v58 = vld [vmem:[%s8785_s2 + $0x20] ss:$8 sps:$4 sm:$0xff]  }
 0x14c   :  { %v272_v63 = vsel %vm250_vm3, %v267_v59, 0.0  ;;  %v6389_v59 = vld [vmem:[%s8785_s2 + $0x14] ss:$8 sps:$4 sm:$0xff]   ;;  %v6408_v60 = vld [vmem:[%s8785_s2 + $0x120] ss:$8 sps:$4 sm:$0xff]  }
 0x14d   :  { %v6940_v3 = vpop.f32.mrf.mxu0  ;;  %v273_v6 = vadd.f32 %v272_v63, %v271_v0  ;;  %v6416_v61 = vld [vmem:[%s8785_s2 + $0x114] ss:$8 sps:$4 sm:$0xff]   ;;  %v6414_v63 = vld [vmem:[%s8785_s2 + $0x110] ss:$8 sps:$4 sm:$0xff]   ;;  %v6392_v0 = vld [vmem:[%s8785_s2 + $0x4] ss:$8 sps:$4 sm:$0xff]  }
 0x14e   :  { %v257_v4 = vsel %vm256_vm4, %v6940_v3, 0.0  ;;  %v268_v5 = vmul.f32 %v6940_v3, %v6940_v3  ;;  %869 = vmatpush1.bf16.msra.mxu0 %v6402_v54 }
 0x14f   :  { %v258_v7 = vadd.f32 %v257_v4, %v255_v2  ;;  %v248_v8 = vpop.f32.mrf.mxu0  ;;  %870 = vmatprep.subr.bf16.mxu0 %v6410_v57  ;;  %v6390_v2 = vld [vmem:[%s8785_s2] ss:$8 sps:$4 sm:$0xff]   ;;  %v6395_v4 = vld [vmem:[%s8785_s2 + $0xf4] ss:$8 sps:$4 sm:$0xff]  }
 0x150   :  { %v274_v9 = vsel %vm256_vm4, %v268_v5, 0.0  ;;  %v6393_v5 = vld [vmem:[%s8785_s2 + $0xf0] ss:$8 sps:$4 sm:$0xff]   ;;  %v6407_v8 = vld [vmem:[%s8785_s2 + $0xd4] ss:$8 sps:$4 sm:$0xff]  }
 0x151   :  { %v259_v10 = vrot.slane %v258_v7, 4  ;;  %v275_v11 = vadd.f32 %v274_v9, %v273_v6  ;;  %v6401_v6 = vld [vmem:[%s8785_s2 + $0xe4] ss:$8 sps:$4 sm:$0xff]   ;;  %v6405_v9 = vld [vmem:[%s8785_s2 + $0xd0] ss:$8 sps:$4 sm:$0xff]  }
 0x152   :  { %871 = vmatpush1.bf16.msra.mxu0 %v6408_v60 }
 0x153   :  { %v260_v12 = vadd.f32 %v259_v10, %v258_v7  ;;  %v276_v13 = vrot.slane %v275_v11, 4  ;;  %872 = vmatprep.subr.bf16.mxu0 %v6416_v61  ;;  %v6399_v7 = vld [vmem:[%s8785_s2 + $0xe0] ss:$8 sps:$4 sm:$0xff]   ;;  %v6413_v10 = vld [vmem:[%s8785_s2 + $0xc4] ss:$8 sps:$4 sm:$0xff]  }
 0x155   :  { %v261_v14 = vrot.slane %v260_v12, 2  ;;  %v277_v15 = vadd.f32 %v276_v13, %v275_v11  ;;  %v6411_v11 = vld [vmem:[%s8785_s2 + $0xc0] ss:$8 sps:$4 sm:$0xff]   ;;  %v6417_v13 = vld [vmem:[%s8785_s2 + $0xb0] ss:$8 sps:$4 sm:$0xff]  }
 0x156   :  { %873 = vmatpush1.bf16.msra.mxu0 %v6414_v63  ;;  %v971_v63 = vld [vmem:[%s8786_s11 + $0x70] sm:$0xff] }
 0x157   :  { %v262_v16 = vadd.f32 %v261_v14, %v260_v12  ;;  %v278_v17 = vrot.slane %v277_v15, 2  ;;  %v6419_v12 = vld [vmem:[%s8785_s2 + $0xb4] ss:$8 sps:$4 sm:$0xff]   ;;  %v463_v14 = vlaneseq }
 0x159   :  { %v263_v18 = vrot.slane %v262_v16, 1  ;;  %v279_v19 = vadd.f32 %v278_v17, %v277_v15  ;;  %v7058_v15 = vshrl.u32 %v463_v14, 7 }
 0x15b   :  { %v280_v20 = vrot.slane %v279_v19, 1  ;;  %v264_v21 = vadd.f32 %v263_v18, %v262_v16  ;;  %v7061_v16 = vsub.s32 0, %v7058_v15  ;;  %v7064_v17 = vsub.s32 1, %v7058_v15 }
 0x15d   :  { %v281_v22 = vadd.f32 %v280_v20, %v279_v19  ;;  %v6420_v19 = vld [vmem:[%s8785_s2 + $0x100] ss:$8 sps:$4 sm:$0xff]   ;;  %v6422_v20 = vld [vmem:[%s8785_s2 + $0x104] ss:$8 sps:$4 sm:$0xff]  }
 0x15e   :  { %874 = vmatprep.subr.bf16.mxu0 %v6422_v20  ;;  %v969_v20 = vld [vmem:[%s8786_s11 + $0x60] sm:$0xff] }
 0x15f   :  { %v283_v23 = vsel %vm282_vm5, %v264_v21, %v281_v22  ;;  %v6423_v21 = vld [vmem:[%s8785_s2 + $0xa0] ss:$8 sps:$4 sm:$0xff]   ;;  %875 = vmatpush1.bf16.msra.mxu0 %v6420_v19 }
 0x160   :  { %6225 = vmatmul.mubr.msk.f32.vlgmr.msra.gmra.mxu1 %vm250_vm3, %v283_v23  ;;  %v6425_v23 = vld [vmem:[%s8785_s2 + $0xa4] ss:$8 sps:$4 sm:$0xff]   ;;  %984 = vmatprep.subr.mxu0 %v6712_v33 }
 0x161   :  { %6229 = vmatprep.mubr.msk.f32.mxu1 %vm6713_vm2, %v6712_v33  ;;  %6228 = vmatpush3.msra.mxu1 %v388_v24 }
 0x162   :  { %809 = vmatprep.subr.bf16.mxu1 %v6371_v40 }
 0x220   :  { %v367_v25 = vpop.f32.mrf.mxu1 }
 0x221   :  { %v371_v26 = vmul.f32 0.0025510204, %v367_v25 }
 0x222   :  { %v6226_v27 = vpop.f32.mrf.mxu1 }
 0x223   :  { %v372_v28 = vmul.f32 %v371_v26, %v371_v26 }
 0x225   :  { %v374_v29 = vrot.slane %v372_v28, 7 }
 0x227   :  { %v376_v30 = vsub.f32 %v371_v26, %v374_v29 }
 0x229   :  { %v377_v31 = vmax.f32 %v376_v30, 0.0 }
 0x22b   :  { %v378_v32 = vadd.f32 1e-05, %v377_v31 }
 0x22d   :  { %6687 = vrsqrt.f32 %v378_v32 }
 0x23a   :  { %v6688_v34 = vpop.eup %6687 }
 0x23b   :  { %v381_v35 = vrot.slane %v6688_v34, 1 }
 0x23d   :  { %v383_v36 = vmul.f32 %v381_v35, %v371_v26 }
 0x23f   :  { %v385_v37 = vrot.slane %v383_v36, 7 }
 0x241   :  { %v387_v38 = vsel %vm282_vm5, %v381_v35, %v385_v37  ;;  %v6426_v35 = vld [vmem:[%s8785_s2 + $0x90] ss:$8 sps:$4 sm:$0xff]   ;;  %v6429_v37 = vld [vmem:[%s8785_s2 + $0x80] ss:$8 sps:$4 sm:$0xff]  }
 0x242   :  { %6230 = vmatmul.mubr.msk.f32.vlgmr.msra.gmra.mxu1 %vm8800_vm6, %v387_v38  ;;  %v6431_v38 = vld [vmem:[%s8785_s2 + $0x84] ss:$8 sps:$4 sm:$0xff]  }
 0x243   :  { %810 = vmatpush1.bf16.msra.mxu1 %v6369_v39 }
 0x244   :  { %811 = vmatprep.subr.bf16.mxu1 %v6374_v41 }
 0x247   :  { %812 = vmatpush1.bf16.msra.mxu1 %v6372_v42 }
 0x248   :  { %813 = vmatprep.subr.bf16.mxu1 %v6377_v43 }
 0x24b   :  { %814 = vmatpush1.bf16.msra.mxu1 %v6375_v44 }
 0x24c   :  { %815 = vmatprep.subr.bf16.mxu1 %v6380_v45 }
 0x24f   :  { %816 = vmatpush1.bf16.msra.mxu1 %v6378_v46 }
 0x250   :  { %817 = vmatprep.subr.bf16.mxu1 %v6383_v47 }
 0x253   :  { %818 = vmatpush1.bf16.msra.mxu1 %v6381_v52 }
 0x254   :  { %819 = vmatprep.subr.bf16.mxu1 %v6386_v56 }
 0x257   :  { %820 = vmatpush1.bf16.msra.mxu1 %v6384_v58 }
 0x258   :  { %821 = vmatprep.subr.bf16.mxu1 %v6389_v59  ;;  %v972_v59 = vld [vmem:[%s8786_s11 + $0x78] sm:$0xff] }
 0x25b   :  { %822 = vmatpush1.bf16.msra.mxu1 %v6387_v62 }
 0x25c   :  { %823 = vmatprep.subr.bf16.mxu1 %v6392_v0 }
 0x25f   :  { %824 = vmatpush1.bf16.msra.mxu1 %v6390_v2 }
 0x260   :  { %825 = vmatprep.subr.bf16.mxu1 %v6395_v4 }
 0x263   :  { %826 = vmatpush2.bf16.msra.mxu1 %v6393_v5  ;;  %v970_v5 = vld [vmem:[%s8786_s11 + $0x68] sm:$0xff] }
 0x264   :  { %827 = vmatprep.subr.bf16.mxu1 %v6401_v6 }
 0x267   :  { %828 = vmatpush2.bf16.msra.mxu1 %v6399_v7 }
 0x268   :  { %829 = vmatprep.subr.bf16.mxu1 %v6407_v8 }
 0x26b   :  { %830 = vmatpush2.bf16.msra.mxu1 %v6405_v9 }
 0x26c   :  { %831 = vmatprep.subr.bf16.mxu1 %v6413_v10 }
 0x26f   :  { %832 = vmatpush2.bf16.msra.mxu1 %v6411_v11 }
 0x270   :  { %833 = vmatprep.subr.bf16.mxu1 %v6419_v12 }
 0x273   :  { %834 = vmatpush2.bf16.msra.mxu1 %v6417_v13 }
 0x274   :  { %835 = vmatprep.subr.bf16.mxu1 %v6425_v23  ;;  %v966_v23 = vld [vmem:[%s8786_s11 + $0x48] sm:$0xff] }
 0x277   :  { %836 = vmatpush2.bf16.msra.mxu1 %v6423_v21  ;;  %v968_v21 = vld [vmem:[%s8786_s11 + $0x58] sm:$0xff] }
 0x302   :  { %v459_v18 = vpop.f32.mrf.mxu1 }
 0x303   :  { %v466_v22 = vrot.slane %v459_v18, %v7061_v16  ;;  %v474_v24 = vrot.slane %v459_v18, %v7064_v17 }
 0x304   :  { %v6231_v25 = vpop.f32.mrf.mxu1 }
 0x305   :  { %v467_v26 = vmul.f32 %v466_v22, %v6919_v48  ;;  %v468_v27 = vmul.f32 %v466_v22, %v6921_v50  ;;  %v469_v28 = vmul.f32 %v466_v22, %v6929_v55  ;;  %v470_v29 = vmul.f32 %v466_v22, %v6940_v3  ;;  %v6428_v48 = vld [vmem:[%s8785_s2 + $0x94] ss:$8 sps:$4 sm:$0xff]  }
 0x306   :  { %837 = vmatprep.subr.bf16.mxu1 %v6428_v48  ;;  %v967_v22 = vld [vmem:[%s8786_s11 + $0x50] sm:$0xff]  ;;  %v964_v25 = vld [vmem:[%s8786_s11 + $0x38] sm:$0xff]  ;;  %v978_v48 = vld [vmem:[%s8786_s11 + $0xa8] sm:$0xff] }
 0x307   :  { %v475_v30 = vsub.f32 %v467_v26, %v474_v24  ;;  %v476_v31 = vsub.f32 %v468_v27, %v474_v24  ;;  %v477_v32 = vsub.f32 %v469_v28, %v474_v24  ;;  %v478_v34 = vsub.f32 %v470_v29, %v474_v24  ;;  %838 = vmatpush2.bf16.msra.mxu1 %v6426_v35  ;;  %v965_v24 = vld [vmem:[%s8786_s11 + $0x40] sm:$0xff]  ;;  %v963_v26 = vld [vmem:[%s8786_s11 + $0x30] sm:$0xff]  ;;  %v962_v27 = vld [vmem:[%s8786_s11 + $0x28] sm:$0xff] }
 0x308   :  { %839 = vmatprep.subr.bf16.mxu1 %v6431_v38  ;;  %v961_v28 = vld [vmem:[%s8786_s11 + $0x20] sm:$0xff]  ;;  %v960_v29 = vld [vmem:[%s8786_s11 + $0x18] sm:$0xff]  ;;  %v979_v35 = vld [vmem:[%s8786_s11 + $0xb0] sm:$0xff] }
 0x309   :  { %v479_v50 = vmax.f32 %v475_v30, 0.0  ;;  %v480_v55 = vmax.f32 %v476_v31, 0.0  ;;  %v481_v3 = vmax.f32 %v477_v32, 0.0  ;;  %v482_v36 = vmax.f32 %v478_v34, 0.0  ;;  %v959_v30 = vld [vmem:[%s8786_s11 + $0x10] sm:$0xff]  ;;  %v958_v31 = vld [vmem:[%s8786_s11 + $0x8] sm:$0xff] }
 0x30a   :  { %v957_v32 = vld [vmem:[%s8786_s11] sm:$0xff]  ;;  %v980_v34 = vld [vmem:[%s8786_s11 + $0xb8] sm:$0xff] }
 0x30b   :  { %v483_v39 = vpack.c.bf16 %v480_v55, %v479_v50  ;;  %v484_v40 = vpack.c.bf16 %v482_v36, %v481_v3  ;;  %840 = vmatpush2.bf16.msra.mxu1 %v6429_v37  ;;  %v977_v50 = vld [vmem:[%s8786_s11 + $0xa0] sm:$0xff]  ;;  %v976_v55 = vld [vmem:[%s8786_s11 + $0x98] sm:$0xff]  ;;  %v975_v3 = vld [vmem:[%s8786_s11 + $0x90] sm:$0xff] }
 0x30c   :  { %v974_v36 = vld [vmem:[%s8786_s11 + $0x88] sm:$0xff]  ;;  %v973_v37 = vld [vmem:[%s8786_s11 + $0x80] sm:$0xff] }
 0x30d   :  { %v517_v41 = vrot.slane %v484_v40, 1  ;;  %v505_v42 = vshll.u32 %v484_v40, 16  ;;  %v486_v43 = vshrl.u32 %v483_v39, 16  ;;  %v488_v45 = vshll.u32 %v483_v39, 16 }
 0x30e   :  { %v495_v47 = vrot.slane %v483_v39, 1  ;;  %v509_v49 = vshrl.u32 %v484_v40, 16 }
 0x30f   :  { %518 = vrot.lane.b32.xlu0 %v517_v41, %s6714_s17  ;;  %v507_v44 = vrot.slane %v505_v42, 1  ;;  %v490_v52 = vrot.slane %v488_v45, 1 }
 0x311   :  { %v508_v46 = vsel %vm8799_vm7, %v486_v43, %v507_v44  ;;  %v511_v51 = vor.u32 %v509_v49, %v507_v44  ;;  %v491_v53 = vor.u32 %v490_v52, %v486_v43 }
 0x312   :  { %512 = vrot.lane.b32.xlu1 %v508_v46, %s6715_s18 }
 0x313   :  { %496 = vrot.lane.b32.xlu0 %v495_v47, %s6714_s17 }
 0x316   :  { %514 = vrot.lane.b32.xlu1 %v511_v51, %s6715_s18 }
 0x31a   :  { %492 = vrot.lane.b32.xlu1 %v491_v53, %s6715_s18 }
 0x381   :  { %v519_v54 = vpop.permute.xlu0 %518 }
 0x382   :  { %v538_v56 = vrot.slane %v519_v54, 1 }
 0x384   :  { %v513_v57 = vpop.permute.xlu1 %512 }
 0x385   :  { %v497_v58 = vpop.permute.xlu0 %496  ;;  %v521_v61 = vsel %vm250_vm3, %v483_v39, %v513_v57  ;;  %v525_v62 = vsel %vm8797_vm9, %v513_v57, %v519_v54 }
 0x386   :  { %v550_v60 = vsel %vm542_vm8, %v497_v58, %v538_v56  ;;  %v532_v6 = vrot.slane %v521_v61, 1  ;;  %v535_v7 = vrot.slane %v525_v62, 1 }
 0x387   :  { %5596 = vmatmul.mubr.msk.bf16.vlgmr.msra.gmra.mxu0 %vm8798_vm10, %v550_v60 }
 0x388   :  { %v515_v0 = vpop.permute.xlu1 %514  ;;  %902 = vmatprep.mubr.bf16.mxu0 %v6710_v1  ;;  %985 = vmatpush1.msra.mxu0 %v972_v59 }
 0x389   :  { %v523_v2 = vsel %vm250_vm3, %v484_v40, %v515_v0  ;;  %v526_v4 = vsel %vm8797_vm9, %v515_v0, %v519_v54  ;;  %986 = vmatprep.subr.mxu0 %v6712_v33 }
 0x38a   :  { %v533_v8 = vrot.slane %v523_v2, 1  ;;  %v536_v9 = vrot.slane %v526_v4, 1  ;;  %987 = vmatpush1.msra.mxu0 %v971_v63 }
 0x38b   :  { %988 = vmatprep.subr.mxu0 %v6712_v33 }
 0x38c   :  { %v493_v10 = vpop.permute.xlu1 %492  ;;  %v537_v11 = vsel %vm94_vm0, %v535_v7, %v536_v9  ;;  %v534_v12 = vsel %vm94_vm0, %v532_v6, %v533_v8  ;;  %989 = vmatpush1.msra.mxu0 %v970_v5 }
 0x38d   :  { %v499_v13 = vsel %vm250_vm3, %v483_v39, %v493_v10  ;;  %v502_v14 = vsel %vm8797_vm9, %v493_v10, %v497_v58  ;;  %990 = vmatprep.subr.mxu0 %v6712_v33  ;;  %vm3833_vm9 = vsmask.f32 3328 }
 0x38e   :  { %v547_v18 = vsel %vm542_vm8, %v502_v14, %v537_v11  ;;  %v544_v19 = vsel %vm542_vm8, %v499_v13, %v534_v12  ;;  %991 = vmatpush1.msra.mxu0 %v969_v20 }
 0x38f   :  { %841 = vmatprep.mubr.bf16.mxu1 %v547_v18  ;;  %5597 = vmatmul.mubr.msk.bf16.gmra.mxu0 %vm8798_vm10, %v538_v56 }
 0x390   :  { %842 = vmatmul.mubr.bf16.vlgmr.msra.gmra.mxu1 %v544_v19  ;;  %992 = vmatprep.subr.mxu0 %v6712_v33 }
 0x391   :  { %851 = vmatprep.mubr.bf16.mxu1 %v536_v9  ;;  %993 = vmatpush1.msra.mxu0 %v968_v21 }
 0x392   :  { %994 = vmatprep.subr.mxu0 %v6712_v33 }
 0x393   :  { %995 = vmatpush1.msra.mxu0 %v967_v22 }
 0x394   :  { %996 = vmatprep.subr.mxu0 %v6712_v33 }
 0x395   :  { %997 = vmatpush1.msra.mxu0 %v966_v23 }
 0x396   :  { %998 = vmatprep.subr.mxu0 %v6712_v33 }
 0x397   :  { %999 = vmatpush1.msra.mxu0 %v965_v24 }
 0x398   :  { %852 = vmatmul.mubr.bf16.gmra.mxu1 %v533_v8  ;;  %1000 = vmatprep.subr.mxu0 %v6712_v33 }
 0x399   :  { %1143 = vmatprep.mubr.f32.mxu1 %v6712_v33  ;;  %1001 = vmatpush1.msra.mxu0 %v964_v25 }
 0x39a   :  { %1002 = vmatprep.subr.mxu0 %v6712_v33 }
 0x39b   :  { %1003 = vmatpush1.msra.mxu0 %v963_v26 }
 0x39c   :  { %1004 = vmatprep.subr.mxu0 %v6712_v33 }
 0x39d   :  { %1005 = vmatpush1.msra.mxu0 %v962_v27 }
 0x39e   :  { %1006 = vmatprep.subr.mxu0 %v6712_v33 }
 0x39f   :  { %1007 = vmatpush1.msra.mxu0 %v961_v28 }
 0x3a0   :  { %1008 = vmatprep.subr.mxu0 %v6712_v33 }
 0x3a1   :  { %1009 = vmatpush1.msra.mxu0 %v960_v29 }
 0x3a2   :  { %1010 = vmatprep.subr.mxu0 %v6712_v33 }
 0x3a3   :  { %1011 = vmatpush1.msra.mxu0 %v959_v30 }
 0x3a4   :  { %1012 = vmatprep.subr.mxu0 %v6712_v33 }
 0x3a5   :  { %1013 = vmatpush1.msra.mxu0 %v958_v31 }
 0x3a6   :  { %1014 = vmatprep.subr.mxu0 %v6712_v33 }
 0x3a7   :  { %1015 = vmatpush1.msra.mxu0 %v957_v32 }
 0x3a8   :  { %1032 = vmatprep.subr.mxu0 %v6712_v33 }
 0x3a9   :  { %1033 = vmatpush2.msra.mxu0 %v980_v34 }
 0x3aa   :  { %1034 = vmatprep.subr.mxu0 %v6712_v33 }
 0x3ab   :  { %1035 = vmatpush2.msra.mxu0 %v979_v35 }
 0x3ac   :  { %1036 = vmatprep.subr.mxu0 %v6712_v33 }
 0x3ad   :  { %1037 = vmatpush2.msra.mxu0 %v978_v48 }
 0x3ae   :  { %1038 = vmatprep.subr.mxu0 %v6712_v33 }
 0x3af   :  { %1039 = vmatpush2.msra.mxu0 %v977_v50 }
 0x3b0   :  { %1040 = vmatprep.subr.mxu0 %v6712_v33 }
 0x3b1   :  { %1041 = vmatpush2.msra.mxu0 %v976_v55 }
 0x3b2   :  { %1042 = vmatprep.subr.mxu0 %v6712_v33 }
 0x3b3   :  { %1043 = vmatpush2.msra.mxu0 %v975_v3 }
 0x3b4   :  { %1044 = vmatprep.subr.mxu0 %v6712_v33 }
 0x3b5   :  { %1045 = vmatpush2.msra.mxu0 %v974_v36 }
 0x3b6   :  { %1046 = vmatprep.subr.mxu0 %v6712_v33 }
 0x3b7   :  { %1047 = vmatpush2.msra.mxu0 %v973_v37 }
 0x447   :  { %v894_v38 = vpop.f32.mrf.mxu0 }
 0x449   :  { %v896_v39 = vpop.f32.mrf.mxu0 }
 0x44b   :  { %v898_v40 = vpop.f32.mrf.mxu0 }
 0x44d   :  { %v900_v41 = vpop.f32.mrf.mxu0 }
 0x44f   :  { %v904_v42 = vpop.f32.mrf.mxu0 }
 0x450   :  { %v843_v43 = vpop.f32.mrf.mxu1 }
 0x451   :  { %v906_v44 = vpop.f32.mrf.mxu0  ;;  %v7213_v47 = vadd.f32 %v894_v38, %v843_v43 }
 0x452   :  { %v845_v45 = vpop.f32.mrf.mxu1 }
 0x453   :  { %v908_v46 = vpop.f32.mrf.mxu0  ;;  %v7215_v49 = vadd.f32 %v896_v39, %v845_v45  ;;  %v930_v58 = vmul.f32 %v7213_v47, %v7213_v47 }
 0x454   :  { %v847_v51 = vpop.f32.mrf.mxu1 }
 0x455   :  { %v7217_v52 = vadd.f32 %v898_v40, %v847_v51  ;;  %v909_v53 = vpop.f32.mrf.mxu0  ;;  %v931_v59 = vmul.f32 %v7215_v49, %v7215_v49  ;;  %v919_v2 = vsel %vm70_vm1, %v7215_v49, 0.0  ;;  %v1074_v51 = vld [vmem:[%s8787_s12 + $0x18] sm:$0xff] }
 0x456   :  { %v849_v54 = vpop.f32.mrf.mxu1  ;;  %1107 = vmatprep.subr.mxu1 %v1074_v51  ;;  %v1073_v53 = vld [vmem:[%s8787_s12 + $0x10] sm:$0xff] }
 0x457   :  { %v932_v56 = vmul.f32 %v7217_v52, %v7217_v52  ;;  %v7221_v57 = vadd.f32 %v900_v41, %v849_v54  ;;  %v911_v61 = vadd.f32 %v7217_v52, %v7213_v47  ;;  %v944_v10 = vsel %vm70_vm1, %v931_v59, 0.0  ;;  %v1072_v54 = vld [vmem:[%s8787_s12 + $0x8] sm:$0xff]  ;;  %1108 = vmatpush1.msra.mxu1 %v1073_v53 }
 0x458   :  { %v853_v60 = vpop.f32.mrf.mxu1  ;;  %1109 = vmatprep.subr.mxu1 %v1072_v54 }
 0x459   :  { %v920_v62 = vsel %vm70_vm1, %v7221_v57, 0.0  ;;  %v933_v63 = vmul.f32 %v7221_v57, %v7221_v57  ;;  %v7233_v0 = vadd.f32 %v904_v42, %v853_v60  ;;  %v936_v4 = vadd.f32 %v932_v56, %v930_v58  ;;  %v1071_v56 = vld [vmem:[%s8787_s12] sm:$0xff] }
 0x45a   :  { %v855_v5 = vpop.f32.mrf.mxu1  ;;  %v921_v11 = vadd.f32 %v920_v62, %v919_v2  ;;  %1110 = vmatpush1.msra.mxu1 %v1071_v56 }
 0x45b   :  { %v945_v6 = vsel %vm70_vm1, %v933_v63, 0.0  ;;  %v912_v7 = vadd.f32 %v911_v61, %v7233_v0  ;;  %v934_v8 = vmul.f32 %v7233_v0, %v7233_v0  ;;  %v7241_v9 = vadd.f32 %v906_v44, %v855_v5 }
 0x45c   :  { %v857_v12 = vpop.f32.mrf.mxu1  ;;  %v946_v20 = vadd.f32 %v945_v6, %v944_v10 }
 0x45d   :  { %v913_v13 = vrot.slane %v912_v7, 4  ;;  %v937_v14 = vadd.f32 %v936_v4, %v934_v8  ;;  %v922_v18 = vsel %vm70_vm1, %v7241_v9, 0.0  ;;  %v935_v19 = vmul.f32 %v7241_v9, %v7241_v9  ;;  %v6433_v12 = vld [vmem:[%s8788_s3 + $0x38] sm:$0xff]  }
 0x45e   :  { %v923_v21 = vadd.f32 %v922_v18, %v921_v11  ;;  %v858_v22 = vpop.f32.mrf.mxu1  ;;  %v6432_v11 = vld [vmem:[%s8788_s3 + $0x78] sm:$0xff]   ;;  %v6436_v18 = vld [vmem:[%s8788_s3 + $0x70] sm:$0xff]  }
 0x45f   :  { %v914_v23 = vadd.f32 %v913_v13, %v912_v7  ;;  %v938_v24 = vrot.slane %v937_v14, 4  ;;  %v947_v25 = vsel %vm70_vm1, %v935_v19, 0.0  ;;  %5873 = vmatprep.subr.bf16.mxu1 %v6432_v11  ;;  %v6434_v13 = vld [vmem:[%s8788_s3 + $0xf8] sm:$0xff]   ;;  %v6437_v19 = vld [vmem:[%s8788_s3 + $0x30] sm:$0xff]   ;;  %v6440_v22 = vld [vmem:[%s8788_s3 + $0x68] sm:$0xff]  }
 0x460   :  { %v924_v26 = vrot.slane %v923_v21, 4  ;;  %v948_v27 = vadd.f32 %v947_v25, %v946_v20  ;;  %5895 = vmatprep.subr.bf16.mxu0 %v6434_v13  ;;  %v6438_v20 = vld [vmem:[%s8788_s3 + $0xf0] sm:$0xff]   ;;  %v6443_v25 = vld [vmem:[%s8788_s3 + $0xa8] sm:$0xff]  }
 0x461   :  { %v915_v28 = vrot.slane %v914_v23, 2  ;;  %v939_v29 = vadd.f32 %v938_v24, %v937_v14  ;;  %v6435_v14 = vld [vmem:[%s8788_s3 + $0xb8] sm:$0xff]   ;;  %v6442_v24 = vld [vmem:[%s8788_s3 + $0xe8] sm:$0xff]  }
 0x462   :  { %v925_v30 = vadd.f32 %v924_v26, %v923_v21  ;;  %v949_v31 = vrot.slane %v948_v27, 4  ;;  %v6439_v21 = vld [vmem:[%s8788_s3 + $0xb0] sm:$0xff]   ;;  %v6444_v26 = vld [vmem:[%s8788_s3 + $0x60] sm:$0xff]  }
 0x463   :  { %v940_v32 = vrot.slane %v939_v29, 2  ;;  %v916_v48 = vadd.f32 %v915_v28, %v914_v23  ;;  %v6441_v23 = vld [vmem:[%s8788_s3 + $0x28] sm:$0xff]   ;;  %v6446_v28 = vld [vmem:[%s8788_s3 + $0xe0] sm:$0xff]  }
 0x464   :  { %v926_v34 = vrot.slane %v925_v30, 2  ;;  %v950_v35 = vadd.f32 %v949_v31, %v948_v27  ;;  %v6445_v27 = vld [vmem:[%s8788_s3 + $0x20] sm:$0xff]   ;;  %v6449_v31 = vld [vmem:[%s8788_s3 + $0x18] sm:$0xff]  }
 0x465   :  { %v941_v50 = vadd.f32 %v940_v32, %v939_v29  ;;  %v917_v39 = vrot.slane %v916_v48, 1  ;;  %v6447_v29 = vld [vmem:[%s8788_s3 + $0xa0] sm:$0xff]   ;;  %v6450_v32 = vld [vmem:[%s8788_s3 + $0xd8] sm:$0xff]  }
 0x466   :  { %v927_v55 = vadd.f32 %v926_v34, %v925_v30  ;;  %v951_v3 = vrot.slane %v950_v35, 2  ;;  %v6448_v30 = vld [vmem:[%s8788_s3 + $0x58] sm:$0xff]  }
 0x467   :  { %v942_v36 = vrot.slane %v941_v50, 1  ;;  %v918_v44 = vadd.f32 %v917_v39, %v916_v48  ;;  %v6451_v34 = vld [vmem:[%s8788_s3 + $0x98] sm:$0xff]   ;;  %v6453_v48 = vld [vmem:[%s8788_s3 + $0x10] sm:$0xff]  }
 0x468   :  { %v928_v37 = vrot.slane %v927_v55, 1  ;;  %v952_v38 = vadd.f32 %v951_v3, %v950_v35  ;;  %v6452_v35 = vld [vmem:[%s8788_s3 + $0x50] sm:$0xff]   ;;  %v6456_v3 = vld [vmem:[%s8788_s3 + $0x48] sm:$0xff]  }
 0x469   :  { %v943_v41 = vadd.f32 %v942_v36, %v941_v50  ;;  %v6454_v50 = vld [vmem:[%s8788_s3 + $0xd0] sm:$0xff]   ;;  %v6457_v36 = vld [vmem:[%s8788_s3 + $0x8] sm:$0xff]  }
 0x46a   :  { %v953_v40 = vrot.slane %v952_v38, 1  ;;  %v929_v42 = vadd.f32 %v928_v37, %v927_v55  ;;  %v6455_v55 = vld [vmem:[%s8788_s3 + $0x90] sm:$0xff]   ;;  %v6458_v37 = vld [vmem:[%s8788_s3 + $0xc8] sm:$0xff]  }
 0x46b   :  { %v955_v46 = vsel %vm282_vm5, %v918_v44, %v943_v41 }
 0x46c   :  { %v954_v43 = vadd.f32 %v953_v40, %v952_v38 }
 0x46e   :  { %v956_v45 = vsel %vm282_vm5, %v929_v42, %v954_v43 }
 0x46f   :  { %5598 = vmatprep.mubr.msk.f32.mxu0 %vm70_vm1, %v956_v45 }
 0x470   :  { %1049 = vmatmul.mubr.f32.vlgmr.msra.gmra.mxu0 %v955_v46  ;;  %v6459_v46 = vld [vmem:[%s8788_s3 + $0x88] sm:$0xff]  }
 0x471   :  { %5896 = vmatpush3.bf16.msra.mxu0 %v6435_v14 }
 0x472   :  { %5897 = vmatprep.subr.bf16.mxu0 %v6438_v20 }
 0x475   :  { %5898 = vmatpush3.bf16.msra.mxu0 %v6439_v21 }
 0x476   :  { %5899 = vmatprep.subr.bf16.mxu0 %v6442_v24 }
 0x479   :  { %5900 = vmatpush3.bf16.msra.mxu0 %v6443_v25 }
 0x47a   :  { %5901 = vmatprep.subr.bf16.mxu0 %v6446_v28 }
 0x47d   :  { %5902 = vmatpush3.bf16.msra.mxu0 %v6447_v29 }
 0x47e   :  { %5903 = vmatprep.subr.bf16.mxu0 %v6450_v32 }
 0x481   :  { %5904 = vmatpush3.bf16.msra.mxu0 %v6451_v34 }
 0x482   :  { %5905 = vmatprep.subr.bf16.mxu0 %v6454_v50 }
 0x485   :  { %5906 = vmatpush3.bf16.msra.mxu0 %v6455_v55 }
 0x486   :  { %5907 = vmatprep.subr.bf16.mxu0 %v6458_v37 }
 0x489   :  { %5908 = vmatpush3.bf16.msra.mxu0 %v6459_v46 }
 0x530   :  { %v1050_v58 = vpop.f32.mrf.mxu0 }
 0x531   :  { %v1054_v59 = vmul.f32 0.0034722222, %v1050_v58 }
 0x532   :  { %v1052_v60 = vpop.f32.mrf.mxu0 }
 0x533   :  { %v1055_v61 = vmul.f32 %v1054_v59, %v1054_v59  ;;  %v6462_v60 = vld [vmem:[%s8788_s3 + $0xc0] sm:$0xff]  }
 0x534   :  { %5909 = vmatprep.subr.bf16.mxu0 %v6462_v60 }
 0x535   :  { %v1057_v62 = vrot.slane %v1055_v61, 7 }
 0x537   :  { %v1059_v63 = vsub.f32 %v1054_v59, %v1057_v62 }
 0x539   :  { %v1060_v2 = vmax.f32 %v1059_v63, 0.0 }
 0x53b   :  { %v1061_v4 = vadd.f32 1e-05, %v1060_v2  ;;  %v6463_v2 = vld [vmem:[%s8788_s3 + $0x80] sm:$0xff]  }
 0x53c   :  { %5910 = vmatpush3.bf16.msra.mxu0 %v6463_v2 }
 0x53d   :  { %6689 = vrsqrt.f32 %v1061_v4 }
 0x54a   :  { %v6690_v5 = vpop.eup %6689 }
 0x54b   :  { %v1064_v6 = vrot.slane %v6690_v5, 1 }
 0x54d   :  { %v1066_v7 = vmul.f32 %v1064_v6, %v1054_v59  ;;  %v6461_v59 = vld [vmem:[%s8788_s3] sm:$0xff]  }
 0x54f   :  { %v1068_v8 = vrot.slane %v1066_v7, 7 }
 0x551   :  { %v1070_v10 = vsel %vm282_vm5, %v1064_v6, %v1068_v8  ;;  %v6464_v6 = vld [vmem:[%s8788_s3 + $0x178] sm:$0xff]  }
 0x552   :  { %5599 = vmatmul.mubr.msk.f32.vlgmr.msra.gmra.mxu1 %vm1075_vm11, %v1070_v10  ;;  %v6465_v10 = vld [vmem:[%s8788_s3 + $0x1f8] sm:$0xff]   ;;  %vm3805_vm11 = vsmask.f32 1280 }
 0x553   :  { %5874 = vmatpush3.bf16.msra.mxu1 %v6433_v12  ;;  %5939 = vmatprep.subr.bf16.mxu0 %v6465_v10  ;;  %vm8233_vm12 = vmand %vm3804_vm15, %vm3805_vm11  ;;  %vm3832_vm11 = vcmask 1043456  }
 0x554   :  { %5875 = vmatprep.subr.bf16.mxu1 %v6436_v18  ;;  %vm8266_vm7 = vmand %vm3832_vm11, %vm3833_vm9  ;;  %vm3846_vm9 = vcmask 1044480  }
 0x557   :  { %5876 = vmatpush3.bf16.msra.mxu1 %v6437_v19 }
 0x558   :  { %5877 = vmatprep.subr.bf16.mxu1 %v6440_v22 }
 0x55b   :  { %5878 = vmatpush3.bf16.msra.mxu1 %v6441_v23 }
 0x55c   :  { %5879 = vmatprep.subr.bf16.mxu1 %v6444_v26 }
 0x55f   :  { %5880 = vmatpush3.bf16.msra.mxu1 %v6445_v27 }
 0x560   :  { %5881 = vmatprep.subr.bf16.mxu1 %v6448_v30 }
 0x563   :  { %5882 = vmatpush3.bf16.msra.mxu1 %v6449_v31 }
 0x564   :  { %5883 = vmatprep.subr.bf16.mxu1 %v6452_v35 }
 0x567   :  { %5884 = vmatpush3.bf16.msra.mxu1 %v6453_v48 }
 0x568   :  { %5885 = vmatprep.subr.bf16.mxu1 %v6456_v3 }
 0x56b   :  { %5886 = vmatpush3.bf16.msra.mxu1 %v6457_v36 }
 0x612   :  { %v1145_v38 = vpop.f32.mrf.mxu1 }
 0x613   :  { %v1153_v39 = vrot.slane %v1145_v38, %v7061_v16  ;;  %v1167_v40 = vrot.slane %v1145_v38, %v7064_v17 }
 0x614   :  { %v1147_v41 = vpop.f32.mrf.mxu1 }
 0x615   :  { %v1158_v42 = vmul.f32 %v1153_v39, %v7213_v47  ;;  %v1160_v43 = vmul.f32 %v1153_v39, %v7217_v52  ;;  %v1162_v44 = vmul.f32 %v1153_v39, %v7233_v0  ;;  %v1157_v45 = vrot.slane %v1147_v41, %v7061_v16  ;;  %v6460_v47 = vld [vmem:[%s8788_s3 + $0x40] sm:$0xff]  }
 0x616   :  { %v1171_v51 = vrot.slane %v1147_v41, %v7064_v17  ;;  %5887 = vmatprep.subr.bf16.mxu1 %v6460_v47 }
 0x617   :  { %v1172_v53 = vsub.f32 %v1158_v42, %v1167_v40  ;;  %v1174_v54 = vsub.f32 %v1160_v43, %v1167_v40  ;;  %v1176_v56 = vsub.f32 %v1162_v44, %v1167_v40  ;;  %v1159_v58 = vmul.f32 %v1157_v45, %v7215_v49  ;;  %5888 = vmatpush3.bf16.msra.mxu1 %v6461_v59 }
 0x618   :  { %v1161_v52 = vmul.f32 %v1157_v45, %v7221_v57  ;;  %v1163_v0 = vmul.f32 %v1157_v45, %v7241_v9  ;;  %5917 = vmatprep.subr.bf16.mxu1 %v6464_v6 }
 0x619   :  { %v1178_v61 = vmax.f32 %v1172_v53, 0.0  ;;  %v1180_v62 = vmax.f32 %v1174_v54, 0.0  ;;  %v1182_v49 = vmax.f32 %v1176_v56, 0.0  ;;  %v1173_v63 = vsub.f32 %v1159_v58, %v1171_v51 }
 0x61a   :  { %v1175_v57 = vsub.f32 %v1161_v52, %v1171_v51  ;;  %v1177_v4 = vsub.f32 %v1163_v0, %v1171_v51 }
 0x61b   :  { %v7371_v9 = vpack.c.bf16 %v1180_v62, %v1178_v61  ;;  %v1179_v5 = vmax.f32 %v1173_v63, 0.0  ;;  %v1186_v11 = vpack.c.bf16 %v1182_v49, %v1182_v49 }
 0x61c   :  { %v1181_v7 = vmax.f32 %v1175_v57, 0.0  ;;  %v1183_v8 = vmax.f32 %v1177_v4, 0.0 }
 0x61d   :  { %v7380_v12 = vshrl.u32 %v7371_v9, 16  ;;  %v1203_v13 = vrot.slane %v7371_v9, 1  ;;  %v1286_v23 = vshrl.u32 %v1186_v11, 16  ;;  %v1283_v26 = vrot.slane %v1186_v11, 2 }
 0x61e   :  { %v7383_v14 = vpack.c.bf16 %v1181_v7, %v1179_v5  ;;  %v7387_v19 = vpack.c.bf16 %v1183_v8, %v1183_v8  ;;  %v1298_v32 = vrot.slane %v1186_v11, 3  ;;  %v1316_v34 = vrot.slane %v1186_v11, 5 }
 0x61f   :  { %1194 = vrot.lane.b32.xlu1 %v7380_v12, %s6711_s26  ;;  %v1348_v18 = vshll.u32 %v1203_v13, 16  ;;  %v1206_v21 = vrot.slane %v7380_v12, 1  ;;  %v1288_v29 = vrot.slane %v1286_v23, 2  ;;  %v1359_v30 = vshll.u32 %v1283_v26, 16  ;;  %v6467_v26 = vld [vmem:[%s8788_s3 + $0x1b8] sm:$0xff]  }
 0x620   :  { %v7390_v20 = vshrl.u32 %v7383_v14, 16  ;;  %v1290_v28 = vshrl.u32 %v7387_v19, 16  ;;  %v1217_v35 = vrot.slane %v7380_v12, 2  ;;  %v1214_v48 = vrot.slane %v7371_v9, 2 }
 0x621   :  { %v1350_v22 = vrot.slane %v1348_v18, 6  ;;  %v1361_v50 = vrot.slane %v1359_v30, 6  ;;  %v1307_v55 = vrot.slane %v1186_v11, 4  ;;  %v1225_v36 = vrot.slane %v7371_v9, 3 }
 0x622   :  { %1196 = vrot.lane.b32.xlu0 %v7390_v20, %s6711_s26  ;;  %v1207_v27 = vrot.slane %v7390_v20, 1  ;;  %v1292_v31 = vrot.slane %v1290_v28, 2  ;;  %v1218_v3 = vrot.slane %v7390_v20, 2  ;;  %v1370_v37 = vshll.u32 %v1298_v32, 16  ;;  %v6469_v32 = vld [vmem:[%s8788_s3 + $0x130] sm:$0xff]  }
 0x623   :  { %1208 = vrot.lane.b32.xlu1 %v1206_v21, %s6711_s26  ;;  %v1426_v25 = vsel %vm7396_vm13, %v1203_v13, %v1350_v22  ;;  %v1392_v38 = vshll.u32 %v1316_v34, 16  ;;  %v7415_v39 = vsel %vm7396_vm13, %v1214_v48, %v1361_v50  ;;  %v1247_v40 = vrot.slane %v7371_v9, 5  ;;  %v6466_v13 = vld [vmem:[%s8788_s3 + $0x138] sm:$0xff]  }
 0x624   :  { %2672 = vmatprep.mubr.bf16.mxu0 %v1426_v25  ;;  %v1381_v41 = vshll.u32 %v1307_v55, 16  ;;  %v1372_v42 = vrot.slane %v1370_v37, 6  ;;  %v1300_v44 = vrot.slane %v1286_v23, 3  ;;  %v1236_v45 = vrot.slane %v7371_v9, 4  ;;  %v6471_v55 = vld [vmem:[%s8788_s3 + $0x1b0] sm:$0xff]   ;;  %v6474_v37 = vld [vmem:[%s8788_s3 + $0x1e8] sm:$0xff]  }
 0x625   :  { %v1394_v43 = vrot.slane %v1392_v38, 6  ;;  %v1301_v51 = vrot.slane %v1290_v28, 3  ;;  %v1309_v58 = vrot.slane %v1286_v23, 4  ;;  %v1228_v47 = vrot.slane %v7380_v12, 3 }
 0x626   :  { %1210 = vrot.lane.b32.xlu0 %v1207_v27, %s6711_s26  ;;  %v1383_v46 = vrot.slane %v1381_v41, 6  ;;  %v7422_v53 = vsel %vm7396_vm13, %v1225_v36, %v1372_v42  ;;  %v1229_v52 = vrot.slane %v7390_v20, 3  ;;  %v1239_v0 = vrot.slane %v7380_v12, 4  ;;  %v6473_v41 = vld [vmem:[%s8788_s3 + $0x128] sm:$0xff]  }
 0x627   :  { %1293 = vrot.lane.b32.xlu1 %v1288_v29, %s6711_s26  ;;  %v7426_v54 = vsel %vm7396_vm13, %v1247_v40, %v1394_v43  ;;  %v1310_v59 = vrot.slane %v1290_v28, 4  ;;  %v1318_v60 = vrot.slane %v1286_v23, 5  ;;  %v1319_v61 = vrot.slane %v1290_v28, 5  ;;  %v6470_v29 = vld [vmem:[%s8788_s3 + $0x1f0] sm:$0xff]   ;;  %v6476_v43 = vld [vmem:[%s8788_s3 + $0x160] sm:$0xff]  }
 0x628   :  { %v7431_v56 = vsel %vm7396_vm13, %v1236_v45, %v1383_v46  ;;  %v1240_v62 = vrot.slane %v7390_v20, 4  ;;  %v1250_v49 = vrot.slane %v7380_v12, 5  ;;  %v1251_v63 = vrot.slane %v7390_v20, 5  ;;  %v6468_v20 = vld [vmem:[%s8788_s3 + $0x170] sm:$0xff]   ;;  %v6478_v45 = vld [vmem:[%s8788_s3 + $0x1e0] sm:$0xff]  }
 0x629   :  { %v1337_v2 = vshll.u32 %v7371_v9, 16  ;;  %v1284_v23 = vrot.slane %v7387_v19, 2  ;;  %v1215_v50 = vrot.slane %v7383_v14, 2  ;;  %v6477_v46 = vld [vmem:[%s8788_s3 + $0x120] sm:$0xff]  }
 0x62a   :  { %1295 = vrot.lane.b32.xlu0 %v1292_v31, %s6711_s26 }
 0x62b   :  { %1219 = vrot.lane.b32.xlu1 %v1217_v35, %s6711_s26  ;;  %v1339_v7 = vrot.slane %v1337_v2, 6  ;;  %v6472_v35 = vld [vmem:[%s8788_s3 + $0x168] sm:$0xff]   ;;  %v1204_v2 = vrot.slane %v7383_v14, 1 }
 0x62d   :  { %v1423_v25 = vsel %vm7396_vm13, %v7371_v9, %v1339_v7  ;;  %v6489_v7 = vld [vmem:[%s8788_s3 + $0x108] sm:$0xff]  }
 0x62e   :  { %1221 = vrot.lane.b32.xlu0 %v1218_v3, %s6711_s26 }
 0x62f   :  { %1302 = vrot.lane.b32.xlu1 %v1300_v44, %s6711_s26  ;;  %v6475_v44 = vld [vmem:[%s8788_s3 + $0x1a8] sm:$0xff]  }
 0x632   :  { %1304 = vrot.lane.b32.xlu0 %v1301_v51, %s6711_s26 }
 0x633   :  { %1311 = vrot.lane.b32.xlu1 %v1309_v58, %s6711_s26  ;;  %v6480_v58 = vld [vmem:[%s8788_s3 + $0x158] sm:$0xff]  }
 0x636   :  { %1230 = vrot.lane.b32.xlu0 %v1228_v47, %s6711_s26  ;;  %v6479_v47 = vld [vmem:[%s8788_s3 + $0x1a0] sm:$0xff]  }
 0x637   :  { %1232 = vrot.lane.b32.xlu1 %v1229_v52, %s6711_s26  ;;  %v6482_v52 = vld [vmem:[%s8788_s3 + $0x1d8] sm:$0xff]  }
 0x63a   :  { %1241 = vrot.lane.b32.xlu0 %v1239_v0, %s6711_s26  ;;  %v6481_v0 = vld [vmem:[%s8788_s3 + $0x118] sm:$0xff]  }
 0x63b   :  { %1313 = vrot.lane.b32.xlu1 %v1310_v59, %s6711_s26  ;;  %v6484_v59 = vld [vmem:[%s8788_s3 + $0x150] sm:$0xff]  }
 0x63e   :  { %1320 = vrot.lane.b32.xlu0 %v1318_v60, %s6711_s26  ;;  %v6483_v60 = vld [vmem:[%s8788_s3 + $0x198] sm:$0xff]  }
 0x63f   :  { %1322 = vrot.lane.b32.xlu1 %v1319_v61, %s6711_s26 }
 0x642   :  { %1243 = vrot.lane.b32.xlu0 %v1240_v62, %s6711_s26 }
 0x643   :  { %1252 = vrot.lane.b32.xlu1 %v1250_v49, %s6711_s26  ;;  %v6486_v49 = vld [vmem:[%s8788_s3 + $0x1d0] sm:$0xff]  }
 0x646   :  { %1254 = vrot.lane.b32.xlu0 %v1251_v63, %s6711_s26  ;;  %v6485_v63 = vld [vmem:[%s8788_s3 + $0x110] sm:$0xff]  }
 0x691   :  { %v1195_v57 = vpop.permute.xlu1 %1194 }
 0x692   :  { %v1259_v4 = vsel %vm70_vm1, %v7383_v14, %v1195_v57 }
 0x693   :  { %v1340_v5 = vshll.u32 %v1259_v4, 16 }
 0x694   :  { %v1197_v6 = vpop.permute.xlu0 %1196 }
 0x695   :  { %v1342_v8 = vrot.slane %v1340_v5, 6  ;;  %v1199_v10 = vsel %vm70_vm1, %v1195_v57, %v1197_v6  ;;  %v7454_v11 = vpop.permute.xlu1 %1208  ;;  %v6488_v57 = vld [vmem:[%s8788_s3 + $0x148] sm:$0xff]  }
 0x696   :  { %v1344_v12 = vshll.u32 %v1199_v10, 16  ;;  %v1263_v5 = vsel %vm70_vm1, %v1204_v2, %v7454_v11  ;;  %v6490_v6 = vld [vmem:[%s8788_s3 + $0x1c8] sm:$0xff]  }
 0x697   :  { %v1424_v18 = vsel %vm7396_vm13, %v1259_v4, %v1342_v8  ;;  %v6487_v4 = vld [vmem:[%s8788_s3 + $0x190] sm:$0xff]   ;;  %v6522_v2 = vld [vmem:[%s8788_s3 + $0x2c8] sm:$0xff]  }
 0x698   :  { %v1346_v21 = vrot.slane %v1344_v12, 6  ;;  %v1211_v22 = vpop.permute.xlu0 %1210  ;;  %2632 = vmatprep.mubr.bf16.mxu1 %v1424_v18  ;;  %v6492_v12 = vld [vmem:[%s8788_s3 + $0x140] sm:$0xff]  }
 0x699   :  { %v1212_v27 = vsel %vm70_vm1, %v7454_v11, %v1211_v22  ;;  %v7473_v28 = vpop.permute.xlu1 %1293  ;;  %2633 = vmatmul.mubr.bf16.vlgmr.msra.gmra.mxu1 %v1423_v25  ;;  %v6491_v11 = vld [vmem:[%s8788_s3 + $0x188] sm:$0xff]   ;;  %v6494_v18 = vld [vmem:[%s8788_s3 + $0x1c0] sm:$0xff]   ;;  %v6496_v22 = vld [vmem:[%s8788_s3 + $0x278] sm:$0xff]  }
 0x69a   :  { %v1355_v30 = vshll.u32 %v1212_v27, 16  ;;  %v1327_v31 = vsel %vm70_vm1, %v1284_v23, %v7473_v28  ;;  %5918 = vmatpush3.bf16.msra.mxu1 %v6466_v13  ;;  %v1425_v9 = vsel %vm7396_vm13, %v1199_v10, %v1346_v21  ;;  %v1351_v13 = vshll.u32 %v1263_v5, 16  ;;  %v6493_v21 = vld [vmem:[%s8788_s3 + $0x100] sm:$0xff]  }
 0x69b   :  { %v1362_v34 = vshll.u32 %v1327_v31, 16  ;;  %2673 = vmatmul.mubr.bf16.vlgmr.msra.gmra.mxu0 %v1425_v9  ;;  %5919 = vmatprep.subr.bf16.mxu1 %v6468_v20  ;;  %v6495_v25 = vld [vmem:[%s8788_s3 + $0x180] sm:$0xff]   ;;  %v6500_v9 = vld [vmem:[%s8788_s3 + $0x270] sm:$0xff]  }
 0x69c   :  { %v1357_v48 = vrot.slane %v1355_v30, 6  ;;  %5940 = vmatpush3.bf16.msra.mxu0 %v6467_v26  ;;  %v7518_v51 = vpop.permute.xlu0 %1295  ;;  %v1353_v23 = vrot.slane %v1351_v13, 6  ;;  %v6497_v30 = vld [vmem:[%s8788_s3 + $0x238] sm:$0xff]   ;;  %v6525_v13 = vld [vmem:[%s8788_s3 + $0x200] sm:$0xff]  }
 0x69d   :  { %v1364_v3 = vrot.slane %v1362_v34, 6  ;;  %v7492_v36 = vpop.permute.xlu1 %1219  ;;  %5941 = vmatprep.subr.bf16.mxu0 %v6470_v29  ;;  %v6498_v29 = vld [vmem:[%s8788_s3 + $0x2f8] sm:$0xff]  }
 0x69e   :  { %v1267_v38 = vsel %vm70_vm1, %v1215_v50, %v7492_v36  ;;  %5920 = vmatpush3.bf16.msra.mxu1 %v6469_v32  ;;  %v1428_v40 = vsel %vm7396_vm13, %v1212_v27, %v1357_v48  ;;  %v1427_v34 = vsel %vm7396_vm13, %v1263_v5, %v1353_v23  ;;  %v6502_v50 = vld [vmem:[%s8788_s3 + $0x2f0] sm:$0xff]   ;;  %v1299_v5 = vrot.slane %v7387_v19, 3  ;;  %v6527_v23 = vld [vmem:[%s8788_s3 + $0x280] sm:$0xff]  }
 0x69f   :  { %2712 = vmatprep.mubr.bf16.mxu1 %v1428_v40  ;;  %5921 = vmatprep.subr.bf16.mxu1 %v6472_v35  ;;  %v1430_v42 = vsel %vm7396_vm13, %v1267_v38, %v1364_v3  ;;  %v6499_v35 = vld [vmem:[%s8788_s3 + $0x2b8] sm:$0xff]   ;;  %v6506_v38 = vld [vmem:[%s8788_s3 + $0x2e8] sm:$0xff]   ;;  %v6508_v40 = vld [vmem:[%s8788_s3 + $0x260] sm:$0xff]  }
 0x6a0   :  { %5942 = vmatpush3.bf16.msra.mxu0 %v6471_v55  ;;  %2752 = vmatprep.mubr.bf16.mxu0 %v1430_v42  ;;  %v7538_v61 = vpop.permute.xlu0 %1221  ;;  %v6501_v55 = vld [vmem:[%s8788_s3 + $0x230] sm:$0xff]   ;;  %v6510_v42 = vld [vmem:[%s8788_s3 + $0x2e0] sm:$0xff]  }
 0x6a1   :  { %5943 = vmatprep.subr.bf16.mxu0 %v6474_v37  ;;  %v7540_v62 = vpop.permute.xlu1 %1302  ;;  %v6504_v37 = vld [vmem:[%s8788_s3 + $0x268] sm:$0xff]  }
 0x6a2   :  { %5922 = vmatpush3.bf16.msra.mxu1 %v6473_v41  ;;  %v6507_v41 = vld [vmem:[%s8788_s3 + $0x2a8] sm:$0xff]  }
 0x6a3   :  { %5923 = vmatprep.subr.bf16.mxu1 %v6476_v43  ;;  %v6509_v43 = vld [vmem:[%s8788_s3 + $0x220] sm:$0xff]  }
 0x6a4   :  { %5944 = vmatpush3.bf16.msra.mxu0 %v6475_v44  ;;  %v1305_v8 = vpop.permute.xlu0 %1304  ;;  %v6512_v44 = vld [vmem:[%s8788_s3 + $0x258] sm:$0xff]  }
 0x6a5   :  { %5945 = vmatprep.subr.bf16.mxu0 %v6478_v45  ;;  %v7563_v10 = vpop.permute.xlu1 %1311  ;;  %v1306_v20 = vsel %vm70_vm1, %v7540_v62, %v1305_v8  ;;  %v6511_v45 = vld [vmem:[%s8788_s3 + $0x2a0] sm:$0xff]   ;;  %v1330_v8 = vsel %vm70_vm1, %v1299_v5, %v7540_v62 }
 0x6a6   :  { %5924 = vmatpush3.bf16.msra.mxu1 %v6477_v46  ;;  %v1377_v26 = vshll.u32 %v1306_v20, 16  ;;  %v6514_v46 = vld [vmem:[%s8788_s3 + $0x2d8] sm:$0xff]   ;;  %v1373_v62 = vshll.u32 %v1330_v8, 16  ;;  %v6556_v5 = vld [vmem:[%s8788_s3 + $0x340] sm:$0xff]  }
 0x6a7   :  { %5925 = vmatprep.subr.bf16.mxu1 %v6480_v58  ;;  %v6513_v58 = vld [vmem:[%s8788_s3 + $0x218] sm:$0xff]   ;;  %v6557_v8 = vld [vmem:[%s8788_s3 + $0x300] sm:$0xff]  }
 0x6a8   :  { %5946 = vmatpush3.bf16.msra.mxu0 %v6479_v47  ;;  %v7591_v31 = vpop.permute.xlu0 %1230  ;;  %v1379_v48 = vrot.slane %v1377_v26, 6  ;;  %v6516_v47 = vld [vmem:[%s8788_s3 + $0x250] sm:$0xff]   ;;  %v6528_v20 = vld [vmem:[%s8788_s3 + $0x378] sm:$0xff]   ;;  %v1226_v26 = vrot.slane %v7383_v14, 3 }
 0x6a9   :  { %5947 = vmatprep.subr.bf16.mxu0 %v6482_v52  ;;  %v1233_v27 = vpop.permute.xlu1 %1232  ;;  %v6515_v52 = vld [vmem:[%s8788_s3 + $0x298] sm:$0xff]  }
 0x6aa   :  { %5926 = vmatpush3.bf16.msra.mxu1 %v6481_v0  ;;  %v1234_v32 = vsel %vm70_vm1, %v7591_v31, %v1233_v27  ;;  %v6518_v0 = vld [vmem:[%s8788_s3 + $0x2d0] sm:$0xff]   ;;  %v6530_v27 = vld [vmem:[%s8788_s3 + $0x3f8] sm:$0xff]  }
 0x6ab   :  { %5927 = vmatprep.subr.bf16.mxu1 %v6484_v59  ;;  %v1434_v3 = vsel %vm7396_vm13, %v1234_v32, %v1379_v48  ;;  %v6517_v59 = vld [vmem:[%s8788_s3 + $0x210] sm:$0xff]   ;;  %v1271_v32 = vsel %vm70_vm1, %v1226_v26, %v7591_v31 }
 0x6ac   :  { %5948 = vmatpush3.bf16.msra.mxu0 %v6483_v60  ;;  %v6520_v60 = vld [vmem:[%s8788_s3 + $0x248] sm:$0xff]   ;;  %v6534_v31 = vld [vmem:[%s8788_s3 + $0x3f0] sm:$0xff]  }
 0x6ad   :  { %5949 = vmatprep.subr.bf16.mxu0 %v6486_v49  ;;  %v6519_v49 = vld [vmem:[%s8788_s3 + $0x290] sm:$0xff]  }
 0x6ae   :  { %5928 = vmatpush3.bf16.msra.mxu1 %v6485_v63  ;;  %v1297_v63 = vsel %vm70_vm1, %v7473_v28, %v7518_v51  ;;  %v6562_v26 = vld [vmem:[%s8788_s3 + $0x470] sm:$0xff]  }
 0x6af   :  { %5929 = vmatprep.subr.bf16.mxu1 %v6488_v57  ;;  %v1308_v57 = vrot.slane %v7387_v19, 4  ;;  %v1366_v28 = vshll.u32 %v1297_v63, 16 }
 0x6b0   :  { %5950 = vmatpush3.bf16.msra.mxu0 %v6487_v4  ;;  %v6521_v4 = vld [vmem:[%s8788_s3 + $0x208] sm:$0xff]  }
 0x6b1   :  { %5951 = vmatprep.subr.bf16.mxu0 %v6490_v6  ;;  %v6524_v6 = vld [vmem:[%s8788_s3 + $0x240] sm:$0xff]   ;;  %v1333_v51 = vsel %vm70_vm1, %v1308_v57, %v7563_v10  ;;  %v6554_v57 = vld [vmem:[%s8788_s3 + $0x3c8] sm:$0xff]  }
 0x6b2   :  { %5930 = vmatpush3.bf16.msra.mxu1 %v6489_v7  ;;  %v6523_v7 = vld [vmem:[%s8788_s3 + $0x288] sm:$0xff]  }
 0x6b3   :  { %5931 = vmatprep.subr.bf16.mxu1 %v6492_v12  ;;  %v6526_v12 = vld [vmem:[%s8788_s3 + $0x2c0] sm:$0xff]  }
 0x6b4   :  { %5952 = vmatpush3.bf16.msra.mxu0 %v6491_v11  ;;  %v1384_v11 = vshll.u32 %v1333_v51, 16 }
 0x6b5   :  { %5953 = vmatprep.subr.bf16.mxu0 %v6494_v18  ;;  %v7694_v18 = vpop.permute.xlu0 %1241 }
 0x6b6   :  { %5932 = vmatpush3.bf16.msra.mxu1 %v6493_v21  ;;  %v1368_v21 = vrot.slane %v1366_v28, 6  ;;  %v6555_v28 = vld [vmem:[%s8788_s3 + $0x388] sm:$0xff]  }
 0x6b7   :  { %5961 = vmatprep.subr.bf16.mxu1 %v6496_v22  ;;  %v1237_v22 = vrot.slane %v7383_v14, 4 }
 0x6b8   :  { %5954 = vmatpush3.bf16.msra.mxu0 %v6495_v25  ;;  %v1223_v25 = vsel %vm70_vm1, %v7492_v36, %v7538_v61  ;;  %v6532_v36 = vld [vmem:[%s8788_s3 + $0x370] sm:$0xff]   ;;  %v1375_v61 = vrot.slane %v1373_v62, 6 }
 0x6b9   :  { %2713 = vmatmul.mubr.bf16.vlgmr.msra.gmra.mxu1 %v1427_v34  ;;  %5983 = vmatprep.subr.bf16.mxu0 %v6498_v29  ;;  %v1275_v29 = vsel %vm70_vm1, %v1237_v22, %v7694_v18  ;;  %v1431_v34 = vsel %vm7396_vm13, %v1223_v25, %v1368_v21  ;;  %v6561_v22 = vld [vmem:[%s8788_s3 + $0x438] sm:$0xff]  }
 0x6ba   :  { %5962 = vmatpush3.bf16.msra.mxu1 %v6497_v30  ;;  %2792 = vmatprep.mubr.bf16.mxu1 %v7422_v53  ;;  %v6503_v53 = vld [vmem:[%s8788_s3 + $0x2b0] sm:$0xff]   ;;  %v6529_v30 = vld [vmem:[%s8788_s3 + $0x338] sm:$0xff]  }
 0x6bb   :  { %2753 = vmatmul.mubr.bf16.vlgmr.msra.gmra.mxu0 %v7415_v39  ;;  %5963 = vmatprep.subr.bf16.mxu1 %v6500_v9  ;;  %v6505_v39 = vld [vmem:[%s8788_s3 + $0x228] sm:$0xff]   ;;  %v1386_v9 = vrot.slane %v1384_v11, 6  ;;  %v6560_v11 = vld [vmem:[%s8788_s3 + $0x478] sm:$0xff]  }
 0x6bc   :  { %5984 = vmatpush3.bf16.msra.mxu0 %v6499_v35  ;;  %2832 = vmatprep.mubr.bf16.mxu0 %v1434_v3  ;;  %v6531_v35 = vld [vmem:[%s8788_s3 + $0x3b8] sm:$0xff]   ;;  %v6536_v3 = vld [vmem:[%s8788_s3 + $0x368] sm:$0xff]  }
 0x6bd   :  { %5985 = vmatprep.subr.bf16.mxu0 %v6502_v50  ;;  %v1436_v48 = vsel %vm7396_vm13, %v1275_v29, %v1386_v9  ;;  %v1433_v50 = vsel %vm7396_vm13, %v1271_v32, %v1375_v61  ;;  %v6564_v9 = vld [vmem:[%s8788_s3 + $0x468] sm:$0xff]   ;;  %v6566_v32 = vld [vmem:[%s8788_s3 + $0x460] sm:$0xff]   ;;  %v6568_v61 = vld [vmem:[%s8788_s3 + $0x458] sm:$0xff]  }
 0x6be   :  { %5964 = vmatpush3.bf16.msra.mxu1 %v6501_v55  ;;  %v6533_v55 = vld [vmem:[%s8788_s3 + $0x330] sm:$0xff]  }
 0x6bf   :  { %5965 = vmatprep.subr.bf16.mxu1 %v6504_v37  ;;  %v6535_v37 = vld [vmem:[%s8788_s3 + $0x3b0] sm:$0xff]  }
 0x6c0   :  { %5986 = vmatpush3.bf16.msra.mxu0 %v6503_v53  ;;  %v6538_v53 = vld [vmem:[%s8788_s3 + $0x3e8] sm:$0xff]  }
 0x6c1   :  { %5987 = vmatprep.subr.bf16.mxu0 %v6506_v38  ;;  %v6537_v38 = vld [vmem:[%s8788_s3 + $0x328] sm:$0xff]  }
 0x6c2   :  { %5966 = vmatpush3.bf16.msra.mxu1 %v6505_v39  ;;  %v6540_v39 = vld [vmem:[%s8788_s3 + $0x360] sm:$0xff]  }
 0x6c3   :  { %5967 = vmatprep.subr.bf16.mxu1 %v6508_v40  ;;  %v6542_v40 = vld [vmem:[%s8788_s3 + $0x3e0] sm:$0xff]  }
 0x6c4   :  { %5988 = vmatpush3.bf16.msra.mxu0 %v6507_v41  ;;  %v6541_v41 = vld [vmem:[%s8788_s3 + $0x320] sm:$0xff]  }
 0x6c5   :  { %5989 = vmatprep.subr.bf16.mxu0 %v6510_v42  ;;  %v6544_v42 = vld [vmem:[%s8788_s3 + $0x358] sm:$0xff]  }
 0x6c6   :  { %5968 = vmatpush3.bf16.msra.mxu1 %v6509_v43  ;;  %v6543_v43 = vld [vmem:[%s8788_s3 + $0x3a0] sm:$0xff]  }
 0x6c7   :  { %5969 = vmatprep.subr.bf16.mxu1 %v6512_v44  ;;  %v6546_v44 = vld [vmem:[%s8788_s3 + $0x3d8] sm:$0xff]  }
 0x6c8   :  { %5990 = vmatpush3.bf16.msra.mxu0 %v6511_v45  ;;  %v6545_v45 = vld [vmem:[%s8788_s3 + $0x318] sm:$0xff]  }
 0x6c9   :  { %5991 = vmatprep.subr.bf16.mxu0 %v6514_v46  ;;  %v1314_v46 = vpop.permute.xlu1 %1313 }
 0x6ca   :  { %5970 = vmatpush3.bf16.msra.mxu1 %v6513_v58  ;;  %v7772_v58 = vpop.permute.xlu0 %1320  ;;  %v1315_v51 = vsel %vm70_vm1, %v7563_v10, %v1314_v46  ;;  %v6559_v10 = vld [vmem:[%s8788_s3 + $0x380] sm:$0xff]  }
 0x6cb   :  { %5971 = vmatprep.subr.bf16.mxu1 %v6516_v47  ;;  %v6548_v47 = vld [vmem:[%s8788_s3 + $0x350] sm:$0xff]  }
 0x6cc   :  { %5992 = vmatpush3.bf16.msra.mxu0 %v6515_v52  ;;  %v6547_v52 = vld [vmem:[%s8788_s3 + $0x398] sm:$0xff]  }
 0x6cd   :  { %5993 = vmatprep.subr.bf16.mxu0 %v6518_v0  ;;  %v6550_v0 = vld [vmem:[%s8788_s3 + $0x3d0] sm:$0xff]   ;;  %v1323_v63 = vpop.permute.xlu1 %1322 }
 0x6ce   :  { %5972 = vmatpush3.bf16.msra.mxu1 %v6517_v59  ;;  %v6549_v59 = vld [vmem:[%s8788_s3 + $0x310] sm:$0xff]  }
 0x6cf   :  { %5973 = vmatprep.subr.bf16.mxu1 %v6520_v60  ;;  %v6552_v60 = vld [vmem:[%s8788_s3 + $0x348] sm:$0xff]  }
 0x6d0   :  { %5994 = vmatpush3.bf16.msra.mxu0 %v6519_v49  ;;  %v6551_v49 = vld [vmem:[%s8788_s3 + $0x390] sm:$0xff]  }
 0x6d1   :  { %5995 = vmatprep.subr.bf16.mxu0 %v6522_v2  ;;  %v1244_v2 = vpop.permute.xlu0 %1243  ;;  %v1253_v21 = vpop.permute.xlu1 %1252 }
 0x6d2   :  { %5974 = vmatpush3.bf16.msra.mxu1 %v6521_v4  ;;  %v6553_v4 = vld [vmem:[%s8788_s3 + $0x308] sm:$0xff]   ;;  %v1245_v25 = vsel %vm70_vm1, %v7694_v18, %v1244_v2  ;;  %v6563_v18 = vld [vmem:[%s8788_s3 + $0x430] sm:$0xff]  }
 0x6d3   :  { %5975 = vmatprep.subr.bf16.mxu1 %v6524_v6  ;;  %v1324_v6 = vsel %vm70_vm1, %v7772_v58, %v1323_v63  ;;  %v6579_v63 = vld [vmem:[%s8790_s5 + $0xb0] ss:$72 sps:$4 sm:$0xff]   ;;  %v6581_v2 = vld [vmem:[%s8790_s5 + $0xb4] ss:$72 sps:$4 sm:$0xff]  }
 0x6d4   :  { %5996 = vmatpush3.bf16.msra.mxu0 %v6523_v7  ;;  %v6558_v7 = vld [vmem:[%s8788_s3 + $0x3c0] sm:$0xff]  }
 0x6d5   :  { %5997 = vmatprep.subr.bf16.mxu0 %v6526_v12  ;;  %v1399_v12 = vshll.u32 %v1324_v6, 16  ;;  %v6587_v6 = vld [vmem:[%s8790_s5 + $0x24] ss:$72 sps:$4 sm:$0xff]  }
 0x6d6   :  { %5976 = vmatpush3.bf16.msra.mxu1 %v6525_v13  ;;  %v1255_v13 = vpop.permute.xlu0 %1254 }
 0x6d7   :  { %6005 = vmatprep.subr.bf16.mxu1 %v6528_v20  ;;  %v1388_v20 = vshll.u32 %v1315_v51, 16  ;;  %v1256_v62 = vsel %vm70_vm1, %v1253_v21, %v1255_v13  ;;  %v6593_v51 = vld [vmem:[%s8790_s5 + $0xc4] ss:$72 sps:$4 sm:$0xff]  }
 0x6d8   :  { %5998 = vmatpush3.bf16.msra.mxu0 %v6527_v23  ;;  %v1401_v23 = vrot.slane %v1399_v12, 6 }
 0x6d9   :  { %2793 = vmatmul.mubr.bf16.vlgmr.msra.gmra.mxu1 %v1431_v34  ;;  %6027 = vmatprep.subr.bf16.mxu0 %v6530_v27  ;;  %v1390_v27 = vrot.slane %v1388_v20, 6  ;;  %v6569_v34 = vld [vmem:[%s8788_s3 + $0x418] sm:$0xff]  }
 0x6da   :  { %6006 = vmatpush3.bf16.msra.mxu1 %v6529_v30  ;;  %2872 = vmatprep.mubr.bf16.mxu1 %v1436_v48  ;;  %v1440_v29 = vsel %vm7396_vm13, %v1256_v62, %v1401_v23  ;;  %v6571_v48 = vld [vmem:[%s8788_s3 + $0x410] sm:$0xff]  }
 0x6db   :  { %2833 = vmatmul.mubr.bf16.vlgmr.msra.gmra.mxu0 %v1433_v50  ;;  %6007 = vmatprep.subr.bf16.mxu1 %v6532_v36  ;;  %v1437_v30 = vsel %vm7396_vm13, %v1245_v25, %v1390_v27  ;;  %v6567_v36 = vld [vmem:[%s8788_s3 + $0x420] sm:$0xff]   ;;  %v1317_v50 = vrot.slane %v7387_v19, 5  ;;  %v1248_v19 = vrot.slane %v7383_v14, 5 }
 0x6dc   :  { %6028 = vmatpush3.bf16.msra.mxu0 %v6531_v35  ;;  %2912 = vmatprep.mubr.bf16.mxu0 %v7426_v54  ;;  %v6539_v54 = vld [vmem:[%s8788_s3 + $0x3a8] sm:$0xff]   ;;  %v6570_v35 = vld [vmem:[%s8788_s3 + $0x450] sm:$0xff]  }
 0x6dd   :  { %6029 = vmatprep.subr.bf16.mxu0 %v6534_v31  ;;  %v6572_v31 = vld [vmem:[%s8788_s3 + $0x448] sm:$0xff]  }
 0x6de   :  { %6008 = vmatpush3.bf16.msra.mxu1 %v6533_v55  ;;  %v6573_v55 = vld [vmem:[%s8788_s3 + $0x408] sm:$0xff]  }
 0x6df   :  { %6009 = vmatprep.subr.bf16.mxu1 %v6536_v3  ;;  %v1336_v3 = vsel %vm70_vm1, %v1317_v50, %v7772_v58 }
 0x6e0   :  { %6030 = vmatpush3.bf16.msra.mxu0 %v6535_v37  ;;  %v6574_v37 = vld [vmem:[%s8788_s3 + $0x440] sm:$0xff]  }
 0x6e1   :  { %6031 = vmatprep.subr.bf16.mxu0 %v6538_v53  ;;  %v1395_v53 = vshll.u32 %v1336_v3, 16 }
 0x6e2   :  { %6010 = vmatpush3.bf16.msra.mxu1 %v6537_v38  ;;  %v6575_v38 = vld [vmem:[%s8788_s3 + $0x400] sm:$0xff]  }
 0x6e3   :  { %6011 = vmatprep.subr.bf16.mxu1 %v6540_v39  ;;  %v1279_v39 = vsel %vm70_vm1, %v1248_v19, %v1253_v21 }
 0x6e4   :  { %6032 = vmatpush3.bf16.msra.mxu0 %v6539_v54  ;;  %v1397_v54 = vrot.slane %v1395_v53, 6 }
 0x6e5   :  { %6033 = vmatprep.subr.bf16.mxu0 %v6542_v40 }
 0x6e6   :  { %6012 = vmatpush3.bf16.msra.mxu1 %v6541_v41  ;;  %v1439_v40 = vsel %vm7396_vm13, %v1279_v39, %v1397_v54  ;;  %vm3818_vm13 = vcmask 1042432  }
 0x6e7   :  { %6013 = vmatprep.subr.bf16.mxu1 %v6544_v42 }
 0x6e8   :  { %6034 = vmatpush3.bf16.msra.mxu0 %v6543_v43  ;;  %v5600_v43 = vld [vmem:[%s8789_s4] ss:$0 sm:$0xff] }
 0x6e9   :  { %6035 = vmatprep.subr.bf16.mxu0 %v6546_v44 }
 0x6ea   :  { %6014 = vmatpush3.bf16.msra.mxu1 %v6545_v45 }
 0x6eb   :  { %6015 = vmatprep.subr.bf16.mxu1 %v6548_v47 }
 0x6ec   :  { %6036 = vmatpush3.bf16.msra.mxu0 %v6547_v52 }
 0x6ed   :  { %6037 = vmatprep.subr.bf16.mxu0 %v6550_v0 }
 0x6ee   :  { %6016 = vmatpush3.bf16.msra.mxu1 %v6549_v59 }
 0x6ef   :  { %6017 = vmatprep.subr.bf16.mxu1 %v6552_v60  ;;  %v6576_v60 = vld [vmem:[%s8790_s5 + $0x90] ss:$72 sps:$4 sm:$0xff]  }
 0x6f0   :  { %6038 = vmatpush3.bf16.msra.mxu0 %v6551_v49  ;;  %v6578_v49 = vld [vmem:[%s8790_s5 + $0x94] ss:$72 sps:$4 sm:$0xff]  }
 0x6f1   :  { %6039 = vmatprep.subr.bf16.mxu0 %v6554_v57  ;;  %v6582_v57 = vld [vmem:[%s8790_s5] ss:$72 sps:$4 sm:$0xff]  }
 0x6f2   :  { %6018 = vmatpush3.bf16.msra.mxu1 %v6553_v4  ;;  %v6584_v4 = vld [vmem:[%s8790_s5 + $0x4] ss:$72 sps:$4 sm:$0xff]  }
 0x6f3   :  { %6019 = vmatprep.subr.bf16.mxu1 %v6556_v5  ;;  %v6585_v5 = vld [vmem:[%s8790_s5 + $0x20] ss:$72 sps:$4 sm:$0xff]  }
 0x6f4   :  { %6040 = vmatpush3.bf16.msra.mxu0 %v6555_v28  ;;  %v6590_v28 = vld [vmem:[%s8790_s5 + $0x9c] ss:$72 sps:$4 sm:$0xff]  }
 0x6f5   :  { %6041 = vmatprep.subr.bf16.mxu0 %v6558_v7 }
 0x6f6   :  { %6020 = vmatpush3.bf16.msra.mxu1 %v6557_v8 }
 0x6f7   :  { %6049 = vmatprep.subr.bf16.mxu1 %v6560_v11 }
 0x6f8   :  { %6042 = vmatpush3.bf16.msra.mxu0 %v6559_v10 }
 0x6f9   :  { %2873 = vmatmul.mubr.bf16.vlgmr.msra.gmra.mxu1 %v7431_v56  ;;  %v6565_v56 = vld [vmem:[%s8788_s3 + $0x428] sm:$0xff]   ;;  %3290 = vmatprep.subr.bf16.mxu0 %v6578_v49 }
 0x6fa   :  { %6050 = vmatpush3.bf16.msra.mxu1 %v6561_v22  ;;  %2952 = vmatprep.mubr.bf16.mxu1 %v1440_v29  ;;  %v6602_v49 = vld [vmem:[%s8790_s5 + $0xa4] ss:$72 sps:$4 sm:$0xff]  }
 0x6fb   :  { %2913 = vmatmul.mubr.bf16.vlgmr.msra.gmra.mxu0 %v1437_v30  ;;  %6051 = vmatprep.subr.bf16.mxu1 %v6562_v26 }
 0x6fc   :  { %3310 = vmatprep.mubr.bf16.mxu0 %v6710_v1  ;;  %3291 = vmatpush1.bf16.msra.mxu0 %v6576_v60  ;;  %v6597_v60 = vld [vmem:[%s8790_s5 + $0x30] ss:$72 sps:$4 sm:$0xff]  }
 0x6fd   :  { %3292 = vmatprep.subr.bf16.mxu0 %v6584_v4  ;;  %v6608_v4 = vld [vmem:[%s8790_s5 + $0x14] ss:$72 sps:$4 sm:$0xff]  }
 0x6fe   :  { %6052 = vmatpush3.bf16.msra.mxu1 %v6563_v18 }
 0x6ff   :  { %6053 = vmatprep.subr.bf16.mxu1 %v6564_v9 }
 0x700   :  { %3293 = vmatpush1.bf16.msra.mxu0 %v6582_v57  ;;  %v6603_v57 = vld [vmem:[%s8790_s5 + $0xd0] ss:$72 sps:$4 sm:$0xff]  }
 0x701   :  { %3331 = vmatprep.subr.bf16.mxu0 %v6590_v28  ;;  %v6609_v28 = vld [vmem:[%s8790_s5 + $0x40] ss:$72 sps:$4 sm:$0xff]  }
 0x702   :  { %6054 = vmatpush3.bf16.msra.mxu1 %v6565_v56 }
 0x703   :  { %6055 = vmatprep.subr.bf16.mxu1 %v6566_v32 }
 0x706   :  { %6056 = vmatpush3.bf16.msra.mxu1 %v6567_v36 }
 0x707   :  { %6057 = vmatprep.subr.bf16.mxu1 %v6568_v61 }
 0x70a   :  { %6058 = vmatpush3.bf16.msra.mxu1 %v6569_v34 }
 0x70b   :  { %6059 = vmatprep.subr.bf16.mxu1 %v6570_v35 }
 0x70e   :  { %6060 = vmatpush3.bf16.msra.mxu1 %v6571_v48 }
 0x70f   :  { %6061 = vmatprep.subr.bf16.mxu1 %v6572_v31 }
 0x712   :  { %6062 = vmatpush3.bf16.msra.mxu1 %v6573_v55 }
 0x713   :  { %6063 = vmatprep.subr.bf16.mxu1 %v6574_v37 }
 0x716   :  { %6064 = vmatpush3.bf16.msra.mxu1 %v6575_v38 }
 0x717   :  { %3454 = vmatprep.subr.bf16.mxu1 %v6581_v2  ;;  %v6600_v2 = vld [vmem:[%s8790_s5 + $0xa0] ss:$72 sps:$4 sm:$0xff]  }
 0x719   :  { %2953 = vmatmul.mubr.bf16.vlgmr.msra.gmra.mxu1 %v1439_v40 }
 0x71a   :  { %3474 = vmatprep.mubr.bf16.mxu1 %v6710_v1  ;;  %3455 = vmatpush1.bf16.msra.mxu1 %v6579_v63  ;;  %v6605_v63 = vld [vmem:[%s8790_s5 + $0xd4] ss:$72 sps:$4 sm:$0xff]  }
 0x71b   :  { %3456 = vmatprep.subr.bf16.mxu1 %v6587_v6  ;;  %v6606_v6 = vld [vmem:[%s8790_s5 + $0x10] ss:$72 sps:$4 sm:$0xff]  }
 0x71e   :  { %3457 = vmatpush1.bf16.msra.mxu1 %v6585_v5  ;;  %v6611_v5 = vld [vmem:[%s8790_s5 + $0x44] ss:$72 sps:$4 sm:$0xff]  }
 0x71f   :  { %3536 = vmatprep.subr.bf16.mxu1 %v6593_v51  ;;  %v6614_v51 = vld [vmem:[%s8790_s5 + $0xac] ss:$72 sps:$4 sm:$0xff]  }
 0x759   :  { %v5889_v41 = vpop.f32.mrf.mxu1 }
 0x75b   :  { %v5911_v42 = vpop.f32.mrf.mxu0  ;;  %v5890_v44 = vpop.f32.mrf.mxu1 }
 0x75c   :  { %v5891_v45 = vadd.f32 %v5890_v44, %v5889_v41 }
 0x75d   :  { %v5912_v14 = vpop.f32.mrf.mxu0  ;;  %v5892_v46 = vpop.f32.mrf.mxu1 }
 0x75e   :  { %v2635_v58 = vadd.f32 %v5891_v45, %v5600_v43  ;;  %v5913_v47 = vadd.f32 %v5912_v14, %v5911_v42 }
 0x75f   :  { %v5914_v52 = vpop.f32.mrf.mxu0  ;;  %v5893_v0 = vpop.f32.mrf.mxu1 }
 0x760   :  { %v2675_v59 = vadd.f32 %v5913_v47, %v2635_v58  ;;  %v6588_v58 = vld [vmem:[%s8790_s5 + $0x98] ss:$72 sps:$4 sm:$0xff]   ;;  %v6596_v0 = vld [vmem:[%s8790_s5 + $0xc] ss:$72 sps:$4 sm:$0xff]  }
 0x761   :  { %v5915_v24 = vpop.f32.mrf.mxu0  ;;  %v6591_v47 = vld [vmem:[%s8790_s5 + $0xc0] ss:$72 sps:$4 sm:$0xff]  }
 0x762   :  { %v6594_v24 = vld [vmem:[%s8790_s5 + $0x8] ss:$72 sps:$4 sm:$0xff]  }
 0x779   :  { %v5933_v7 = vpop.f32.mrf.mxu1 }
 0x77b   :  { %v5955_v8 = vpop.f32.mrf.mxu0  ;;  %v5934_v12 = vpop.f32.mrf.mxu1 }
 0x77c   :  { %v5935_v13 = vadd.f32 %v5934_v12, %v5933_v7  ;;  %v6612_v7 = vld [vmem:[%s8790_s5 + $0xa8] ss:$72 sps:$4 sm:$0xff]   ;;  %v6615_v12 = vld [vmem:[%s8790_s5 + $0x18] ss:$72 sps:$4 sm:$0xff]  }
 0x77d   :  { %v5956_v11 = vpop.f32.mrf.mxu0  ;;  %v5936_v20 = vpop.f32.mrf.mxu1 }
 0x77e   :  { %v2715_v10 = vadd.f32 %v5935_v13, %v2675_v59  ;;  %v5957_v21 = vadd.f32 %v5956_v11, %v5955_v8  ;;  %v6599_v59 = vld [vmem:[%s8790_s5 + $0x34] ss:$72 sps:$4 sm:$0xff]   ;;  %v6618_v11 = vld [vmem:[%s8790_s5 + $0xb8] ss:$72 sps:$4 sm:$0xff]  }
 0x77f   :  { %v5958_v62 = vpop.f32.mrf.mxu0  ;;  %v5937_v22 = vpop.f32.mrf.mxu1  ;;  %v6617_v8 = vld [vmem:[%s8790_s5 + $0x1c] ss:$72 sps:$4 sm:$0xff]   ;;  %v6623_v20 = vld [vmem:[%s8790_s5 + $0x2c] ss:$72 sps:$4 sm:$0xff]  }
 0x780   :  { %v2755_v23 = vadd.f32 %v5957_v21, %v2715_v10  ;;  %v6620_v13 = vld [vmem:[%s8790_s5 + $0xbc] ss:$72 sps:$4 sm:$0xff]   ;;  %v6621_v10 = vld [vmem:[%s8790_s5 + $0x28] ss:$72 sps:$4 sm:$0xff]   ;;  %v6626_v21 = vld [vmem:[%s8790_s5 + $0xcc] ss:$72 sps:$4 sm:$0xff]  }
 0x781   :  { %v5959_v25 = vpop.f32.mrf.mxu0  ;;  %v6624_v62 = vld [vmem:[%s8790_s5 + $0xc8] ss:$72 sps:$4 sm:$0xff]   ;;  %v6629_v22 = vld [vmem:[%s8790_s5 + $0x3c] ss:$72 sps:$4 sm:$0xff]  }
 0x782   :  { %v3022_v25 = vsub.s32 4, %v7058_v15 }
 0x799   :  { %v5977_v26 = vpop.f32.mrf.mxu1 }
 0x79b   :  { %v5999_v27 = vpop.f32.mrf.mxu0  ;;  %v5978_v29 = vpop.f32.mrf.mxu1 }
 0x79c   :  { %v5979_v3 = vadd.f32 %v5978_v29, %v5977_v26  ;;  %v8024_v26 = vld [vmem:[%s8791_s6 + $0x8] sm:$0xff]  ;;  %v3034_v29 = vsub.s32 7, %v7058_v15 }
 0x79d   :  { %v6000_v30 = vpop.f32.mrf.mxu0  ;;  %v5980_v18 = vpop.f32.mrf.mxu1 }
 0x79e   :  { %v2795_v37 = vadd.f32 %v5979_v3, %v2755_v23  ;;  %v6001_v53 = vadd.f32 %v6000_v30, %v5999_v27  ;;  %v6627_v23 = vld [vmem:[%s8790_s5 + $0x38] ss:$72 sps:$4 sm:$0xff]   ;;  %v3055_v27 = vrot.slane %v8024_v26, %v3022_v25  ;;  %v8031_v30 = vrot.slane %v8024_v26, %v3034_v29 }
 0x79f   :  { %v6002_v9 = vpop.f32.mrf.mxu0  ;;  %v5981_v56 = vpop.f32.mrf.mxu1  ;;  %v3039_v18 = vrot.slane %v8024_v26, %v7061_v16 }
 0x7a0   :  { %v2835_v19 = vadd.f32 %v6001_v53, %v2795_v37  ;;  %v8038_v9 = vld [vmem:[%s8791_s6] sm:$0xff]  ;;  %v3018_v37 = vsub.s32 3, %v7058_v15 }
 0x7a1   :  { %v6003_v32 = vpop.f32.mrf.mxu0  ;;  %v3011_v56 = vrot.slane %v8038_v9, %v7064_v17 }
 0x7a2   :  { %v3043_v32 = vrot.slane %v8024_v26, %v7064_v17 }
 0x7b9   :  { %v6021_v36 = vpop.f32.mrf.mxu1 }
 0x7bb   :  { %v6043_v61 = vpop.f32.mrf.mxu0  ;;  %v6022_v34 = vpop.f32.mrf.mxu1 }
 0x7bc   :  { %v6023_v38 = vadd.f32 %v6022_v34, %v6021_v36 }
 0x7bd   :  { %v6044_v35 = vpop.f32.mrf.mxu0  ;;  %v6024_v48 = vpop.f32.mrf.mxu1 }
 0x7be   :  { %v2875_v39 = vadd.f32 %v6023_v38, %v2835_v19  ;;  %v6045_v54 = vadd.f32 %v6044_v35, %v6043_v61  ;;  %v3014_v35 = vsub.s32 2, %v7058_v15  ;;  %v3026_v19 = vsub.s32 5, %v7058_v15 }
 0x7bf   :  { %v6046_v31 = vpop.f32.mrf.mxu0  ;;  %v6025_v50 = vpop.f32.mrf.mxu1 }
 0x7c0   :  { %v2915_v42 = vadd.f32 %v6045_v54, %v2875_v39 }
 0x7c1   :  { %v6047_v55 = vpop.f32.mrf.mxu0 }
 0x7d9   :  { %v6065_v40 = vpop.f32.mrf.mxu1 }
 0x7db   :  { %v6066_v41 = vpop.f32.mrf.mxu1 }
 0x7dc   :  { %v6067_v43 = vadd.f32 %v6066_v41, %v6065_v40  ;;  %v3015_v40 = vrot.slane %v8038_v9, %v3014_v35 }
 0x7dd   :  { %v6068_v44 = vpop.f32.mrf.mxu1 }
 0x7de   :  { %v2955_v45 = vadd.f32 %v6067_v43, %v2915_v42  ;;  %v3019_v44 = vrot.slane %v8038_v9, %v3018_v37 }
 0x7df   :  { %v6069_v14 = vpop.f32.mrf.mxu1 }
 0x7e0   :  { %v2960_v46 = vmax.f32 %v2955_v45, 0.0 }
 0x7e2   :  { %v7921_v52 = vpack.c.bf16 %v2960_v46, %v2960_v46 }
 0x7e4   :  { %5781 = vmatmul.mubr.msk.bf16.vlgmr.msra.gmra.mxu0 %vm3274_vm14, %v7921_v52  ;;  %5785 = vmatmul.mubr.msk.bf16.vlgmr.msra.gmra.mxu1 %vm3274_vm14, %v7921_v52 }
 0x7e5   :  { %3332 = vmatpush1.bf16.msra.mxu0 %v6588_v58  ;;  %3537 = vmatpush1.bf16.msra.mxu1 %v6591_v47  ;;  %v3059_v58 = vrot.slane %v8024_v26, %v3026_v19 }
 0x7e6   :  { %3333 = vmatprep.subr.bf16.mxu0 %v6596_v0  ;;  %3538 = vmatprep.subr.bf16.mxu1 %v6599_v59 }
 0x7e7   :  { %3351 = vmatprep.mubr.bf16.mxu0 %v6710_v1  ;;  %3556 = vmatprep.mubr.bf16.mxu1 %v6710_v1 }
 0x7e9   :  { %3334 = vmatpush1.bf16.msra.mxu0 %v6594_v24  ;;  %3539 = vmatpush1.bf16.msra.mxu1 %v6597_v60 }
 0x7ea   :  { %3372 = vmatprep.subr.bf16.mxu0 %v6602_v49  ;;  %3618 = vmatprep.subr.bf16.mxu1 %v6605_v63 }
 0x7ec   :  { %5782 = vmatmul.mubr.msk.bf16.vlgmr.msra.gmra.mxu0 %vm3274_vm14, %v7921_v52  ;;  %5787 = vmatmul.mubr.msk.bf16.vlgmr.msra.gmra.mxu1 %vm3274_vm14, %v7921_v52 }
 0x7ed   :  { %3373 = vmatpush1.bf16.msra.mxu0 %v6600_v2  ;;  %3619 = vmatpush1.bf16.msra.mxu1 %v6603_v57 }
 0x7ee   :  { %3374 = vmatprep.subr.bf16.mxu0 %v6608_v4  ;;  %3620 = vmatprep.subr.bf16.mxu1 %v6611_v5  ;;  %v8072_v4 = vld [vmem:[%s8791_s6 + $0x10] sm:$0x3] }
 0x7ef   :  { %3392 = vmatprep.mubr.bf16.mxu0 %v6710_v1  ;;  %3638 = vmatprep.mubr.bf16.mxu1 %v6710_v1 }
 0x7f1   :  { %3375 = vmatpush1.bf16.msra.mxu0 %v6606_v6  ;;  %3621 = vmatpush1.bf16.msra.mxu1 %v6609_v28 }
 0x7f2   :  { %3413 = vmatprep.subr.bf16.mxu0 %v6614_v51 }
 0x7f4   :  { %5783 = vmatmul.mubr.msk.bf16.vlgmr.msra.gmra.mxu0 %vm3274_vm14, %v7921_v52  ;;  %5789 = vmatmul.mubr.msk.bf16.vlgmr.msra.gmra.mxu1 %vm3274_vm14, %v7921_v52 }
 0x7f5   :  { %3414 = vmatpush1.bf16.msra.mxu0 %v6612_v7  ;;  %3433 = vmatprep.mubr.bf16.mxu0 %v6710_v1  ;;  %v3023_v7 = vrot.slane %v8038_v9, %v3022_v25 }
 0x7f6   :  { %3415 = vmatprep.subr.bf16.mxu0 %v6617_v8 }
 0x7f9   :  { %3416 = vmatpush1.bf16.msra.mxu0 %v6615_v12 }
 0x7fa   :  { %3495 = vmatprep.subr.bf16.mxu0 %v6620_v13  ;;  %v3071_v13 = vrot.slane %v8072_v4, %v7061_v16 }
 0x7fc   :  { %5784 = vmatmul.mubr.msk.bf16.vlgmr.msra.gmra.mxu0 %vm3274_vm14, %v7921_v52 }
 0x7fd   :  { %3496 = vmatpush1.bf16.msra.mxu0 %v6618_v11  ;;  %3515 = vmatprep.mubr.bf16.mxu0 %v6710_v1  ;;  %v3027_v11 = vrot.slane %v8038_v9, %v3026_v19 }
 0x7fe   :  { %3497 = vmatprep.subr.bf16.mxu0 %v6623_v20 }
 0x801   :  { %3498 = vmatpush1.bf16.msra.mxu0 %v6621_v10 }
 0x802   :  { %3577 = vmatprep.subr.bf16.mxu0 %v6626_v21 }
 0x804   :  { %5786 = vmatmul.mubr.msk.bf16.vlgmr.msra.gmra.mxu0 %vm3274_vm14, %v7921_v52 }
 0x805   :  { %3578 = vmatpush1.bf16.msra.mxu0 %v6624_v62  ;;  %3597 = vmatprep.mubr.bf16.mxu0 %v6710_v1 }
 0x806   :  { %3579 = vmatprep.subr.bf16.mxu0 %v6629_v22 }
 0x809   :  { %3580 = vmatpush1.bf16.msra.mxu0 %v6627_v23 }
 0x80c   :  { %5788 = vmatmul.mubr.msk.bf16.vlgmr.msra.gmra.mxu0 %vm3274_vm14, %v7921_v52  ;;  %vm3819_vm14 = vsmask.f32 2304 }
 0x80d   :  { %vm8258_vm10 = vmand %vm3818_vm13, %vm3819_vm14  ;;  %vm3847_vm14 = vsmask.f32 4352 }
 0x80e   :  { %vm8299_vm6 = vmand %vm3846_vm9, %vm3847_vm14 }
 0x8a4   :  { %v8044_v36 = vpop.f32.mrf.mxu0  ;;  %v3476_v61 = vpop.f32.mrf.mxu1 }
 0x8a5   :  { %v3477_v34 = vadd.f32 %v3476_v61, %v3039_v18 }
 0x8a6   :  { %v3314_v48 = vpop.f32.mrf.mxu0  ;;  %v3478_v31 = vpop.f32.mrf.mxu1 }
 0x8a7   :  { %v3655_v50 = vmax.f32 %v3477_v34, 0.0  ;;  %v3315_v55 = vadd.f32 %v3314_v48, %v3011_v56  ;;  %v8047_v3 = vadd.f32 %v3478_v31, %v3043_v32  ;;  %v3030_v56 = vsub.s32 6, %v7058_v15 }
 0x8a8   :  { %v3316_v53 = vpop.f32.mrf.mxu0  ;;  %v3480_v38 = vpop.f32.mrf.mxu1 }
 0x8a9   :  { %v8051_v39 = vpack.c.bf16 %v3655_v50, %v3655_v50  ;;  %v3648_v54 = vmax.f32 %v3315_v55, 0.0 }
 0x8aa   :  { %v3317_v41 = vpop.f32.mrf.mxu0  ;;  %v3481_v42 = vpop.f32.mrf.mxu1 }
 0x8ab   :  { %v3921_v43 = vrot.slane %v8051_v39, 5  ;;  %v8060_v45 = vpack.c.bf16 %v3648_v54, %v3648_v54  ;;  %v3035_v42 = vrot.slane %v8038_v9, %v3034_v29 }
 0x8ac   :  { %v3353_v14 = vpop.f32.mrf.mxu0  ;;  %v3558_v46 = vpop.f32.mrf.mxu1 }
 0x8ad   :  { %v3354_v47 = vadd.f32 %v3353_v14, %v3015_v40  ;;  %3924 = vrot.lane.b32.xlu0 %v3921_v43, %s6711_s26  ;;  %v8064_v24 = vadd.f32 %v3558_v46, %v3055_v27  ;;  %v3686_v63 = vrot.slane %v8060_v45, 7  ;;  %v3688_v6 = vshll.u32 %v8060_v45, 16 }
 0x8ae   :  { %v3355_v52 = vpop.f32.mrf.mxu0  ;;  %v3560_v0 = vpop.f32.mrf.mxu1  ;;  %v3031_v40 = vrot.slane %v8038_v9, %v3030_v56 }
 0x8af   :  { %v3649_v59 = vmax.f32 %v3354_v47, 0.0  ;;  %v8066_v60 = vadd.f32 %v3355_v52, %v3019_v44  ;;  %v3561_v49 = vadd.f32 %v3560_v0, %v3059_v58  ;;  %3890 = vrot.lane.b32.xlu1 %v3686_v63, %s6711_s26  ;;  %v3690_v18 = vrot.slane %v3688_v6, 7 }
 0x8b0   :  { %v3357_v2 = vpop.f32.mrf.mxu0  ;;  %v3562_v57 = vpop.f32.mrf.mxu1 }
 0x8b1   :  { %v3667_v5 = vpack.c.bf16 %v3649_v59, %v3649_v59  ;;  %v3660_v20 = vmax.f32 %v3561_v49, 0.0 }
 0x8b2   :  { %v3358_v28 = vpop.f32.mrf.mxu0  ;;  %v3563_v51 = vpop.f32.mrf.mxu1 }
 0x8b3   :  { %v3692_v8 = vshll.u32 %v3667_v5, 16  ;;  %v3889_v12 = vrot.slane %v3667_v5, 7  ;;  %v8084_v61 = vpack.c.bf16 %v3660_v20, %v3660_v20  ;;  %v3075_v5 = vrot.slane %v8072_v4, %v7064_v17 }
 0x8b4   :  { %v3394_v10 = vpop.f32.mrf.mxu0  ;;  %v3640_v21 = vpop.f32.mrf.mxu1  ;;  %v3047_v28 = vrot.slane %v8024_v26, %v3014_v35  ;;  %v3051_v4 = vrot.slane %v8024_v26, %v3018_v37 }
 0x8b5   :  { %v3694_v62 = vrot.slane %v3692_v8, 7  ;;  %3892 = vrot.lane.b32.xlu0 %v3889_v12, %s6711_s26  ;;  %v3395_v22 = vadd.f32 %v3394_v10, %v3023_v7  ;;  %v3641_v25 = vadd.f32 %v3640_v21, %v3071_v13  ;;  %v3762_v46 = vrot.slane %v8084_v61, 3 }
 0x8b6   :  { %v3396_v23 = vpop.f32.mrf.mxu0  ;;  %v3642_v27 = vpop.f32.mrf.mxu1  ;;  %v3730_v8 = vshll.u32 %v8051_v39, 16 }
 0x8b7   :  { %v3397_v32 = vadd.f32 %v3396_v23, %v3027_v11  ;;  %v3651_v34 = vmax.f32 %v3395_v22, 0.0  ;;  %v6325_v50 = vpack.i.bf16 %v3694_v62, %v3690_v18  ;;  %v3663_v55 = vmax.f32 %v3641_v25, 0.0 }
 0x8b8   :  { %v3398_v48 = vpop.f32.mrf.mxu0  ;;  %v3644_v31 = vpop.f32.mrf.mxu1  ;;  %v3643_v20 = vadd.f32 %v3642_v27, %v3075_v5  ;;  %v3732_v22 = vrot.slane %v3730_v8, 5  ;;  %v3063_v25 = vrot.slane %v8024_v26, %v3030_v56 }
 0x8b9   :  { %v3652_v53 = vmax.f32 %v3397_v32, 0.0  ;;  %v8086_v38 = vpack.c.bf16 %v3651_v34, %v3651_v34  ;;  %6326 = vrot.lane.b32.xlu1 %v6325_v50, %s6711_s26  ;;  %v8093_v43 = vpack.c.bf16 %v3663_v55, %v3663_v55 }
 0x8ba   :  { %v3399_v19 = vpop.f32.mrf.mxu0  ;;  %v3645_v54 = vpop.f32.mrf.mxu1  ;;  %v3664_v27 = vmax.f32 %v3643_v20, 0.0 }
 0x8bb   :  { %v3670_v41 = vpack.c.bf16 %v3652_v53, %v3652_v53  ;;  %v3705_v14 = vrot.slane %v8086_v38, 6  ;;  %v3707_v47 = vshll.u32 %v8086_v38, 16  ;;  %v3781_v57 = vrot.slane %v8093_v43, 2 }
 0x8bc   :  { %v3435_v44 = vpop.f32.mrf.mxu0  ;;  %v3682_v54 = vpack.c.bf16 %v3664_v27, %v3664_v27  ;;  %v6639_v27 = vld [vmem:[%s8792_s7 + $0xb0] sm:$0xff]  }
 0x8bd   :  { %v3711_v58 = vshll.u32 %v3670_v41, 16  ;;  %v8098_v52 = vadd.f32 %v3435_v44, %v3031_v40  ;;  %3906 = vrot.lane.b32.xlu0 %v3705_v14, %s6711_s26  ;;  %3954 = vrot.lane.b32.xlu1 %v3762_v46, %s6711_s26  ;;  %v3905_v49 = vrot.slane %v3670_v41, 6  ;;  %v3709_v7 = vrot.slane %v3707_v47, 6 }
 0x8be   :  { %v3437_v29 = vpop.f32.mrf.mxu0  ;;  %v3969_v20 = vrot.slane %v3682_v54, 2 }
 0x8bf   :  { %v3438_v0 = vadd.f32 %v3437_v29, %v3035_v42  ;;  %v3713_v59 = vrot.slane %v3711_v58, 6 }
 0x8c0   :  { %v3439_v2 = vpop.f32.mrf.mxu0 }
 0x8c1   :  { %v3654_v6 = vmax.f32 %v3438_v0, 0.0  ;;  %3970 = vrot.lane.b32.xlu0 %v3781_v57, %s6711_s26  ;;  %3908 = vrot.lane.b32.xlu1 %v3905_v49, %s6711_s26  ;;  %v6330_v11 = vpack.i.bf16 %v3713_v59, %v3709_v7  ;;  %v3764_v0 = vshll.u32 %v8084_v61, 16  ;;  %v3787_v59 = vshll.u32 %v3682_v54, 16  ;;  %v6646_v54 = vld [vmem:[%s8792_s7 + $0x18] sm:$0xff]  }
 0x8c2   :  { %v3440_v51 = vpop.f32.mrf.mxu0 }
 0x8c3   :  { %v8117_v12 = vpack.c.bf16 %v3654_v6, %v3654_v6  ;;  %v3783_v6 = vshll.u32 %v8093_v43, 16  ;;  %v3789_v51 = vrot.slane %v3787_v59, 2  ;;  %v3007_v59 = vrot.slane %v8038_v9, %v7061_v16 }
 0x8c4   :  { %v3517_v13 = vpop.f32.mrf.mxu0 }
 0x8c5   :  { %v3726_v35 = vshll.u32 %v8117_v12, 16  ;;  %v3518_v10 = vadd.f32 %v3517_v13, %v3047_v28  ;;  %v3724_v21 = vrot.slane %v8117_v12, 5  ;;  %6331 = vrot.lane.b32.xlu0 %v6330_v11, %s6711_s26  ;;  %v3785_v13 = vrot.slane %v3783_v6, 2 }
 0x8c6   :  { %v3519_v62 = vpop.f32.mrf.mxu0  ;;  %v3650_v6 = vmax.f32 %v8066_v60, 0.0 }
 0x8c7   :  { %v3657_v23 = vmax.f32 %v3518_v10, 0.0  ;;  %v3520_v39 = vadd.f32 %v3519_v62, %v3051_v4  ;;  %3922 = vrot.lane.b32.xlu1 %v3724_v21, %s6711_s26  ;;  %v3728_v18 = vrot.slane %v3726_v35, 5  ;;  %v6350_v11 = vpack.i.bf16 %v3789_v51, %v3785_v13  ;;  %v6630_v35 = vld [vmem:[%s8792_s7 + $0x78] sm:$0xff]   ;;  %v6632_v62 = vld [vmem:[%s8792_s7 + $0x70] sm:$0xff]  }
 0x8c8   :  { %v3521_v37 = vpop.f32.mrf.mxu0  ;;  %v6631_v10 = vld [vmem:[%s8792_s7 + $0x38] sm:$0xff]   ;;  %6071 = vmatprep.subr.bf16.mxu0 %v6630_v35 }
 0x8c9   :  { %v8129_v32 = vpack.c.bf16 %v3657_v23, %v3657_v23  ;;  %v3658_v34 = vmax.f32 %v3520_v39, 0.0  ;;  %v6335_v48 = vpack.i.bf16 %v3732_v22, %v3728_v18  ;;  %6072 = vmatpush3.bf16.msra.mxu0 %v6631_v10  ;;  %v6633_v22 = vld [vmem:[%s8792_s7 + $0xf8] sm:$0xff]   ;;  %v6634_v23 = vld [vmem:[%s8792_s7 + $0x30] sm:$0xff]   ;;  %v6636_v18 = vld [vmem:[%s8792_s7 + $0x68] sm:$0xff]  }
 0x8ca   :  { %v3522_v31 = vpop.f32.mrf.mxu0  ;;  %6073 = vmatprep.subr.bf16.mxu0 %v6632_v62  ;;  %6099 = vmatprep.subr.bf16.mxu1 %v6633_v22  ;;  %v6635_v39 = vld [vmem:[%s8792_s7 + $0xb8] sm:$0xff]   ;;  %v6637_v37 = vld [vmem:[%s8792_s7 + $0xf0] sm:$0xff]  }
 0x8cb   :  { %v3745_v50 = vshll.u32 %v8129_v32, 16  ;;  %v3676_v55 = vpack.c.bf16 %v3658_v34, %v3658_v34  ;;  %6336 = vrot.lane.b32.xlu1 %v6335_v48, %s6711_s26  ;;  %v3743_v53 = vrot.slane %v8129_v32, 4  ;;  %6100 = vmatpush3.bf16.msra.mxu1 %v6635_v39  ;;  %v6640_v34 = vld [vmem:[%s8792_s7 + $0x60] sm:$0xff]   ;;  %v6641_v48 = vld [vmem:[%s8792_s7 + $0xe8] sm:$0xff]   ;;  %v3653_v39 = vmax.f32 %v8098_v52, 0.0 }
 0x8cc   :  { %v3599_v19 = vpop.f32.mrf.mxu0  ;;  %6101 = vmatprep.subr.bf16.mxu1 %v6637_v37  ;;  %v6642_v31 = vld [vmem:[%s8792_s7 + $0x20] sm:$0xff]   ;;  %v3917_v52 = vshrl.u32 %v8117_v12, 16 }
 0x8cd   :  { %v3749_v40 = vshll.u32 %v3676_v55, 16  ;;  %v3937_v41 = vrot.slane %v3676_v55, 4  ;;  %v3600_v42 = vadd.f32 %v3599_v19, %v3063_v25  ;;  %3938 = vrot.lane.b32.xlu0 %v3743_v53, %s6711_s26  ;;  %v3747_v47 = vrot.slane %v3745_v50, 4  ;;  %6074 = vmatpush3.bf16.msra.mxu0 %v6634_v23  ;;  %v6638_v25 = vld [vmem:[%s8792_s7 + $0x28] sm:$0xff]   ;;  %v6644_v55 = vld [vmem:[%s8792_s7 + $0x58] sm:$0xff]   ;;  %v6645_v19 = vld [vmem:[%s8792_s7 + $0xe0] sm:$0xff]  }
 0x8ce   :  { %v3601_v26 = vpop.f32.mrf.mxu0  ;;  %6075 = vmatprep.subr.bf16.mxu0 %v6636_v18  ;;  %v6643_v50 = vld [vmem:[%s8792_s7 + $0xa8] sm:$0xff]  }
 0x8cf   :  { %v3751_v56 = vrot.slane %v3749_v40, 4  ;;  %v3661_v44 = vmax.f32 %v3600_v42, 0.0  ;;  %v8138_v58 = vadd.f32 %v3601_v26, %v8031_v30  ;;  %3940 = vrot.lane.b32.xlu1 %v3937_v41, %s6711_s26  ;;  %v3766_v30 = vrot.slane %v3764_v0, 3  ;;  %6102 = vmatpush3.bf16.msra.mxu1 %v6639_v27  ;;  %v6647_v40 = vld [vmem:[%s8792_s7 + $0xa0] sm:$0xff]   ;;  %v6648_v41 = vld [vmem:[%s8792_s7 + $0x50] sm:$0xff]   ;;  %v6649_v42 = vld [vmem:[%s8792_s7 + $0xd8] sm:$0xff]  }
 0x8d0   :  { %v3603_v29 = vpop.f32.mrf.mxu0  ;;  %6103 = vmatprep.subr.bf16.mxu1 %v6641_v48  ;;  %v6650_v26 = vld [vmem:[%s8792_s7 + $0x10] sm:$0xff]   ;;  %v3671_v48 = vpack.c.bf16 %v3653_v39, %v3653_v39 }
 0x8d1   :  { %v3679_v49 = vpack.c.bf16 %v3661_v44, %v3661_v44  ;;  %v6340_v2 = vpack.i.bf16 %v3751_v56, %v3747_v47  ;;  %6076 = vmatpush3.bf16.msra.mxu0 %v6638_v25  ;;  %v6651_v56 = vld [vmem:[%s8792_s7 + $0x98] sm:$0xff]   ;;  %v6652_v44 = vld [vmem:[%s8792_s7 + $0x48] sm:$0xff]   ;;  %v6653_v47 = vld [vmem:[%s8792_s7 + $0xd0] sm:$0xff]  }
 0x8d2   :  { %v3604_v5 = vpop.f32.mrf.mxu0  ;;  %6077 = vmatprep.subr.bf16.mxu0 %v6640_v34  ;;  %v6654_v29 = vld [vmem:[%s8792_s7 + $0x8] sm:$0xff]   ;;  %v6655_v0 = vld [vmem:[%s8792_s7 + $0x90] sm:$0xff]  }
 0x8d3   :  { %v3768_v28 = vshll.u32 %v3679_v49, 16  ;;  %6341 = vrot.lane.b32.xlu0 %v6340_v2, %s6711_s26  ;;  %v3953_v8 = vrot.slane %v3679_v49, 3  ;;  %6104 = vmatpush3.bf16.msra.mxu1 %v6643_v50  ;;  %v3313_v49 = vadd.f32 %v8044_v36, %v3007_v59  ;;  %v3919_v59 = vrot.slane %v3917_v52, 5 }
 0x8d4   :  { %6105 = vmatprep.subr.bf16.mxu1 %v6645_v19  ;;  %v3656_v19 = vmax.f32 %v8047_v3, 0.0  ;;  %v3933_v3 = vshrl.u32 %v8129_v32, 16 }
 0x8d5   :  { %v3770_v7 = vrot.slane %v3768_v28, 3  ;;  %6078 = vmatpush3.bf16.msra.mxu0 %v6642_v31  ;;  %v3647_v2 = vmax.f32 %v3313_v49, 0.0  ;;  %v3885_v28 = vshrl.u32 %v8060_v45, 16 }
 0x8d6   :  { %6079 = vmatprep.subr.bf16.mxu0 %v6644_v55 }
 0x8d7   :  { %3956 = vrot.lane.b32.xlu0 %v3953_v8, %s6711_s26  ;;  %v6345_v4 = vpack.i.bf16 %v3770_v7, %v3766_v30  ;;  %6106 = vmatpush3.bf16.msra.mxu1 %v6647_v40  ;;  %v3665_v5 = vpack.c.bf16 %v3647_v2, %v3647_v2  ;;  %v3668_v7 = vpack.c.bf16 %v3650_v6, %v3650_v6  ;;  %v3901_v8 = vshrl.u32 %v8086_v38, 16 }
 0x8d8   :  { %6107 = vmatprep.subr.bf16.mxu1 %v6649_v42 }
 0x8d9   :  { %6346 = vrot.lane.b32.xlu1 %v6345_v4, %s6711_s26  ;;  %6080 = vmatpush3.bf16.msra.mxu0 %v6646_v54  ;;  %v3882_v51 = vshrl.u32 %v3665_v5, 16  ;;  %v3887_v4 = vrot.slane %v3885_v28, 7  ;;  %v3903_v36 = vrot.slane %v3901_v8, 6  ;;  %v3685_v25 = vrot.slane %v3665_v5, 7 }
 0x8da   :  { %6081 = vmatprep.subr.bf16.mxu0 %v6648_v41  ;;  %v3704_v54 = vrot.slane %v3668_v7, 6  ;;  %v3935_v8 = vrot.slane %v3933_v3, 4 }
 0x8db   :  { %6351 = vrot.lane.b32.xlu0 %v6350_v11, %s6711_s26  ;;  %6108 = vmatpush3.bf16.msra.mxu1 %v6651_v56  ;;  %v3884_v13 = vrot.slane %v3882_v51, 7  ;;  %v3898_v11 = vshrl.u32 %v3668_v7, 16  ;;  %v3981_v35 = vsel %vm282_vm5, 0, %v3887_v4  ;;  %v3799_v55 = vsel %vm282_vm5, 0, %v3685_v25 }
 0x8dc   :  { %6109 = vmatprep.subr.bf16.mxu1 %v6653_v47  ;;  %v3914_v56 = vshrl.u32 %v3671_v48, 16  ;;  %v3674_v47 = vpack.c.bf16 %v3656_v19, %v3656_v19 }
 0x8dd   :  { %3972 = vrot.lane.b32.xlu1 %v3969_v20, %s6711_s26  ;;  %6082 = vmatpush3.bf16.msra.mxu0 %v6650_v26  ;;  %v3978_v10 = vsel %vm282_vm5, 0, %v3884_v13  ;;  %v3900_v62 = vrot.slane %v3898_v11, 6 }
 0x8de   :  { %6083 = vmatprep.subr.bf16.mxu0 %v6652_v44  ;;  %v3916_v6 = vrot.slane %v3914_v56, 5  ;;  %v3930_v7 = vshrl.u32 %v3674_v47, 16 }
 0x8df   :  { %6110 = vmatpush3.bf16.msra.mxu1 %v6655_v0  ;;  %v3659_v0 = vmax.f32 %v8064_v24, 0.0 }
 0x8e1   :  { %6084 = vmatpush3.bf16.msra.mxu0 %v6654_v29  ;;  %v8276_v13 = vpack.c.bf16 %v3659_v0, %v3659_v0 }
 0x8e3   :  { %v3946_v39 = vshrl.u32 %v8276_v13, 16 }
 0x8e5   :  { %v3948_v56 = vrot.slane %v3946_v39, 3 }
 0x91f   :  { %v3925_v30 = vpop.permute.xlu0 %3924 }
 0x921   :  { %v3891_v20 = vpop.permute.xlu1 %3890 }
 0x927   :  { %v3893_v60 = vpop.permute.xlu0 %3892 }
 0x928   :  { %v3894_v22 = vsel %vm70_vm1, %v3891_v20, %v3893_v60  ;;  %v3984_v23 = vsel %vm8233_vm12, %v3981_v35, %v3893_v60 }
 0x929   :  { %v3983_v18 = vsel %vm8233_vm12, %v3978_v10, %v3894_v22  ;;  %v3991_v37 = vsel %vm3804_vm15, %v3984_v23, %v3903_v36  ;;  %v3932_v22 = vrot.slane %v3930_v7, 4 }
 0x92a   :  { %v3987_v27 = vsel %vm3804_vm15, %v3983_v18, %v3900_v62  ;;  %v3723_v18 = vrot.slane %v3671_v48, 5  ;;  %v3662_v48 = vmax.f32 %v8138_v58, 0.0 }
 0x92b   :  { %v6327_v34 = vpop.permute.xlu1 %6326 }
 0x92c   :  { %v6329_v31 = vunpack.i.h.bf16 %v6327_v34  ;;  %v6328_v50 = vunpack.i.l.bf16 %v6327_v34 }
 0x92e   :  { %v3699_v40 = vsel %vm70_vm1, %v6328_v50, %v6329_v31  ;;  %v3949_v50 = vshrl.u32 %v8084_v61, 16  ;;  %v6657_v61 = vld [vmem:[%s8792_s7 + $0xc8] sm:$0xff]  }
 0x92f   :  { %v3807_v41 = vsel %vm8233_vm12, %v3799_v55, %v3699_v40  ;;  %v3907_v42 = vpop.permute.xlu0 %3906  ;;  %v8253_v26 = vpop.permute.xlu1 %3954  ;;  %6111 = vmatprep.subr.bf16.mxu1 %v6657_v61  ;;  %v6665_v61 = vld [vmem:[%s8792_s7 + $0x100] sm:$0xff]  }
 0x930   :  { %v3812_v44 = vsel %vm3804_vm15, %v3807_v41, %v3704_v54  ;;  %v6659_v41 = vld [vmem:[%s8792_s7 + $0x88] sm:$0xff]  }
 0x931   :  { %6112 = vmatpush3.bf16.msra.mxu1 %v6659_v41  ;;  %v6699_v41 = vld [vmem:[%s8783_s9 + $0x48] sm:$0xff] }
 0x933   :  { %v8263_v49 = vpop.permute.xlu0 %3970  ;;  %v3909_v2 = vpop.permute.xlu1 %3908 }
 0x934   :  { %v3910_v28 = vsel %vm70_vm1, %v3907_v42, %v3909_v2  ;;  %v3994_v51 = vsel %vm8258_vm10, %v3991_v37, %v3909_v2  ;;  %v3742_v42 = vrot.slane %v3674_v47, 4 }
 0x935   :  { %v3993_v24 = vsel %vm8258_vm10, %v3987_v27, %v3910_v28  ;;  %v4001_v4 = vsel %vm3818_vm13, %v3994_v51, %v3919_v59 }
 0x936   :  { %v3997_v11 = vsel %vm3818_vm13, %v3993_v24, %v3916_v6  ;;  %v4004_v36 = vsel %vm8266_vm7, %v4001_v4, %v3925_v30  ;;  %v3965_v6 = vshrl.u32 %v8093_v43, 16 }
 0x937   :  { %v6332_v20 = vpop.permute.xlu0 %6331  ;;  %v4011_v60 = vsel %vm3832_vm11, %v4004_v36, %v3935_v8  ;;  %v3761_v36 = vrot.slane %v8276_v13, 3 }
 0x938   :  { %v6334_v35 = vunpack.i.h.bf16 %v6332_v20  ;;  %v6333_v10 = vunpack.i.l.bf16 %v6332_v20  ;;  %v3967_v20 = vrot.slane %v3965_v6, 2 }
 0x939   :  { %v3923_v62 = vpop.permute.xlu1 %3922 }
 0x93a   :  { %v3926_v23 = vsel %vm70_vm1, %v3923_v62, %v3925_v30  ;;  %v3718_v37 = vsel %vm70_vm1, %v6333_v10, %v6334_v35  ;;  %v3802_v30 = vsel %vm282_vm5, 0, %v3686_v63  ;;  %v3951_v63 = vrot.slane %v3949_v50, 3 }
 0x93b   :  { %v4003_v25 = vsel %vm8266_vm7, %v3997_v11, %v3926_v23  ;;  %v3821_v27 = vsel %vm8258_vm10, %v3812_v44, %v3718_v37  ;;  %v3808_v54 = vsel %vm8233_vm12, %v3802_v30, %v6329_v31  ;;  %v3680_v44 = vpack.c.bf16 %v3662_v48, %v3662_v48 }
 0x93c   :  { %v4007_v34 = vsel %vm3832_vm11, %v4003_v25, %v3932_v22  ;;  %v3826_v19 = vsel %vm3818_vm13, %v3821_v27, %v3723_v18  ;;  %v3816_v58 = vsel %vm3804_vm15, %v3808_v54, %v3705_v14  ;;  %vm3861_vm12 = vsmask.f32 5376 }
 0x93d   :  { %v6337_v55 = vpop.permute.xlu1 %6336  ;;  %v3822_v0 = vsel %vm8258_vm10, %v3816_v58, %v6334_v35  ;;  %v3962_v51 = vshrl.u32 %v3680_v44, 16  ;;  %vm8326_vm10 = vmand %vm542_vm8, %vm3861_vm12  ;;  %v3780_v25 = vrot.slane %v3680_v44, 2 }
 0x93e   :  { %v6339_v40 = vunpack.i.h.bf16 %v6337_v55  ;;  %v6338_v52 = vunpack.i.l.bf16 %v6337_v55  ;;  %v3830_v29 = vsel %vm3818_vm13, %v3822_v0, %v3724_v21  ;;  %v6661_v0 = vld [vmem:[%s8792_s7 + $0x118] sm:$0xff]   ;;  %vm8818_vm13 = vcmask 654336  }
 0x93f   :  { %v3939_v31 = vpop.permute.xlu0 %3938  ;;  %v3964_v35 = vrot.slane %v3962_v51, 2 }
 0x940   :  { %v3737_v45 = vsel %vm70_vm1, %v6338_v52, %v6339_v40  ;;  %v3836_v8 = vsel %vm8266_vm7, %v3830_v29, %v6339_v40 }
 0x941   :  { %v3835_v9 = vsel %vm8266_vm7, %v3826_v19, %v3737_v45  ;;  %v3941_v3 = vpop.permute.xlu1 %3940  ;;  %v3844_v12 = vsel %vm3832_vm11, %v3836_v8, %v3743_v53  ;;  %vm3873_vm7 = vsmask.f32 6400  ;;  %v6656_v19 = vld [vmem:[%s8792_s7 + $0x40] sm:$0xff]  }
 0x942   :  { %v3942_v59 = vsel %vm70_vm1, %v3939_v31, %v3941_v3  ;;  %v4014_v47 = vsel %vm8299_vm6, %v4011_v60, %v3941_v3  ;;  %v3840_v2 = vsel %vm3832_vm11, %v3835_v9, %v3742_v42  ;;  %6085 = vmatprep.subr.bf16.mxu0 %v6656_v19  ;;  %v6660_v3 = vld [vmem:[%s8792_s7 + $0xc0] sm:$0xff]  }
 0x943   :  { %v4013_v38 = vsel %vm8299_vm6, %v4007_v34, %v3942_v59  ;;  %v4021_v14 = vsel %vm3846_vm9, %v4014_v47, %v3951_v63  ;;  %v6662_v47 = vld [vmem:[%s8792_s7 + $0x80] sm:$0xff]   ;;  %6113 = vmatprep.subr.bf16.mxu1 %v6660_v3 }
 0x944   :  { %v4017_v28 = vsel %vm3846_vm9, %v4013_v38, %v3948_v56  ;;  %6114 = vmatpush3.bf16.msra.mxu1 %v6662_v47 }
 0x945   :  { %v6342_v7 = vpop.permute.xlu0 %6341  ;;  %6244 = vmatprep.subr.mxu1 %v6712_v33 }
 0x946   :  { %v6344_v24 = vunpack.i.h.bf16 %v6342_v7  ;;  %v6343_v4 = vunpack.i.l.bf16 %v6342_v7 }
 0x948   :  { %v3756_v60 = vsel %vm70_vm1, %v6343_v4, %v6344_v24  ;;  %v3850_v10 = vsel %vm8299_vm6, %v3844_v12, %v6344_v24 }
 0x949   :  { %v3849_v21 = vsel %vm8299_vm6, %v3840_v2, %v3756_v60  ;;  %v3957_v5 = vpop.permute.xlu0 %3956  ;;  %vm8352_vm6 = vmand %vm94_vm0, %vm3873_vm7 }
 0x94a   :  { %v3958_v62 = vsel %vm70_vm1, %v8253_v26, %v3957_v5  ;;  %v4024_v13 = vsel %vm8326_vm10, %v4021_v14, %v3957_v5  ;;  %v3854_v22 = vsel %vm3846_vm9, %v3849_v21, %v3761_v36  ;;  %v3858_v26 = vsel %vm3846_vm9, %v3850_v10, %v3762_v46  ;;  %v6658_v46 = vld [vmem:[%s8792_s7] sm:$0xff]  }
 0x94b   :  { %v4023_v32 = vsel %vm8326_vm10, %v4017_v28, %v3958_v62  ;;  %v6347_v53 = vpop.permute.xlu1 %6346  ;;  %v4031_v23 = vsel %vm542_vm8, %v4024_v13, %v3967_v20  ;;  %6086 = vmatpush3.bf16.msra.mxu0 %v6658_v46  ;;  %v6696_v46 = vld [vmem:[%s8783_s9 + $0x60] sm:$0xff]  ;;  %vm8819_vm9 = vcmask 785408  }
 0x94c   :  { %v6349_v39 = vunpack.i.h.bf16 %v6347_v53  ;;  %v6348_v18 = vunpack.i.l.bf16 %v6347_v53  ;;  %v4027_v37 = vsel %vm542_vm8, %v4023_v32, %v3964_v35  ;;  %6232 = vmatprep.subr.bf16.mxu0 %v6661_v0  ;;  %vm8820_vm14 = vmmov %vm8819_vm9 }
 0x94d   :  { %v6352_v27 = vpop.permute.xlu0 %6351  ;;  %vm8821_vm12 = vmmov %vm8819_vm9 }
 0x94e   :  { %v3775_v50 = vsel %vm70_vm1, %v6348_v18, %v6349_v39  ;;  %v3864_v30 = vsel %vm8326_vm10, %v3858_v26, %v6349_v39  ;;  %v6354_v48 = vunpack.i.h.bf16 %v6352_v27  ;;  %v6353_v55 = vunpack.i.l.bf16 %v6352_v27  ;;  %v6663_v18 = vld [vmem:[%s8792_s7 + $0x110] sm:$0xff]  }
 0x94f   :  { %v3863_v54 = vsel %vm8326_vm10, %v3854_v22, %v3775_v50  ;;  %v3871_v40 = vsel %vm542_vm8, %v3864_v30, %v3781_v57  ;;  %v3973_v52 = vpop.permute.xlu1 %3972  ;;  %v6664_v30 = vld [vmem:[%s8792_s7 + $0x108] sm:$0xff]   ;;  %vm8822_vm10 = vmmov %vm8818_vm13 }
 0x950   :  { %v3867_v42 = vsel %vm542_vm8, %v3863_v54, %v3780_v25  ;;  %v3794_v56 = vsel %vm70_vm1, %v6353_v55, %v6354_v48  ;;  %v3876_v45 = vsel %vm8352_vm6, %v3871_v40, %v6354_v48  ;;  %v3974_v63 = vsel %vm70_vm1, %v8263_v49, %v3973_v52  ;;  %v6695_v55 = vld [vmem:[%s8783_s9 + $0x68] sm:$0xff]  ;;  %v6697_v40 = vld [vmem:[%s8783_s9 + $0x58] sm:$0xff] }
 0x951   :  { %v3875_v43 = vsel %vm8352_vm6, %v3867_v42, %v3794_v56  ;;  %v4033_v57 = vsel %vm8352_vm6, %v4027_v37, %v3974_v63  ;;  %v4034_v44 = vsel %vm8352_vm6, %v4031_v23, %v3973_v52  ;;  %v8392_v49 = vsel %vm94_vm0, %v3876_v45, 0  ;;  %v6698_v52 = vld [vmem:[%s8783_s9 + $0x50] sm:$0xff]  ;;  %v6700_v42 = vld [vmem:[%s8783_s9 + $0x40] sm:$0xff]  ;;  %v6702_v45 = vld [vmem:[%s8783_s9 + $0x38] sm:$0xff] }
 0x952   :  { %v4036_v58 = vsel %vm94_vm0, %v4033_v57, 0  ;;  %v4038_v9 = vsel %vm94_vm0, %v4034_v44, 0  ;;  %v3878_v31 = vsel %vm94_vm0, %v3875_v43, 0  ;;  %v4047_v51 = vshll.u32 %v8392_v49, 16  ;;  %v6701_v56 = vld [vmem:[%s8784_s10] sm:$0xff]  ;;  %v6703_v63 = vld [vmem:[%s8783_s9 + $0x30] sm:$0xff] }
 0x953   :  { %v8400_v59 = vrot.slane %v4036_v58, 1  ;;  %v4064_v2 = vshll.u32 %v4036_v58, 16  ;;  %v4041_v38 = vshll.u32 %v3878_v31, 16  ;;  %v4058_v14 = vrot.slane %v3878_v31, 1  ;;  %v6704_v43 = vld [vmem:[%s8783_s9 + $0x28] sm:$0xff]  ;;  %v6705_v57 = vld [vmem:[%s8783_s9 + $0x20] sm:$0xff] }
 0x954   :  { %v4070_v28 = vshll.u32 %v4038_v9, 16  ;;  %v4062_v29 = vshrl.u32 %v4036_v58, 16  ;;  %v4039_v8 = vshrl.u32 %v3878_v31, 16  ;;  %v4049_v60 = vrot.slane %v4047_v51, 1  ;;  %v6706_v44 = vld [vmem:[%s8783_s9 + $0x18] sm:$0xff]  ;;  %v6707_v58 = vld [vmem:[%s8783_s9 + $0x10] sm:$0xff] }
 0x955   :  { %v4088_v6 = vrot.slane %v8400_v59, 1  ;;  %v4066_v7 = vrot.slane %v4064_v2, 1  ;;  %v4043_v24 = vrot.slane %v4041_v38, 1  ;;  %v4068_v35 = vshrl.u32 %v4038_v9, 16 }
 0x956   :  { %v4072_v20 = vrot.slane %v4070_v28, 1  ;;  %v4045_v12 = vshrl.u32 %v8392_v49, 16  ;;  %v4095_v25 = vsel %vm94_vm0, %v3878_v31, %v8400_v59  ;;  %v4082_v26 = vrot.slane %v4038_v9, 1  ;;  %v6709_v31 = vld [vmem:[%s8783_s9] sm:$0xff] }
 0x957   :  { %v4106_v4 = vsel %vm94_vm0, %v4058_v14, %v4088_v6  ;;  %v4067_v11 = vor.u32 %v4066_v7, %v4062_v29  ;;  %v4044_v36 = vor.u32 %v4043_v24, %v4039_v8  ;;  %v4059_v19 = vrot.slane %v8392_v49, 1 }
 0x958   :  { %4484 = vmatprep.mubr.bf16.mxu1 %v4106_v4  ;;  %v4073_v21 = vor.u32 %v4072_v20, %v4068_v35  ;;  %v4050_v5 = vor.u32 %v4049_v60, %v4045_v12  ;;  %v4089_v48 = vrot.slane %v4082_v26, 1  ;;  %vm8816_vm8 = vsmask.f32 7424 }
 0x959   :  { %4074 = vrot.lane.b32.xlu1 %v4067_v11, %s6711_s26  ;;  %4051 = vrot.lane.b32.xlu0 %v4044_v36, %s6711_s26 }
 0x95a   :  { %v4110_v54 = vsel %vm94_vm0, %v4059_v19, %v4089_v48 }
 0x95d   :  { %4076 = vrot.lane.b32.xlu1 %v4073_v21, %s6711_s26  ;;  %4053 = vrot.lane.b32.xlu0 %v4050_v5, %s6711_s26 }
 0x9cb   :  { %v4075_v10 = vpop.permute.xlu1 %4074  ;;  %v4052_v62 = vpop.permute.xlu0 %4051 }
 0x9cc   :  { %v4084_v13 = vsel %vm70_vm1, %v4038_v9, %v4075_v10  ;;  %v4061_v32 = vsel %vm70_vm1, %v8392_v49, %v4052_v62  ;;  %v6708_v9 = vld [vmem:[%s8783_s9 + $0x8] sm:$0xff] }
 0x9cd   :  { %v4086_v22 = vrot.slane %v4084_v13, 1 }
 0x9cf   :  { %v4077_v53 = vpop.permute.xlu1 %4076  ;;  %v4054_v23 = vpop.permute.xlu0 %4053  ;;  %v4098_v39 = vsel %vm94_vm0, %v4061_v32, %v4086_v22 }
 0x9d0   :  { %v4078_v37 = vsel %vm70_vm1, %v4075_v10, %v4077_v53  ;;  %4435 = vmatprep.mubr.bf16.mxu0 %v4098_v39  ;;  %v4055_v34 = vsel %vm70_vm1, %v4052_v62, %v4054_v23 }
 0x9d1   :  { %v4087_v27 = vrot.slane %v4078_v37, 1  ;;  %4436 = vmatmul.mubr.bf16.vlgmr.msra.gmra.mxu0 %v4095_v25 }
 0x9d2   :  { %6233 = vmatpush3.bf16.msra.mxu0 %v6661_v0  ;;  %4443 = vmatprep.mubr.bf16.mxu0 %v4086_v22 }
 0x9d3   :  { %v4102_v50 = vsel %vm94_vm0, %v4055_v34, %v4087_v27  ;;  %6234 = vmatprep.subr.bf16.mxu0 %v6663_v18 }
 0x9d4   :  { %4485 = vmatmul.mubr.bf16.vlgmr.msra.gmra.mxu1 %v4102_v50 }
 0x9d5   :  { %4492 = vmatprep.mubr.bf16.mxu1 %v4088_v6  ;;  %6245 = vmatpush3.msra.mxu1 %v6695_v55 }
 0x9d6   :  { %6235 = vmatpush3.bf16.msra.mxu0 %v6663_v18  ;;  %6246 = vmatprep.subr.mxu1 %v6712_v33 }
 0x9d7   :  { %6236 = vmatprep.subr.bf16.mxu0 %v6664_v30  ;;  %6247 = vmatpush3.msra.mxu1 %v6696_v46 }
 0x9d8   :  { %6248 = vmatprep.subr.mxu1 %v6712_v33 }
 0x9d9   :  { %4444 = vmatmul.mubr.bf16.gmra.mxu0 %v8400_v59  ;;  %6249 = vmatpush3.msra.mxu1 %v6697_v40 }
 0x9da   :  { %6237 = vmatpush3.bf16.msra.mxu0 %v6664_v30  ;;  %6240 = vmatprep.mubr.msk.bf16.mxu0 %vm70_vm1, %v4110_v54 }
 0x9db   :  { %6238 = vmatprep.subr.bf16.mxu0 %v6665_v61  ;;  %6250 = vmatprep.subr.mxu1 %v6712_v33 }
 0x9dc   :  { %4493 = vmatmul.mubr.bf16.gmra.mxu1 %v4087_v27 }
 0x9dd   :  { %6251 = vmatpush3.msra.mxu1 %v6698_v52  ;;  %6272 = vmatprep.mubr.msk.f32.mxu1 %vm6713_vm2, %v6712_v33 }
 0x9de   :  { %6239 = vmatpush3.bf16.msra.mxu0 %v6665_v61  ;;  %6252 = vmatprep.subr.mxu1 %v6712_v33 }
 0x9df   :  { %6253 = vmatpush3.msra.mxu1 %v6699_v41  ;;  %6275 = vmatprep.subr.mxu0 %v6712_v33 }
 0x9e0   :  { %6254 = vmatprep.subr.mxu1 %v6712_v33 }
 0x9e1   :  { %6241 = vmatmul.mubr.msk.bf16.vlgmr.msra.gmra.mxu0 %vm70_vm1, %v4089_v48  ;;  %6255 = vmatpush3.msra.mxu1 %v6700_v42 }
 0x9e2   :  { %6256 = vmatprep.subr.mxu1 %v6712_v33  ;;  %6276 = vmatpush3.msra.mxu0 %v6701_v56 }
 0x9e3   :  { %6257 = vmatpush3.msra.mxu1 %v6702_v45  ;;  %6277 = vmatprep.mubr.msk.f32.mxu0 %vm6713_vm2, %v6712_v33 }
 0x9e4   :  { %6258 = vmatprep.subr.mxu1 %v6712_v33 }
 0x9e5   :  { %6259 = vmatpush3.msra.mxu1 %v6703_v63 }
 0x9e6   :  { %6260 = vmatprep.subr.mxu1 %v6712_v33 }
 0x9e7   :  { %6261 = vmatpush3.msra.mxu1 %v6704_v43 }
 0x9e8   :  { %6262 = vmatprep.subr.mxu1 %v6712_v33 }
 0x9e9   :  { %6263 = vmatpush3.msra.mxu1 %v6705_v57 }
 0x9ea   :  { %6264 = vmatprep.subr.mxu1 %v6712_v33 }
 0x9eb   :  { %6265 = vmatpush3.msra.mxu1 %v6706_v44 }
 0x9ec   :  { %6266 = vmatprep.subr.mxu1 %v6712_v33 }
 0x9ed   :  { %6267 = vmatpush3.msra.mxu1 %v6707_v58 }
 0x9ee   :  { %6268 = vmatprep.subr.mxu1 %v6712_v33 }
 0x9ef   :  { %6269 = vmatpush3.msra.mxu1 %v6708_v9 }
 0x9f0   :  { %6270 = vmatprep.subr.mxu1 %v6712_v33 }
 0x9f1   :  { %6271 = vmatpush3.msra.mxu1 %v6709_v31 }
 0xa91   :  { %v6087_v49 = vpop.f32.mrf.mxu0 }
 0xa93   :  { %v6088_v3 = vpop.f32.mrf.mxu0 }
 0xa94   :  { %v6115_v0 = vpop.f32.mrf.mxu1  ;;  %v6089_v11 = vadd.f32 %v6088_v3, %v6087_v49 }
 0xa95   :  { %v6090_v59 = vpop.f32.mrf.mxu0 }
 0xa96   :  { %v6116_v47 = vpop.f32.mrf.mxu1 }
 0xa97   :  { %v6091_v2 = vpop.f32.mrf.mxu0  ;;  %v6117_v7 = vadd.f32 %v6116_v47, %v6115_v0 }
 0xa98   :  { %v6118_v38 = vpop.f32.mrf.mxu1  ;;  %v6092_v22 = vadd.f32 %v6091_v2, %v6090_v59 }
 0xa99   :  { %v6093_v14 = vpop.f32.mrf.mxu0  ;;  %v4487_v5 = vadd.f32 %v6117_v7, %v6089_v11 }
 0xa9a   :  { %v6119_v6 = vpop.f32.mrf.mxu1 }
 0xa9b   :  { %v6094_v28 = vpop.f32.mrf.mxu0  ;;  %v6120_v35 = vadd.f32 %v6119_v6, %v6118_v38 }
 0xa9c   :  { %v6121_v51 = vpop.f32.mrf.mxu1  ;;  %v6095_v36 = vadd.f32 %v6094_v28, %v6093_v14 }
 0xa9d   :  { %v6096_v29 = vpop.f32.mrf.mxu0  ;;  %v4490_v18 = vadd.f32 %v6120_v35, %v6092_v22  ;;  %v6672_v22 = vld [vmem:[%s8793_s8 + $0x60] sm:$0xff]  }
 0xa9e   :  { %v6122_v8 = vpop.f32.mrf.mxu1 }
 0xa9f   :  { %v6123_v24 = vadd.f32 %v6122_v8, %v6121_v51  ;;  %v6097_v4 = vpop.f32.mrf.mxu0 }
 0xaa0   :  { %v6124_v20 = vpop.f32.mrf.mxu1  ;;  %v6098_v10 = vadd.f32 %v6097_v4, %v6096_v29 }
 0xaa1   :  { %v6242_v60 = vpop.f32.mrf.mxu0  ;;  %v4495_v12 = vadd.f32 %v6123_v24, %v6095_v36 }
 0xaa2   :  { %v6125_v21 = vpop.f32.mrf.mxu1 }
 0xaa3   :  { %v6126_v62 = vadd.f32 %v6125_v21, %v6124_v20  ;;  %v4535_v13 = vpop.f32.mrf.mxu0  ;;  %v8502_v39 = vadd.f32 %v6242_v60, %v4495_v12  ;;  %v6666_v12 = vld [vmem:[%s8793_s8 + $0x78] sm:$0xff]  }
 0xaa4   :  { %v8500_v32 = vadd.f32 %v4535_v13, %v4487_v5  ;;  %v6667_v21 = vld [vmem:[%s8793_s8 + $0x38] sm:$0xff]   ;;  %6150 = vmatprep.subr.bf16.mxu0 %v6666_v12  ;;  %v6668_v5 = vld [vmem:[%s8793_s8 + $0x70] sm:$0xff]   ;;  %v6671_v13 = vld [vmem:[%s8793_s8 + $0x28] sm:$0xff]  }
 0xaa5   :  { %v4498_v53 = vadd.f32 %v6126_v62, %v6098_v10  ;;  %v6243_v23 = vpop.f32.mrf.mxu0  ;;  %v4565_v34 = vmul.f32 %v8502_v39, %v8502_v39  ;;  %v4553_v19 = vsel %vm250_vm3, %v8502_v39, 0.0  ;;  %v6669_v10 = vld [vmem:[%s8793_s8 + $0x30] sm:$0xff]   ;;  %v6670_v62 = vld [vmem:[%s8793_s8 + $0x68] sm:$0xff]  }
 0xaa6   :  { %v4563_v25 = vmul.f32 %v8500_v32, %v8500_v32  ;;  %v4550_v50 = vsel %vm250_vm3, %v8500_v32, 0.0 }
 0xaa7   :  { %v4538_v37 = vpop.f32.mrf.mxu0  ;;  %v8506_v26 = vadd.f32 %v6243_v23, %v4498_v53  ;;  %v4570_v41 = vsel %vm250_vm3, %v4565_v34, 0.0  ;;  %v6673_v53 = vld [vmem:[%s8793_s8 + $0x20] sm:$0xff]   ;;  %v6674_v23 = vld [vmem:[%s8793_s8 + $0x58] sm:$0xff]  }
 0xaa8   :  { %v8508_v27 = vadd.f32 %v4538_v37, %v4490_v18  ;;  %v4567_v61 = vsel %vm250_vm3, %v4563_v25, 0.0  ;;  %v6678_v18 = vld [vmem:[%s8793_s8 + $0xa0] sm:$0xff]   ;;  %v6675_v37 = vld [vmem:[%s8793_s8 + $0x18] sm:$0xff]   ;;  %v6676_v25 = vld [vmem:[%s8793_s8 + $0x50] sm:$0xff]  }
 0xaa9   :  { %v4566_v46 = vmul.f32 %v8506_v26, %v8506_v26  ;;  %v4555_v42 = vsel %vm256_vm4, %v8506_v26, 0.0  ;;  %6280 = vmatprep.subr.bf16.mxu1 %v6678_v18  ;;  %v6681_v34 = vld [vmem:[%s8793_s8 + $0x98] sm:$0xff]  }
 0xaaa   :  { %v4551_v30 = vsel %vm250_vm3, %v8508_v27, 0.0  ;;  %v4564_v48 = vmul.f32 %v8508_v27, %v8508_v27 }
 0xaab   :  { %v4552_v55 = vadd.f32 %v4551_v30, %v4550_v50  ;;  %v4572_v63 = vsel %vm256_vm4, %v4566_v46, 0.0  ;;  %vm8815_vm4 = vcmask 64512   ;;  %v6677_v50 = vld [vmem:[%s8793_s8 + $0x10] sm:$0xff]   ;;  %v6679_v30 = vld [vmem:[%s8793_s8 + $0x48] sm:$0xff]  }
 0xaac   :  { %v4568_v54 = vsel %vm250_vm3, %v4564_v48, 0.0  ;;  %v6680_v48 = vld [vmem:[%s8793_s8 + $0x8] sm:$0xff]  }
 0xaad   :  { %v4554_v40 = vadd.f32 %v4553_v19, %v4552_v55  ;;  %v4569_v52 = vadd.f32 %v4568_v54, %v4567_v61 }
 0xaaf   :  { %v4556_v56 = vadd.f32 %v4555_v42, %v4554_v40  ;;  %v4571_v45 = vadd.f32 %v4570_v41, %v4569_v52 }
 0xab1   :  { %v4557_v43 = vrot.slane %v4556_v56, 4  ;;  %v4573_v57 = vadd.f32 %v4572_v63, %v4571_v45 }
 0xab3   :  { %v4558_v44 = vadd.f32 %v4557_v43, %v4556_v56  ;;  %v4574_v58 = vrot.slane %v4573_v57, 4 }
 0xab5   :  { %v4559_v9 = vrot.slane %v4558_v44, 2  ;;  %v4575_v31 = vadd.f32 %v4574_v58, %v4573_v57 }
 0xab7   :  { %v4560_v49 = vadd.f32 %v4559_v9, %v4558_v44  ;;  %v4576_v3 = vrot.slane %v4575_v31, 2  ;;  %v6682_v9 = vld [vmem:[%s8793_s8 + $0x40] sm:$0xff]  }
 0xab9   :  { %v4561_v0 = vrot.slane %v4560_v49, 1  ;;  %v4577_v59 = vadd.f32 %v4576_v3, %v4575_v31 }
 0xabb   :  { %v4578_v47 = vrot.slane %v4577_v59, 1  ;;  %v4562_v2 = vadd.f32 %v4561_v0, %v4560_v49 }
 0xabd   :  { %v4579_v38 = vadd.f32 %v4578_v47, %v4577_v59  ;;  %v4779_v47 = vrot.slane %v6710_v1, 7  ;;  %v6686_v1 = vld [vmem:[%s8793_s8 + $0x80] sm:$0xff]  }
 0xabf   :  { %v4580_v14 = vsel %vm282_vm5, %v4562_v2, %v4579_v38  ;;  %v6685_v2 = vld [vmem:[%s8793_s8 + $0x88] sm:$0xff]  }
 0xac0   :  { %6273 = vmatmul.mubr.msk.f32.vlgmr.msra.gmra.mxu1 %vm250_vm3, %v4580_v14 }
 0xac1   :  { %6281 = vmatpush3.bf16.msra.mxu1 %v6678_v18 }
 0xac2   :  { %6282 = vmatprep.subr.bf16.mxu1 %v6681_v34 }
 0xac5   :  { %6283 = vmatpush3.bf16.msra.mxu1 %v6681_v34 }
 0xb80   :  { %v4650_v6 = vpop.f32.mrf.mxu1 }
 0xb81   :  { %v4654_v28 = vmul.f32 0.0025510204, %v4650_v6 }
 0xb82   :  { %v6274_v51 = vpop.f32.mrf.mxu1 }
 0xb83   :  { %v4655_v29 = vmul.f32 %v4654_v28, %v4654_v28 }
 0xb85   :  { %v4657_v7 = vrot.slane %v4655_v29, 7 }
 0xb87   :  { %v4659_v8 = vsub.f32 %v4654_v28, %v4657_v7 }
 0xb89   :  { %v4660_v24 = vmax.f32 %v4659_v8, 0.0 }
 0xb8b   :  { %v4661_v4 = vadd.f32 1e-05, %v4660_v24 }
 0xb8d   :  { %6691 = vrsqrt.f32 %v4661_v4 }
 0xb9a   :  { %v6692_v11 = vpop.eup %6691 }
 0xb9b   :  { %v4664_v36 = vrot.slane %v6692_v11, 1 }
 0xb9d   :  { %v4666_v20 = vmul.f32 %v4664_v36, %v4654_v28 }
 0xb9f   :  { %v4668_v60 = vrot.slane %v4666_v20, 7 }
 0xba1   :  { %v4670_v35 = vsel %vm282_vm5, %v4664_v36, %v4668_v60 }
 0xba2   :  { %6278 = vmatmul.mubr.msk.f32.vlgmr.msra.gmra.mxu0 %vm8815_vm4, %v4670_v35 }
 0xba3   :  { %6151 = vmatpush3.bf16.msra.mxu0 %v6667_v21 }
 0xba4   :  { %6152 = vmatprep.subr.bf16.mxu0 %v6668_v5 }
 0xba7   :  { %6153 = vmatpush3.bf16.msra.mxu0 %v6669_v10 }
 0xba8   :  { %6154 = vmatprep.subr.bf16.mxu0 %v6670_v62 }
 0xbab   :  { %6155 = vmatpush3.bf16.msra.mxu0 %v6671_v13 }
 0xbac   :  { %6156 = vmatprep.subr.bf16.mxu0 %v6672_v22 }
 0xbaf   :  { %6157 = vmatpush3.bf16.msra.mxu0 %v6673_v53 }
 0xbb0   :  { %6158 = vmatprep.subr.bf16.mxu0 %v6674_v23 }
 0xbb3   :  { %6159 = vmatpush3.bf16.msra.mxu0 %v6675_v37 }
 0xbb4   :  { %6160 = vmatprep.subr.bf16.mxu0 %v6676_v25 }
 0xbb7   :  { %6161 = vmatpush3.bf16.msra.mxu0 %v6677_v50 }
 0xbb8   :  { %6162 = vmatprep.subr.bf16.mxu0 %v6679_v30 }
 0xbbb   :  { %6163 = vmatpush3.bf16.msra.mxu0 %v6680_v48 }
 0xbbc   :  { %6164 = vmatprep.subr.bf16.mxu0 %v6682_v9  ;;  %v5158_v9 = vld [vmem:[%s8794_s13 + $0x20] sm:$0xff] }
 0xc62   :  { %v4740_v55 = vpop.f32.mrf.mxu0 }
 0xc63   :  { %v4747_v19 = vrot.slane %v4740_v55, %v7061_v16  ;;  %v4755_v61 = vrot.slane %v4740_v55, %v7064_v17 }
 0xc64   :  { %v6279_v46 = vpop.f32.mrf.mxu0 }
 0xc65   :  { %v4748_v54 = vmul.f32 %v4747_v19, %v8500_v32  ;;  %v4749_v40 = vmul.f32 %v4747_v19, %v8508_v27  ;;  %v4750_v52 = vmul.f32 %v4747_v19, %v8502_v39  ;;  %v4751_v41 = vmul.f32 %v4747_v19, %v8506_v26  ;;  %v6683_v32 = vld [vmem:[%s8793_s8] sm:$0xff]   ;;  %v6684_v39 = vld [vmem:[%s8793_s8 + $0x90] sm:$0xff]  }
 0xc66   :  { %6165 = vmatpush3.bf16.msra.mxu0 %v6683_v32  ;;  %6284 = vmatprep.subr.bf16.mxu1 %v6684_v39  ;;  %v5157_v32 = vld [vmem:[%s8794_s13 + $0x18] sm:$0xff] }
 0xc67   :  { %v4756_v42 = vsub.f32 %v4748_v54, %v4755_v61  ;;  %v4757_v56 = vsub.f32 %v4749_v40, %v4755_v61  ;;  %v4758_v45 = vsub.f32 %v4750_v52, %v4755_v61  ;;  %v4759_v63 = vsub.f32 %v4751_v41, %v4755_v61  ;;  %6285 = vmatpush3.bf16.msra.mxu1 %v6684_v39  ;;  %v5156_v39 = vld [vmem:[%s8794_s13 + $0x10] sm:$0xff] }
 0xc68   :  { %6313 = vmatprep.subr.mxu0 %v6712_v33  ;;  %6286 = vmatprep.subr.bf16.mxu1 %v6685_v2 }
 0xc69   :  { %v4760_v43 = vmax.f32 %v4756_v42, 0.0  ;;  %v4761_v57 = vmax.f32 %v4757_v56, 0.0  ;;  %v4762_v44 = vmax.f32 %v4758_v45, 0.0  ;;  %v4763_v58 = vmax.f32 %v4759_v63, 0.0 }
 0xc6b   :  { %v4764_v26 = vpack.c.bf16 %v4761_v57, %v4760_v43  ;;  %v4765_v27 = vpack.c.bf16 %v4763_v58, %v4762_v44  ;;  %6287 = vmatpush3.bf16.msra.mxu1 %v6685_v2  ;;  %v5161_v57 = vld [vmem:[%s8794_s13 + $0x38] sm:$0xff]  ;;  %v5160_v44 = vld [vmem:[%s8794_s13 + $0x30] sm:$0xff]  ;;  %v5159_v58 = vld [vmem:[%s8794_s13 + $0x28] sm:$0xff] }
 0xc6c   :  { %6288 = vmatprep.subr.bf16.mxu1 %v6686_v1 }
 0xc6d   :  { %v4771_v31 = vrot.slane %v4764_v26, 6  ;;  %v4772_v49 = vrot.slane %v4765_v27, 6  ;;  %v4767_v3 = vrot.slane %v4764_v26, 7  ;;  %v5155_v26 = vld [vmem:[%s8794_s13 + $0x8] sm:$0xff]  ;;  %v5154_v27 = vld [vmem:[%s8794_s13] sm:$0xff] }
 0xc6f   :  { %v4769_v0 = vsel %vm282_vm5, 0, %v4767_v3  ;;  %v4773_v59 = vsel %vm3804_vm15, %v4771_v31, %v4772_v49  ;;  %6289 = vmatpush3.bf16.msra.mxu1 %v6686_v1  ;;  %vm8817_vm15 = vmmov %vm8816_vm8 }
 0xc70   :  { %v4775_v38 = vsel %vm282_vm5, 0, %v4773_v59  ;;  %v4785_v14 = vshll.u32 %v4769_v0, 16  ;;  %v4783_v29 = vshrl.u32 %v4769_v0, 16  ;;  %v4797_v8 = vrot.slane %v4769_v0, 1  ;;  %6294 = vmatprep.subr.mxu1 %v6712_v33 }
 0xc71   :  { %v4778_v6 = vrot.slane %v4775_v38, 7 }
 0xc72   :  { %v4787_v28 = vrot.slane %v4785_v14, 1 }
 0xc73   :  { %v4782_v51 = vsel %vm282_vm5, 0, %v4778_v6  ;;  %v4780_v7 = vsel %vm282_vm5, %v4778_v6, %v4779_v47 }
 0xc74   :  { %v4798_v24 = vrot.slane %v4782_v51, 1  ;;  %v4789_v4 = vshll.u32 %v4782_v51, 16  ;;  %v4812_v11 = vshll.u32 %v4780_v7, 16  ;;  %v4788_v36 = vor.u32 %v4787_v28, %v4783_v29 }
 0xc75   :  { %v4816_v20 = vshrl.u32 %v4780_v7, 16  ;;  %v4808_v21 = vshrl.u32 %v4782_v51, 16  ;;  %v4823_v22 = vrot.slane %v4780_v7, 1 }
 0xc76   :  { %v4799_v60 = vsel %vm94_vm0, %v4797_v8, %v4798_v24  ;;  %v4791_v35 = vrot.slane %v4789_v4, 1  ;;  %v4814_v12 = vrot.slane %v4812_v11, 1 }
 0xc77   :  { %4800 = vrot.lane.b32.xlu0 %v4799_v60, %s6714_s17  ;;  %v4824_v53 = vsel %vm94_vm0, %v4798_v24, %v4823_v22 }
 0xc78   :  { %v4792_v5 = vsel %vm8816_vm8, %v4788_v36, %v4791_v35  ;;  %v4818_v10 = vor.u32 %v4816_v20, %v4814_v12  ;;  %v4810_v62 = vor.u32 %v4808_v21, %v4791_v35 }
 0xc79   :  { %4793 = vrot.lane.b32.xlu1 %v4792_v5, %s6715_s18 }
 0xc7a   :  { %v4815_v13 = vsel %vm8817_vm15, %v4810_v62, %v4814_v12 }
 0xc7b   :  { %4821 = vrot.lane.b32.xlu0 %v4818_v10, %s6715_s18 }
 0xc7d   :  { %4819 = vrot.lane.b32.xlu1 %v4815_v13, %s6715_s18 }
 0xc7f   :  { %4827 = vrot.lane.b32.xlu0 %v4823_v22, %s6714_s17 }
 0xc81   :  { %4825 = vrot.lane.b32.xlu1 %v4824_v53, %s6714_s17 }
 0xce9   :  { %v4801_v23 = vpop.permute.xlu0 %4800 }
 0xcea   :  { %6290 = vmatprep.mubr.msk.bf16.mxu1 %vm8818_vm13, %v4801_v23 }
 0xceb   :  { %v4794_v18 = vpop.permute.xlu1 %4793 }
 0xcec   :  { %v4803_v37 = vsel %vm250_vm3, %v4769_v0, %v4794_v18  ;;  %v4806_v25 = vsel %vm8819_vm9, %v4794_v18, %v4801_v23 }
 0xced   :  { %v4822_v34 = vpop.permute.xlu0 %4821  ;;  %5057 = vmatprep.mubr.bf16.mxu0 %v4806_v25 }
 0xcee   :  { %5058 = vmatmul.mubr.bf16.vlgmr.msra.gmra.mxu0 %v4803_v37  ;;  %v4832_v19 = vsel %vm250_vm3, %v4780_v7, %v4822_v34 }
 0xcef   :  { %v4820_v50 = vpop.permute.xlu1 %4819  ;;  %v4842_v56 = vrot.slane %v4832_v19, 1 }
 0xcf0   :  { %v4830_v30 = vsel %vm250_vm3, %v4782_v51, %v4820_v50 }
 0xcf1   :  { %v4828_v48 = vpop.permute.xlu0 %4827  ;;  %v4841_v46 = vrot.slane %v4830_v30, 1 }
 0xcf2   :  { %v4836_v55 = vsel %vm8820_vm14, %v4822_v34, %v4828_v48  ;;  %v4848_v54 = vrot.slane %v4828_v48, 1 }
 0xcf3   :  { %v4826_v61 = vpop.permute.xlu1 %4825  ;;  %v4845_v41 = vrot.slane %v4836_v55, 1  ;;  %v4843_v43 = vsel %vm94_vm0, %v4841_v46, %v4842_v56 }
 0xcf4   :  { %v4834_v40 = vsel %vm8821_vm12, %v4820_v50, %v4826_v61  ;;  %v4847_v52 = vrot.slane %v4826_v61, 1 }
 0xcf5   :  { %v4844_v42 = vrot.slane %v4834_v40, 1 }
 0xcf6   :  { %v4849_v45 = vsel %vm94_vm0, %v4847_v52, %v4848_v54 }
 0xcf7   :  { %6291 = vmatmul.mubr.msk.bf16.vlgmr.msra.gmra.mxu1 %vm8822_vm10, %v4849_v45  ;;  %v4846_v63 = vsel %vm94_vm0, %v4844_v42, %v4845_v41  ;;  %vm5253_vm0 = vcmask 31744  }
 0xcf8   :  { %5065 = vmatprep.mubr.bf16.mxu0 %v4846_v63  ;;  %6310 = vmatprep.mubr.msk.f32.mxu1 %vm6713_vm2, %v6712_v33  ;;  %v5252_v63 = vld [vmem:[%s8795_s14] sm:$0xf] }
 0xcf9   :  { %5066 = vmatmul.mubr.bf16.gmra.mxu0 %v4843_v43  ;;  %6295 = vmatpush3.msra.mxu1 %v5161_v57 }
 0xcfa   :  { %6315 = vmatprep.mubr.msk.f32.mxu0 %vm6713_vm2, %v6712_v33  ;;  %6296 = vmatprep.subr.mxu1 %v6712_v33 }
 0xcfb   :  { %6297 = vmatpush3.msra.mxu1 %v5160_v44  ;;  %6314 = vmatpush3.msk.msra.mxu0 %vm3832_vm11, %v5252_v63 }
 0xcfc   :  { %6298 = vmatprep.subr.mxu1 %v6712_v33 }
 0xcfd   :  { %6299 = vmatpush3.msra.mxu1 %v5159_v58 }
 0xcfe   :  { %6300 = vmatprep.subr.mxu1 %v6712_v33 }
 0xcff   :  { %6301 = vmatpush3.msra.mxu1 %v5158_v9 }
 0xd00   :  { %6302 = vmatprep.subr.mxu1 %v6712_v33 }
 0xd01   :  { %6303 = vmatpush3.msra.mxu1 %v5157_v32 }
 0xd02   :  { %6304 = vmatprep.subr.mxu1 %v6712_v33 }
 0xd03   :  { %6305 = vmatpush3.msra.mxu1 %v5156_v39 }
 0xd04   :  { %6306 = vmatprep.subr.mxu1 %v6712_v33 }
 0xd05   :  { %6307 = vmatpush3.msra.mxu1 %v5155_v26 }
 0xd06   :  { %6308 = vmatprep.subr.mxu1 %v6712_v33 }
 0xd07   :  { %6309 = vmatpush3.msra.mxu1 %v5154_v27 }
 0xdae   :  { %v6166_v31 = vpop.f32.mrf.mxu0 }
 0xdb0   :  { %v6167_v49 = vpop.f32.mrf.mxu0 }
 0xdb1   :  { %v6168_v47 = vadd.f32 %v6167_v49, %v6166_v31 }
 0xdb2   :  { %v6169_v3 = vpop.f32.mrf.mxu0 }
 0xdb4   :  { %v6170_v0 = vpop.f32.mrf.mxu0 }
 0xdb5   :  { %v6171_v51 = vadd.f32 %v6170_v0, %v6169_v3 }
 0xdb7   :  { %v6292_v59 = vpop.f32.mrf.mxu1 }
 0xdb9   :  { %v6172_v2 = vpop.f32.mrf.mxu0  ;;  %v5108_v38 = vpop.f32.mrf.mxu1 }
 0xdba   :  { %v8665_v14 = vadd.f32 %v6168_v47, %v5108_v38 }
 0xdbb   :  { %v6173_v6 = vpop.f32.mrf.mxu0  ;;  %v6293_v28 = vpop.f32.mrf.mxu1 }
 0xdbc   :  { %v6174_v29 = vadd.f32 %v6173_v6, %v6172_v2  ;;  %v5136_v33 = vmul.f32 %v8665_v14, %v8665_v14  ;;  %v5123_v11 = vsel %vm70_vm1, %v8665_v14, 0.0 }
 0xdbd   :  { %v6175_v7 = vpop.f32.mrf.mxu0  ;;  %v5111_v1 = vpop.f32.mrf.mxu1 }
 0xdbe   :  { %v5117_v8 = vadd.f32 %v6292_v59, %v6174_v29  ;;  %v8669_v24 = vadd.f32 %v6171_v51, %v5111_v1  ;;  %v5140_v21 = vsel %vm70_vm1, %v5136_v33, 0.0 }
 0xdbf   :  { %v6176_v4 = vpop.f32.mrf.mxu0 }
 0xdc0   :  { %v5138_v36 = vmul.f32 %v5117_v8, %v5117_v8  ;;  %v5124_v20 = vsel %vm70_vm1, %v8669_v24, 0.0  ;;  %v5137_v60 = vmul.f32 %v8669_v24, %v8669_v24  ;;  %v6177_v12 = vadd.f32 %v6176_v4, %v6175_v7 }
 0xdc1   :  { %v5125_v35 = vadd.f32 %v5124_v20, %v5123_v11  ;;  %v5126_v5 = vsel %vm70_vm1, %v5117_v8, 0.0 }
 0xdc2   :  { %v5141_v10 = vsel %vm70_vm1, %v5137_v60, 0.0  ;;  %v5120_v22 = vadd.f32 %v6293_v28, %v6177_v12  ;;  %v5143_v53 = vsel %vm70_vm1, %v5138_v36, 0.0 }
 0xdc3   :  { %v5127_v62 = vadd.f32 %v5126_v5, %v5125_v35  ;;  %v5142_v13 = vadd.f32 %v5141_v10, %v5140_v21 }
 0xdc4   :  { %v5128_v18 = vsel %vm70_vm1, %v5120_v22, 0.0  ;;  %v5139_v37 = vmul.f32 %v5120_v22, %v5120_v22 }
 0xdc5   :  { %v5144_v23 = vadd.f32 %v5143_v53, %v5142_v13  ;;  %v5129_v25 = vadd.f32 %v5128_v18, %v5127_v62 }
 0xdc6   :  { %v5145_v34 = vsel %vm70_vm1, %v5139_v37, 0.0 }
 0xdc7   :  { %v5130_v50 = vrot.slane %v5129_v25, 4  ;;  %v5146_v30 = vadd.f32 %v5145_v34, %v5144_v23 }
 0xdc9   :  { %v5131_v48 = vadd.f32 %v5130_v50, %v5129_v25  ;;  %v5147_v55 = vrot.slane %v5146_v30, 4 }
 0xdcb   :  { %v5132_v19 = vrot.slane %v5131_v48, 2  ;;  %v5148_v61 = vadd.f32 %v5147_v55, %v5146_v30 }
 0xdcd   :  { %v5133_v46 = vadd.f32 %v5132_v19, %v5131_v48  ;;  %v5149_v54 = vrot.slane %v5148_v61, 2  ;;  %v6716_v48 = vmov 1983009808  }
 0xdce   :  { %v5497_v55 = vunpack.c.l.s4 %v6716_v48 }
 0xdcf   :  { %v5134_v40 = vrot.slane %v5133_v46, 1  ;;  %v5150_v52 = vadd.f32 %v5149_v54, %v5148_v61 }
 0xdd1   :  { %v5151_v41 = vrot.slane %v5150_v52, 1  ;;  %v5135_v42 = vadd.f32 %v5134_v40, %v5133_v46 }
 0xdd3   :  { %v5152_v56 = vadd.f32 %v5151_v41, %v5150_v52 }
 0xdd5   :  { %v5153_v45 = vsel %vm282_vm5, %v5135_v42, %v5152_v56  ;;  %v5498_v56 = vunpack.c.0.s8 %v5497_v55 }
 0xdd6   :  { %6311 = vmatmul.mubr.msk.f32.vlgmr.msra.gmra.mxu1 %vm70_vm1, %v5153_v45 }
 0xe96   :  { %v5231_v43 = vpop.f32.mrf.mxu1 }
 0xe97   :  { %v5235_v57 = vmul.f32 0.001953125, %v5231_v43 }
 0xe98   :  { %v6312_v44 = vpop.f32.mrf.mxu1 }
 0xe99   :  { %v5236_v58 = vmul.f32 %v5235_v57, %v5235_v57 }
 0xe9b   :  { %v5238_v9 = vrot.slane %v5236_v58, 7 }
 0xe9d   :  { %v5240_v32 = vsub.f32 %v5235_v57, %v5238_v9 }
 0xe9f   :  { %v5241_v39 = vmax.f32 %v5240_v32, 0.0 }
 0xea1   :  { %v5242_v26 = vadd.f32 1e-05, %v5241_v39 }
 0xea3   :  { %6693 = vrsqrt.f32 %v5242_v26 }
 0xeb0   :  { %v6694_v27 = vpop.eup %6693 }
 0xeb1   :  { %v5245_v31 = vrot.slane %v6694_v27, 1 }
 0xeb3   :  { %v5247_v49 = vmul.f32 %v5245_v31, %v5235_v57 }
 0xeb5   :  { %v5249_v3 = vrot.slane %v5247_v49, 7 }
 0xeb7   :  { %v5251_v0 = vsel %vm282_vm5, %v5245_v31, %v5249_v3  ;;  %v5501_v3 = vsub.s32 %v5498_v56, %v7058_v15 }
 0xeb8   :  { %6316 = vmatmul.mubr.msk.f32.vlgmr.msra.gmra.mxu0 %vm5253_vm0, %v5251_v0 }
 0xf78   :  { %v5326_v59 = vpop.f32.mrf.mxu0 }
 0xf79   :  { %v5333_v47 = vrot.slane %v5326_v59, %v7061_v16  ;;  %v5341_v6 = vrot.slane %v5326_v59, %v7064_v17 }
 0xf7a   :  { %v6317_v2 = vpop.f32.mrf.mxu0 }
 0xf7b   :  { %v5336_v38 = vmul.f32 %v5333_v47, %v5117_v8  ;;  %v5337_v51 = vmul.f32 %v5333_v47, %v5120_v22  ;;  %v5334_v17 = vmul.f32 %v5333_v47, %v8665_v14  ;;  %v5335_v14 = vmul.f32 %v5333_v47, %v8669_v24 }
 0xf7d   :  { %v8692_v28 = vsub.f32 %v5336_v38, %v5341_v6  ;;  %v8698_v1 = vsub.f32 %v5337_v51, %v5341_v6  ;;  %v8709_v11 = vsub.f32 %v5334_v17, %v5341_v6  ;;  %v8720_v12 = vsub.f32 %v5335_v14, %v5341_v6 }
 0xf7f   :  { %v5407_v29 = vrot.slane %v8692_v28, 3  ;;  %v5401_v7 = vrot.slane %v8692_v28, 1  ;;  %v5419_v33 = vrot.slane %v8692_v28, 7  ;;  %v5413_v16 = vrot.slane %v8692_v28, 5 }
 0xf80   :  { %v5430_v8 = vrot.slane %v8698_v1, 3  ;;  %v5424_v4 = vrot.slane %v8698_v1, 1  ;;  %v5442_v36 = vrot.slane %v8698_v1, 7  ;;  %v5436_v20 = vrot.slane %v8698_v1, 5 }
 0xf81   :  { %5408 = vrot.lane.b32.xlu0 %v5407_v29, %s6711_s26  ;;  %5402 = vrot.lane.b32.xlu1 %v5401_v7, %s6711_s26  ;;  %v5353_v60 = vrot.slane %v8709_v11, 3  ;;  %v5347_v35 = vrot.slane %v8709_v11, 1  ;;  %v5365_v21 = vrot.slane %v8709_v11, 7  ;;  %v5359_v5 = vrot.slane %v8709_v11, 5 }
 0xf82   :  { %v5376_v24 = vrot.slane %v8720_v12, 3  ;;  %v5370_v10 = vrot.slane %v8720_v12, 1  ;;  %v5388_v62 = vrot.slane %v8720_v12, 7  ;;  %v5382_v13 = vrot.slane %v8720_v12, 5 }
 0xf83   :  { %v5405_v34 = vrot.slane %v8692_v28, 2  ;;  %v5417_v46 = vrot.slane %v8692_v28, 6  ;;  %v5411_v54 = vrot.slane %v8692_v28, 4  ;;  %v5351_v40 = vrot.slane %v8709_v11, 2 }
 0xf84   :  { %v5428_v58 = vrot.slane %v8698_v1, 2  ;;  %v5363_v39 = vrot.slane %v8709_v11, 6  ;;  %v5357_v26 = vrot.slane %v8709_v11, 4  ;;  %v5434_v51 = vrot.slane %v8698_v1, 4 }
 0xf85   :  { %5420 = vrot.lane.b32.xlu0 %v5419_v33, %s6711_s26  ;;  %5414 = vrot.lane.b32.xlu1 %v5413_v16, %s6711_s26  ;;  %v5374_v15 = vrot.slane %v8720_v12, 2 }
 0xf89   :  { %5431 = vrot.lane.b32.xlu0 %v5430_v8, %s6711_s26  ;;  %5425 = vrot.lane.b32.xlu1 %v5424_v4, %s6711_s26 }
 0xf8d   :  { %5443 = vrot.lane.b32.xlu0 %v5442_v36, %s6711_s26  ;;  %5437 = vrot.lane.b32.xlu1 %v5436_v20, %s6711_s26 }
 0xf91   :  { %5354 = vrot.lane.b32.xlu0 %v5353_v60, %s6711_s26  ;;  %5348 = vrot.lane.b32.xlu1 %v5347_v35, %s6711_s26 }
 0xf95   :  { %5366 = vrot.lane.b32.xlu0 %v5365_v21, %s6711_s26  ;;  %5360 = vrot.lane.b32.xlu1 %v5359_v5, %s6711_s26 }
 0xf99   :  { %5377 = vrot.lane.b32.xlu0 %v5376_v24, %s6711_s26  ;;  %5371 = vrot.lane.b32.xlu1 %v5370_v10, %s6711_s26  ;;  %v5386_v24 = vrot.slane %v8720_v12, 6  ;;  %v5380_v10 = vrot.slane %v8720_v12, 4 }
 0xf9d   :  { %5389 = vrot.lane.b32.xlu0 %v5388_v62, %s6711_s26  ;;  %5383 = vrot.lane.b32.xlu1 %v5382_v13, %s6711_s26 }
 0xff3   :  { %v5409_v22 = vpop.permute.xlu0 %5408  ;;  %v5403_v53 = vpop.permute.xlu1 %5402 }
 0xff4   :  { %v5447_v19 = vsel %vm70_vm1, %v5405_v34, %v5409_v22  ;;  %v5446_v61 = vsel %vm70_vm1, %v8692_v28, %v5403_v53  ;;  %v5440_v28 = vrot.slane %v8698_v1, 6 }
 0xff5   :  { %v5463_v52 = vrot.slane %v5447_v19, 7  ;;  %v5462_v41 = vrot.slane %v5446_v61, 7 }
 0xff7   :  { %v5421_v23 = vpop.permute.xlu0 %5420  ;;  %v5415_v18 = vpop.permute.xlu1 %5414 }
 0xff8   :  { %v5449_v63 = vsel %vm70_vm1, %v5417_v46, %v5421_v23  ;;  %v5448_v43 = vsel %vm70_vm1, %v5411_v54, %v5415_v18 }
 0xff9   :  { %v5465_v27 = vrot.slane %v5449_v63, 7  ;;  %v5464_v31 = vrot.slane %v5448_v43, 7 }
 0xffb   :  { %v5432_v37 = vpop.permute.xlu0 %5431  ;;  %v5426_v25 = vpop.permute.xlu1 %5425 }
 0xffc   :  { %v5451_v49 = vsel %vm70_vm1, %v5428_v58, %v5432_v37  ;;  %v5450_v47 = vsel %vm70_vm1, %v8698_v1, %v5426_v25 }
 0xffd   :  { %v5467_v16 = vrot.slane %v5451_v49, 7  ;;  %v5466_v17 = vrot.slane %v5450_v47, 7 }
 0xfff   :  { %v5444_v50 = vpop.permute.xlu0 %5443  ;;  %v5438_v30 = vpop.permute.xlu1 %5437 }
0x1000   :  { %v5453_v8 = vsel %vm70_vm1, %v5440_v28, %v5444_v50  ;;  %v5452_v4 = vsel %vm70_vm1, %v5434_v51, %v5438_v30 }
0x1001   :  { %v5469_v62 = vrot.slane %v5453_v8, 7  ;;  %v5468_v13 = vrot.slane %v5452_v4, 7 }
0x1003   :  { %v5355_v42 = vpop.permute.xlu0 %5354  ;;  %v5349_v45 = vpop.permute.xlu1 %5348 }
0x1004   :  { %v5393_v57 = vsel %vm70_vm1, %v5351_v40, %v5355_v42  ;;  %v5392_v44 = vsel %vm70_vm1, %v8709_v11, %v5349_v45 }
0x1005   :  { %v5479_v9 = vsel %vm282_vm5, %v5393_v57, %v5463_v52  ;;  %v5478_v32 = vsel %vm282_vm5, %v5392_v44, %v5462_v41 }
0x1006   :  { %v5494_v2 = vcombine.low %v5478_v32, %v5479_v9 }
0x1007   :  { %v5367_v0 = vpop.permute.xlu0 %5366  ;;  %v5361_v59 = vpop.permute.xlu1 %5360 }
0x1008   :  { %v5395_v38 = vsel %vm70_vm1, %v5363_v39, %v5367_v0  ;;  %v5394_v6 = vsel %vm70_vm1, %v5357_v26, %v5361_v59  ;;  %v5502_v20 = vrot.slane %v5494_v2, %v5501_v3 }
0x1009   :  { %v5481_v29 = vsel %vm282_vm5, %v5395_v38, %v5465_v27  ;;  %v5480_v7 = vsel %vm282_vm5, %v5394_v6, %v5464_v31 }
0x100a   :  { %v5495_v33 = vcombine.low %v5480_v7, %v5481_v29 }
0x100b   :  { %v5378_v11 = vpop.permute.xlu0 %5377  ;;  %v5372_v36 = vpop.permute.xlu1 %5371 }
0x100c   :  { %v5509_v14 = vrot.slane %v5495_v33, %v5501_v3  ;;  %v5397_v60 = vsel %vm70_vm1, %v5374_v15, %v5378_v11  ;;  %v5396_v1 = vsel %vm70_vm1, %v8720_v12, %v5372_v36 }
0x100d   :  { %v5483_v35 = vsel %vm282_vm5, %v5397_v60, %v5467_v16  ;;  %v5482_v21 = vsel %vm282_vm5, %v5396_v1, %v5466_v17 }
0x100e   :  { %v5510_v5 = vcombine.low %v5502_v20, %v5509_v14  ;;  %v5511_v23 = vcombine.low %v5482_v21, %v5483_v35 }
0x100f   :  { %v5390_v22 = vpop.permute.xlu0 %5389  ;;  %v5384_v53 = vpop.permute.xlu1 %5383 }
0x1010   :  { %5530 = vst [vmem:[%s8796_s15] sm:$0xff] %v5510_v5  ;;  %v5399_v18 = vsel %vm70_vm1, %v5386_v24, %v5390_v22  ;;  %v5398_v37 = vsel %vm70_vm1, %v5380_v10, %v5384_v53  ;;  %v5519_v30 = vrot.slane %v5511_v23, %v5501_v3 }
0x1011   :  { %v5485_v25 = vsel %vm282_vm5, %v5399_v18, %v5469_v62  ;;  %v5484_v34 = vsel %vm282_vm5, %v5398_v37, %v5468_v13 }
0x1012   :  { %v5512_v50 = vcombine.low %v5484_v34, %v5485_v25 }
0x1014   :  { %v5526_v12 = vrot.slane %v5512_v50, %v5501_v3 }
0x1016   :  { %v5527_v48 = vcombine.low %v5519_v30, %v5526_v12 }
0x1018   :  { %5531 = vst [vmem:[%s8796_s15 + $0x8] sm:$0xff] %v5527_v48 }

</bundles_post_ra>
